<compile_context>
chip_gen: v5e
topology: v5e:2x2
jax: 0.10.0
libtpu: 0.0.40
codegen_flags: <defaults>
</compile_context>

<pallas_src>
import math

import jax
import jax.numpy as jnp
from jax.experimental import pallas as pl

# ------------------------- model hyper-parameters (small) -------------------------
VOCAB = 32
D_MODEL = 32
NUM_HEADS = 4
D_HEAD = D_MODEL // NUM_HEADS
FFN_HIDDEN = 64
NUM_LAYERS = 2
BATCH = 2
SEQ = 8
LN_EPS = 1e-5                      # torch.nn.LayerNorm default
ATT_SCALE = 1.0 / math.sqrt(D_HEAD)
EMB_SCALE = math.sqrt(D_MODEL)

# ------------------------- weight-slab layout (static) -------------------------
SLAB_COLS = 128                    # lane-dense
_SUBLANE = 8                       # 8-align every parameter's row offset


def _layout_entries():
    e = []
    for l in range(NUM_LAYERS):
        p = f"e{l}_"
        e += [(p + "wqkv", D_MODEL, 3 * D_MODEL), (p + "bqkv", 1, 3 * D_MODEL),
              (p + "wo", D_MODEL, D_MODEL), (p + "bo", 1, D_MODEL),
              (p + "g1", 1, D_MODEL), (p + "b1", 1, D_MODEL),
              (p + "w1", D_MODEL, FFN_HIDDEN), (p + "fb1", 1, FFN_HIDDEN),
              (p + "w2", FFN_HIDDEN, D_MODEL), (p + "fb2", 1, D_MODEL),
              (p + "g2", 1, D_MODEL), (p + "b2", 1, D_MODEL)]
    for l in range(NUM_LAYERS):
        p = f"d{l}_"
        e += [(p + "wqkv", D_MODEL, 3 * D_MODEL), (p + "bqkv", 1, 3 * D_MODEL),
              (p + "wo1", D_MODEL, D_MODEL), (p + "bo1", 1, D_MODEL),
              (p + "g1", 1, D_MODEL), (p + "b1", 1, D_MODEL),
              (p + "wqc", D_MODEL, D_MODEL), (p + "bqc", 1, D_MODEL),
              (p + "wkvc", D_MODEL, 2 * D_MODEL), (p + "bkvc", 1, 2 * D_MODEL),
              (p + "wo2", D_MODEL, D_MODEL), (p + "bo2", 1, D_MODEL),
              (p + "g2", 1, D_MODEL), (p + "b2", 1, D_MODEL),
              (p + "w1", D_MODEL, FFN_HIDDEN), (p + "fb1", 1, FFN_HIDDEN),
              (p + "w2", FFN_HIDDEN, D_MODEL), (p + "fb2", 1, D_MODEL),
              (p + "g3", 1, D_MODEL), (p + "b3", 1, D_MODEL)]
    e += [("out_w", D_MODEL, VOCAB), ("out_b", 1, VOCAB)]
    return e


def _build_layout():
    layout, off = {}, 0
    for name, r, c in _layout_entries():
        layout[name] = (off, r, c)
        off += ((r + _SUBLANE - 1) // _SUBLANE) * _SUBLANE
    return layout, off


SLAB_LAYOUT, SLAB_ROWS = _build_layout()


# ------------------------------- fused Pallas kernel --------------------------------
def _fwd_kernel(enc_x_ref, dec_x_ref, slab_ref, o_ref):
    D, H, B, S = D_MODEL, NUM_HEADS, BATCH, SEQ
    NROW = B * H * S                      # 64 rows in head/batch-blocked layout
    SHIFT = S.bit_length() - 1            # S is a power of two (8)

    def get(name):
        off, r, c = SLAB_LAYOUT[name]
        return slab_ref[off:off + r, 0:c]  # static, 8-aligned slice of the weight slab

    def dot(a, b):
        return jnp.dot(a, b, preferred_element_type=jnp.float32)

    def layernorm(z, g, b):
        mu = jnp.mean(z, axis=-1, keepdims=True)
        var = jnp.mean((z - mu) ** 2, axis=-1, keepdims=True)
        return (z - mu) * jax.lax.rsqrt(var + LN_EPS) * g + b

    def split_heads(x):
        # (B*S, D) -> (B*H*S, D_HEAD): per-(batch, head) (S, D_HEAD) blocks stacked
        # along the sublane axis so one matmul covers every head and batch element.
        blocks = []
        for b in range(B):
            rows = x[b * S:(b + 1) * S, :]
            for h in range(H):
                blocks.append(rows[:, h * D_HEAD:(h + 1) * D_HEAD])
        return jnp.concatenate(blocks, axis=0)

    def merge_heads(x):
        # (B*H*S, D_HEAD) -> (B*S, D)
        out = []
        for b in range(B):
            heads = [x[(b * H + h) * S:(b * H + h + 1) * S, :] for h in range(H)]
            out.append(jnp.concatenate(heads, axis=1))
        return jnp.concatenate(out, axis=0)

    # Additive masks built in-kernel: block-diagonal over the B*H blocks of size S,
    # optionally causal within each block (decoder self-attention).
    ri = jax.lax.broadcasted_iota(jnp.int32, (NROW, NROW), 0)
    ci = jax.lax.broadcasted_iota(jnp.int32, (NROW, NROW), 1)
    same_blk = (ri >> SHIFT) == (ci >> SHIFT)
    causal_ok = (ri & (S - 1)) >= (ci & (S - 1))
    neg = jnp.float32(-1e9)
    mask_blk = jnp.where(same_blk, 0.0, neg)
    mask_causal = jnp.where(same_blk & causal_ok, 0.0, neg)

    def attention(q, k, v, mask):
        qh, kh, vh = split_heads(q), split_heads(k), split_heads(v)
        s = jax.lax.dot_general(qh, kh, (((1,), (1,)), ((), ())),
                                preferred_element_type=jnp.float32)   # (64, 64)
        s = s * ATT_SCALE + mask
        s = s - jnp.max(s, axis=-1, keepdims=True)
        p = jnp.exp(s)                                                # masked -> exactly 0
        p = p * pl.reciprocal(jnp.sum(p, axis=-1, keepdims=True), approx=True)
        return merge_heads(dot(p, vh))                                # (B*S, D)

    # ------------------------------- encoder -------------------------------
    x = enc_x_ref[...]                                   # (B*Se, D)
    for l in range(NUM_LAYERS):
        qkv = dot(x, get(f"e{l}_wqkv")) + get(f"e{l}_bqkv")
        a = attention(qkv[:, :D], qkv[:, D:2 * D], qkv[:, 2 * D:], mask_blk)
        a = dot(a, get(f"e{l}_wo")) + get(f"e{l}_bo")
        y = layernorm(x + a, get(f"e{l}_g1"), get(f"e{l}_b1"))
        hdn = jnp.maximum(dot(y, get(f"e{l}_w1")) + get(f"e{l}_fb1"), 0.0)
        f = dot(hdn, get(f"e{l}_w2")) + get(f"e{l}_fb2")
        x = layernorm(y + f, get(f"e{l}_g2"), get(f"e{l}_b2"))
    enc_out = x                                          # decoder.init_state(enc_outputs)

    # ------------------------------- decoder -------------------------------
    y = dec_x_ref[...]                                   # (B*Sd, D)
    for l in range(NUM_LAYERS):
        # masked self-attention
        qkv = dot(y, get(f"d{l}_wqkv")) + get(f"d{l}_bqkv")
        a = attention(qkv[:, :D], qkv[:, D:2 * D], qkv[:, 2 * D:], mask_causal)
        a = dot(a, get(f"d{l}_wo1")) + get(f"d{l}_bo1")
        z1 = layernorm(y + a, get(f"d{l}_g1"), get(f"d{l}_b1"))
        # encoder-decoder cross attention (full valid lens -> block mask only)
        qc = dot(z1, get(f"d{l}_wqc")) + get(f"d{l}_bqc")
        kvc = dot(enc_out, get(f"d{l}_wkvc")) + get(f"d{l}_bkvc")
        c = attention(qc, kvc[:, :D], kvc[:, D:], mask_blk)
        c = dot(c, get(f"d{l}_wo2")) + get(f"d{l}_bo2")
        z2 = layernorm(z1 + c, get(f"d{l}_g2"), get(f"d{l}_b2"))
        # position-wise FFN
        hdn = jnp.maximum(dot(z2, get(f"d{l}_w1")) + get(f"d{l}_fb1"), 0.0)
        f = dot(hdn, get(f"d{l}_w2")) + get(f"d{l}_fb2")
        y = layernorm(z2 + f, get(f"d{l}_g3"), get(f"d{l}_b3"))

    logits = dot(y, get("out_w")) + get("out_b")         # (B*Sd, VOCAB)
    o_ref[...] = logits.astype(o_ref.dtype)


# ------------------------------- plain-JAX glue --------------------------------------
def sinusoidal_pos_encoding(seq, d):
    pos = jnp.arange(seq, dtype=jnp.float32)[:, None]
    idx = jnp.arange(0, d, 2, dtype=jnp.float32)[None, :]
    angle = pos / jnp.power(10000.0, idx / d)
    pe = jnp.zeros((seq, d), jnp.float32)
    pe = pe.at[:, 0::2].set(jnp.sin(angle))
    pe = pe.at[:, 1::2].set(jnp.cos(angle))
    return pe


def encoder_decoder_forward(packed, enc_X, dec_X):
    B, Se = enc_X.shape
    _, Sd = dec_X.shape

    # Embedding lookup + positional encoding (tiny int gather; kept in plain JAX).
    enc_x = (packed['enc_emb'][enc_X] * EMB_SCALE
             + sinusoidal_pos_encoding(Se, D_MODEL)[None]).reshape(B * Se, D_MODEL)
    dec_x = (packed['dec_emb'][dec_X] * EMB_SCALE
             + sinusoidal_pos_encoding(Sd, D_MODEL)[None]).reshape(B * Sd, D_MODEL)

    # Single invocation (no grid): whole arrays mapped into VMEM; one slab DMA.
    logits = pl.pallas_call(
        _fwd_kernel,
        out_shape=jax.ShapeDtypeStruct((B * Sd, VOCAB), jnp.float32),
    )(enc_x.astype(jnp.float32), dec_x.astype(jnp.float32), packed['slab'])
    return logits.reshape(B, Sd, VOCAB)


# ------------------------------- parameter init / pack -------------------------------
def init_params(key):
    def dense_p(key, din, dout):
        return (jax.random.normal(key, (din, dout), jnp.float32) * 0.02,
                jnp.zeros((dout,), jnp.float32))

    def attn_p(key):
        ks = jax.random.split(key, 4)
        wq, bq = dense_p(ks[0], D_MODEL, D_MODEL)
        wk, bk = dense_p(ks[1], D_MODEL, D_MODEL)
        wv, bv = dense_p(ks[2], D_MODEL, D_MODEL)
        wo, bo = dense_p(ks[3], D_MODEL, D_MODEL)
        return dict(wq=wq, bq=bq, wk=wk, bk=bk, wv=wv, bv=bv, wo=wo, bo=bo)

    def an_p():
        return dict(gamma=jnp.ones((D_MODEL,), jnp.float32),
                    beta=jnp.zeros((D_MODEL,), jnp.float32))

    def ffn_p(key):
        k1, k2 = jax.random.split(key)
        w1, b1 = dense_p(k1, D_MODEL, FFN_HIDDEN)
        w2, b2 = dense_p(k2, FFN_HIDDEN, D_MODEL)
        return dict(w1=w1, b1=b1, w2=w2, b2=b2)

    keys = jax.random.split(key, 4 + 2 * NUM_LAYERS)
    params = dict(
        enc_emb=jax.random.normal(keys[0], (VOCAB, D_MODEL), jnp.float32) * 0.02,
        dec_emb=jax.random.normal(keys[1], (VOCAB, D_MODEL), jnp.float32) * 0.02,
    )
    enc_layers, dec_layers = [], []
    for i in range(NUM_LAYERS):
        ka, kf = jax.random.split(keys[2 + i])
        enc_layers.append(dict(attn=attn_p(ka), an1=an_p(), ffn=ffn_p(kf), an2=an_p()))
    for i in range(NUM_LAYERS):
        ks, kc, kf = jax.random.split(keys[2 + NUM_LAYERS + i], 3)
        dec_layers.append(dict(self_attn=attn_p(ks), an1=an_p(),
                               cross_attn=attn_p(kc), an2=an_p(),
                               ffn=ffn_p(kf), an3=an_p()))
    params['enc_layers'] = enc_layers
    params['dec_layers'] = dec_layers
    ow, ob = dense_p(keys[2 + 2 * NUM_LAYERS], D_MODEL, VOCAB)
    params['out_w'], params['out_b'] = ow, ob
    return params


def _assemble_slab(tensors):
    """Pack the name->array dict into one (SLAB_ROWS, 128) f32 slab following SLAB_LAYOUT."""
    parts, expected_off = [], 0
    for name, (off, r, c) in SLAB_LAYOUT.items():
        assert off == expected_off
        a = tensors[name].astype(jnp.float32)
        if a.ndim == 1:
            a = a[None, :]
        assert a.shape == (r, c), (name, a.shape, (r, c))
        r_pad = ((r + _SUBLANE - 1) // _SUBLANE) * _SUBLANE
        parts.append(jnp.zeros((r_pad, SLAB_COLS), jnp.float32).at[:r, :c].set(a))
        expected_off += r_pad
    slab = jnp.concatenate(parts, axis=0)
    assert slab.shape == (SLAB_ROWS, SLAB_COLS)
    return slab


def pack_params(params):
    """Flatten torch-like per-layer dicts into the single weight slab the kernel expects.
    QKV (and cross K|V) weights/biases are fused once at pack time."""
    t = {}
    for l, p in enumerate(params['enc_layers']):
        a = p['attn']
        t[f"e{l}_wqkv"] = jnp.concatenate([a['wq'], a['wk'], a['wv']], axis=1)
        t[f"e{l}_bqkv"] = jnp.concatenate([a['bq'], a['bk'], a['bv']])
        t[f"e{l}_wo"], t[f"e{l}_bo"] = a['wo'], a['bo']
        t[f"e{l}_g1"], t[f"e{l}_b1"] = p['an1']['gamma'], p['an1']['beta']
        t[f"e{l}_w1"], t[f"e{l}_fb1"] = p['ffn']['w1'], p['ffn']['b1']
        t[f"e{l}_w2"], t[f"e{l}_fb2"] = p['ffn']['w2'], p['ffn']['b2']
        t[f"e{l}_g2"], t[f"e{l}_b2"] = p['an2']['gamma'], p['an2']['beta']
    for l, p in enumerate(params['dec_layers']):
        sa, ca = p['self_attn'], p['cross_attn']
        t[f"d{l}_wqkv"] = jnp.concatenate([sa['wq'], sa['wk'], sa['wv']], axis=1)
        t[f"d{l}_bqkv"] = jnp.concatenate([sa['bq'], sa['bk'], sa['bv']])
        t[f"d{l}_wo1"], t[f"d{l}_bo1"] = sa['wo'], sa['bo']
        t[f"d{l}_g1"], t[f"d{l}_b1"] = p['an1']['gamma'], p['an1']['beta']
        t[f"d{l}_wqc"], t[f"d{l}_bqc"] = ca['wq'], ca['bq']
        t[f"d{l}_wkvc"] = jnp.concatenate([ca['wk'], ca['wv']], axis=1)
        t[f"d{l}_bkvc"] = jnp.concatenate([ca['bk'], ca['bv']])
        t[f"d{l}_wo2"], t[f"d{l}_bo2"] = ca['wo'], ca['bo']
        t[f"d{l}_g2"], t[f"d{l}_b2"] = p['an2']['gamma'], p['an2']['beta']
        t[f"d{l}_w1"], t[f"d{l}_fb1"] = p['ffn']['w1'], p['ffn']['b1']
        t[f"d{l}_w2"], t[f"d{l}_fb2"] = p['ffn']['w2'], p['ffn']['b2']
        t[f"d{l}_g3"], t[f"d{l}_b3"] = p['an3']['gamma'], p['an3']['beta']
    t["out_w"], t["out_b"] = params['out_w'], params['out_b']
    return dict(enc_emb=params['enc_emb'], dec_emb=params['dec_emb'],
                slab=_assemble_slab(t))


# ------------------------------- pure-JAX reference -----------------------------------
def reference_forward(params, enc_X, dec_X):
    B, Se = enc_X.shape
    _, Sd = dec_X.shape

    def mha(p, q_in, kv_in, mask):
        Bq, Sq, D = q_in.shape
        Sk = kv_in.shape[1]

        def heads(x, S):
            return x.reshape(Bq, S, NUM_HEADS, D_HEAD).transpose(0, 2, 1, 3)

        q = heads(q_in @ p['wq'] + p['bq'], Sq)
        k = heads(kv_in @ p['wk'] + p['bk'], Sk)
        v = heads(kv_in @ p['wv'] + p['bv'], Sk)
        s = jnp.einsum('bhqd,bhkd->bhqk', q, k) * ATT_SCALE
        if mask is not None:
            s = s + mask
        a = jax.nn.softmax(s, axis=-1)
        o = jnp.einsum('bhqk,bhkd->bhqd', a, v).transpose(0, 2, 1, 3).reshape(Bq, Sq, D)
        return o @ p['wo'] + p['bo']

    def ln(p, z):
        mu = z.mean(-1, keepdims=True)
        var = ((z - mu) ** 2).mean(-1, keepdims=True)
        return (z - mu) * jax.lax.rsqrt(var + LN_EPS) * p['gamma'] + p['beta']

    def ffn(p, x):
        return jnp.maximum(x @ p['w1'] + p['b1'], 0.0) @ p['w2'] + p['b2']

    x = params['enc_emb'][enc_X] * EMB_SCALE + sinusoidal_pos_encoding(Se, D_MODEL)[None]
    for lp in params['enc_layers']:
        y = ln(lp['an1'], x + mha(lp['attn'], x, x, None))
        x = ln(lp['an2'], y + ffn(lp['ffn'], y))
    enc_out = x

    causal = jnp.where(jnp.arange(Sd)[:, None] >= jnp.arange(Sd)[None, :], 0.0, -1e9)
    y = params['dec_emb'][dec_X] * EMB_SCALE + sinusoidal_pos_encoding(Sd, D_MODEL)[None]
    for lp in params['dec_layers']:
        z1 = ln(lp['an1'], y + mha(lp['self_attn'], y, y, causal))
        z2 = ln(lp['an2'], z1 + mha(lp['cross_attn'], z1, enc_out, None))
        y = ln(lp['an3'], z2 + ffn(lp['ffn'], z2))
    return y @ params['out_w'] + params['out_b']


# ------------------------------------- main ------------------------------------------
if __name__ == "__main__":
    root = jax.random.PRNGKey(0)
    k_par, k_enc, k_dec = jax.random.split(root, 3)

    params = init_params(k_par)
    packed = pack_params(params)
    enc_X = jax.random.randint(k_enc, (BATCH, SEQ), 0, VOCAB, dtype=jnp.int32)
    dec_X = jax.random.randint(k_dec, (BATCH, SEQ), 0, VOCAB, dtype=jnp.int32)

    fwd = jax.jit(encoder_decoder_forward)
    out = jax.block_until_ready(fwd(packed, enc_X, dec_X))

    assert out.shape == (BATCH, SEQ, VOCAB)
    assert bool(jnp.all(jnp.isfinite(out)))

    ref = jax.block_until_ready(jax.jit(reference_forward)(params, enc_X, dec_X))
    assert bool(jnp.allclose(out, ref, atol=3e-3, rtol=1e-2)), "fused kernel mismatch vs reference"

    # TODO(synk): dropout layers are identity in eval mode and were intentionally omitted.
    print("KERNEL_OK")
</pallas_src>

<mosaic_0001>
module attributes {stable_mosaic.version = 11 : i64} {
  func.func @_fwd_kernel(%arg0: memref<16x32xf32, #tpu.memory_space<vmem>>, %arg1: memref<16x32xf32, #tpu.memory_space<vmem>>, %arg2: memref<1208x128xf32, #tpu.memory_space<vmem>>, %arg3: memref<16x32xf32, #tpu.memory_space<vmem>>) attributes {dimension_semantics = [], scalar_prefetch = 0 : i64, scratch_operands = 0 : i64, tpu.core_type = #tpu.core_type<tc>} {
    %0 = tpu.iota {dimensions = array<i32: 0>} : vector<64x64xi32>
    %1 = tpu.iota {dimensions = array<i32: 1>} : vector<64x64xi32>
    %c3_i32 = arith.constant 3 : i32
    %2 = vector.broadcast %c3_i32 : i32 to vector<64x64xi32>
    %3 = arith.shrsi %0, %2 : vector<64x64xi32>
    %c3_i32_0 = arith.constant 3 : i32
    %4 = vector.broadcast %c3_i32_0 : i32 to vector<64x64xi32>
    %5 = arith.shrsi %1, %4 : vector<64x64xi32>
    %6 = arith.cmpi eq, %3, %5 : vector<64x64xi32>
    %c7_i32 = arith.constant 7 : i32
    %7 = vector.broadcast %c7_i32 : i32 to vector<64x64xi32>
    %8 = arith.andi %0, %7 : vector<64x64xi32>
    %c7_i32_1 = arith.constant 7 : i32
    %9 = vector.broadcast %c7_i32_1 : i32 to vector<64x64xi32>
    %10 = arith.andi %1, %9 : vector<64x64xi32>
    %11 = arith.cmpi sge, %8, %10 : vector<64x64xi32>
    %cst = arith.constant 0.000000e+00 : f32
    %cst_2 = arith.constant -1.000000e+09 : f32
    %12 = vector.broadcast %cst : f32 to vector<64x64xf32>
    %13 = vector.broadcast %cst_2 : f32 to vector<64x64xf32>
    %14 = arith.select %6, %12, %13 : vector<64x64xi1>, vector<64x64xf32>
    %15 = arith.andi %6, %11 : vector<64x64xi1>
    %cst_3 = arith.constant 0.000000e+00 : f32
    %cst_4 = arith.constant -1.000000e+09 : f32
    %16 = vector.broadcast %cst_3 : f32 to vector<64x64xf32>
    %17 = vector.broadcast %cst_4 : f32 to vector<64x64xf32>
    %18 = arith.select %15, %16, %17 : vector<64x64xi1>, vector<64x64xf32>
    %c0 = arith.constant 0 : index
    %c0_5 = arith.constant 0 : index
    %19 = vector.load %arg0[%c0, %c0_5] : memref<16x32xf32, #tpu.memory_space<vmem>>, vector<16x32xf32>
    %c0_6 = arith.constant 0 : index
    %c0_7 = arith.constant 0 : index
    %20 = vector.load %arg2[%c0_6, %c0_7] : memref<1208x128xf32, #tpu.memory_space<vmem>>, vector<32x96xf32>
    %cst_8 = arith.constant dense<0.000000e+00> : vector<16x96xf32>
    %21 = tpu.matmul %19, %20, %cst_8 {dimension_numbers = #tpu.dot_dimension_numbers<[1], [0], [0], [1], [0, 0, 1, 1], [], []>} : vector<16x32xf32>, vector<32x96xf32>, vector<16x96xf32> -> vector<16x96xf32>
    %c32 = arith.constant 32 : index
    %c0_9 = arith.constant 0 : index
    %22 = vector.load %arg2[%c32, %c0_9] : memref<1208x128xf32, #tpu.memory_space<vmem>>, vector<1x96xf32>
    %23 = vector.broadcast %22 : vector<1x96xf32> to vector<16x96xf32>
    %24 = arith.addf %21, %23 : vector<16x96xf32>
    %25 = vector.extract_strided_slice %24 {offsets = [0, 0], sizes = [16, 32], strides = [1, 1]} : vector<16x96xf32> to vector<16x32xf32>
    %26 = vector.extract_strided_slice %24 {offsets = [0, 32], sizes = [16, 32], strides = [1, 1]} : vector<16x96xf32> to vector<16x32xf32>
    %27 = vector.extract_strided_slice %24 {offsets = [0, 64], sizes = [16, 32], strides = [1, 1]} : vector<16x96xf32> to vector<16x32xf32>
    %28 = vector.extract_strided_slice %25 {offsets = [0, 0], sizes = [8, 32], strides = [1, 1]} : vector<16x32xf32> to vector<8x32xf32>
    %29 = vector.extract_strided_slice %28 {offsets = [0, 0], sizes = [8, 8], strides = [1, 1]} : vector<8x32xf32> to vector<8x8xf32>
    %30 = vector.extract_strided_slice %28 {offsets = [0, 8], sizes = [8, 8], strides = [1, 1]} : vector<8x32xf32> to vector<8x8xf32>
    %31 = vector.extract_strided_slice %28 {offsets = [0, 16], sizes = [8, 8], strides = [1, 1]} : vector<8x32xf32> to vector<8x8xf32>
    %32 = vector.extract_strided_slice %28 {offsets = [0, 24], sizes = [8, 8], strides = [1, 1]} : vector<8x32xf32> to vector<8x8xf32>
    %33 = vector.extract_strided_slice %25 {offsets = [8, 0], sizes = [8, 32], strides = [1, 1]} : vector<16x32xf32> to vector<8x32xf32>
    %34 = vector.extract_strided_slice %33 {offsets = [0, 0], sizes = [8, 8], strides = [1, 1]} : vector<8x32xf32> to vector<8x8xf32>
    %35 = vector.extract_strided_slice %33 {offsets = [0, 8], sizes = [8, 8], strides = [1, 1]} : vector<8x32xf32> to vector<8x8xf32>
    %36 = vector.extract_strided_slice %33 {offsets = [0, 16], sizes = [8, 8], strides = [1, 1]} : vector<8x32xf32> to vector<8x8xf32>
    %37 = vector.extract_strided_slice %33 {offsets = [0, 24], sizes = [8, 8], strides = [1, 1]} : vector<8x32xf32> to vector<8x8xf32>
    %38 = tpu.concatenate %29, %30, %31, %32, %34, %35, %36, %37 in 0 : vector<8x8xf32>, vector<8x8xf32>, vector<8x8xf32>, vector<8x8xf32>, vector<8x8xf32>, vector<8x8xf32>, vector<8x8xf32>, vector<8x8xf32> -> vector<64x8xf32>
    %39 = vector.extract_strided_slice %26 {offsets = [0, 0], sizes = [8, 32], strides = [1, 1]} : vector<16x32xf32> to vector<8x32xf32>
    %40 = vector.extract_strided_slice %39 {offsets = [0, 0], sizes = [8, 8], strides = [1, 1]} : vector<8x32xf32> to vector<8x8xf32>
    %41 = vector.extract_strided_slice %39 {offsets = [0, 8], sizes = [8, 8], strides = [1, 1]} : vector<8x32xf32> to vector<8x8xf32>
    %42 = vector.extract_strided_slice %39 {offsets = [0, 16], sizes = [8, 8], strides = [1, 1]} : vector<8x32xf32> to vector<8x8xf32>
    %43 = vector.extract_strided_slice %39 {offsets = [0, 24], sizes = [8, 8], strides = [1, 1]} : vector<8x32xf32> to vector<8x8xf32>
    %44 = vector.extract_strided_slice %26 {offsets = [8, 0], sizes = [8, 32], strides = [1, 1]} : vector<16x32xf32> to vector<8x32xf32>
    %45 = vector.extract_strided_slice %44 {offsets = [0, 0], sizes = [8, 8], strides = [1, 1]} : vector<8x32xf32> to vector<8x8xf32>
    %46 = vector.extract_strided_slice %44 {offsets = [0, 8], sizes = [8, 8], strides = [1, 1]} : vector<8x32xf32> to vector<8x8xf32>
    %47 = vector.extract_strided_slice %44 {offsets = [0, 16], sizes = [8, 8], strides = [1, 1]} : vector<8x32xf32> to vector<8x8xf32>
    %48 = vector.extract_strided_slice %44 {offsets = [0, 24], sizes = [8, 8], strides = [1, 1]} : vector<8x32xf32> to vector<8x8xf32>
    %49 = tpu.concatenate %40, %41, %42, %43, %45, %46, %47, %48 in 0 : vector<8x8xf32>, vector<8x8xf32>, vector<8x8xf32>, vector<8x8xf32>, vector<8x8xf32>, vector<8x8xf32>, vector<8x8xf32>, vector<8x8xf32> -> vector<64x8xf32>
    %50 = vector.extract_strided_slice %27 {offsets = [0, 0], sizes = [8, 32], strides = [1, 1]} : vector<16x32xf32> to vector<8x32xf32>
    %51 = vector.extract_strided_slice %50 {offsets = [0, 0], sizes = [8, 8], strides = [1, 1]} : vector<8x32xf32> to vector<8x8xf32>
    %52 = vector.extract_strided_slice %50 {offsets = [0, 8], sizes = [8, 8], strides = [1, 1]} : vector<8x32xf32> to vector<8x8xf32>
    %53 = vector.extract_strided_slice %50 {offsets = [0, 16], sizes = [8, 8], strides = [1, 1]} : vector<8x32xf32> to vector<8x8xf32>
    %54 = vector.extract_strided_slice %50 {offsets = [0, 24], sizes = [8, 8], strides = [1, 1]} : vector<8x32xf32> to vector<8x8xf32>
    %55 = vector.extract_strided_slice %27 {offsets = [8, 0], sizes = [8, 32], strides = [1, 1]} : vector<16x32xf32> to vector<8x32xf32>
    %56 = vector.extract_strided_slice %55 {offsets = [0, 0], sizes = [8, 8], strides = [1, 1]} : vector<8x32xf32> to vector<8x8xf32>
    %57 = vector.extract_strided_slice %55 {offsets = [0, 8], sizes = [8, 8], strides = [1, 1]} : vector<8x32xf32> to vector<8x8xf32>
    %58 = vector.extract_strided_slice %55 {offsets = [0, 16], sizes = [8, 8], strides = [1, 1]} : vector<8x32xf32> to vector<8x8xf32>
    %59 = vector.extract_strided_slice %55 {offsets = [0, 24], sizes = [8, 8], strides = [1, 1]} : vector<8x32xf32> to vector<8x8xf32>
    %60 = tpu.concatenate %51, %52, %53, %54, %56, %57, %58, %59 in 0 : vector<8x8xf32>, vector<8x8xf32>, vector<8x8xf32>, vector<8x8xf32>, vector<8x8xf32>, vector<8x8xf32>, vector<8x8xf32>, vector<8x8xf32> -> vector<64x8xf32>
    %cst_10 = arith.constant dense<0.000000e+00> : vector<64x64xf32>
    %61 = tpu.matmul %38, %49, %cst_10 {dimension_numbers = #tpu.dot_dimension_numbers<[1], [1], [0], [0], [0, 0, 1, 0], [], []>} : vector<64x8xf32>, vector<64x8xf32>, vector<64x64xf32> -> vector<64x64xf32>
    %cst_11 = arith.constant 0.353553385 : f32
    %62 = vector.broadcast %cst_11 : f32 to vector<64x64xf32>
    %63 = arith.mulf %61, %62 : vector<64x64xf32>
    %64 = arith.addf %63, %14 : vector<64x64xf32>
    %cst_12 = arith.constant dense<0xFF800000> : vector<64xf32>
    %65 = vector.multi_reduction <maximumf>, %64, %cst_12 [1] : vector<64x64xf32> to vector<64xf32>
    %66 = vector.shape_cast %65 : vector<64xf32> to vector<64x1xf32>
    %67 = vector.broadcast %66 : vector<64x1xf32> to vector<64x64xf32>
    %68 = arith.subf %64, %67 : vector<64x64xf32>
    %69 = math.exp %68 : vector<64x64xf32>
    %cst_13 = arith.constant dense<0.000000e+00> : vector<64xf32>
    %70 = vector.multi_reduction <add>, %69, %cst_13 [1] : vector<64x64xf32> to vector<64xf32>
    %71 = vector.shape_cast %70 : vector<64xf32> to vector<64x1xf32>
    %72 = tpu.reciprocal %71 {approx = true} : vector<64x1xf32> -> vector<64x1xf32>
    %73 = vector.broadcast %72 : vector<64x1xf32> to vector<64x64xf32>
    %74 = arith.mulf %69, %73 : vector<64x64xf32>
    %cst_14 = arith.constant dense<0.000000e+00> : vector<64x8xf32>
    %75 = tpu.matmul %74, %60, %cst_14 {dimension_numbers = #tpu.dot_dimension_numbers<[1], [0], [0], [1], [0, 0, 1, 1], [], []>} : vector<64x64xf32>, vector<64x8xf32>, vector<64x8xf32> -> vector<64x8xf32>
    %76 = vector.extract_strided_slice %75 {offsets = [0, 0], sizes = [8, 8], strides = [1, 1]} : vector<64x8xf32> to vector<8x8xf32>
    %77 = vector.extract_strided_slice %75 {offsets = [8, 0], sizes = [8, 8], strides = [1, 1]} : vector<64x8xf32> to vector<8x8xf32>
    %78 = vector.extract_strided_slice %75 {offsets = [16, 0], sizes = [8, 8], strides = [1, 1]} : vector<64x8xf32> to vector<8x8xf32>
    %79 = vector.extract_strided_slice %75 {offsets = [24, 0], sizes = [8, 8], strides = [1, 1]} : vector<64x8xf32> to vector<8x8xf32>
    %80 = tpu.concatenate %76, %77, %78, %79 in 1 : vector<8x8xf32>, vector<8x8xf32>, vector<8x8xf32>, vector<8x8xf32> -> vector<8x32xf32>
    %81 = vector.extract_strided_slice %75 {offsets = [32, 0], sizes = [8, 8], strides = [1, 1]} : vector<64x8xf32> to vector<8x8xf32>
    %82 = vector.extract_strided_slice %75 {offsets = [40, 0], sizes = [8, 8], strides = [1, 1]} : vector<64x8xf32> to vector<8x8xf32>
    %83 = vector.extract_strided_slice %75 {offsets = [48, 0], sizes = [8, 8], strides = [1, 1]} : vector<64x8xf32> to vector<8x8xf32>
    %84 = vector.extract_strided_slice %75 {offsets = [56, 0], sizes = [8, 8], strides = [1, 1]} : vector<64x8xf32> to vector<8x8xf32>
    %85 = tpu.concatenate %81, %82, %83, %84 in 1 : vector<8x8xf32>, vector<8x8xf32>, vector<8x8xf32>, vector<8x8xf32> -> vector<8x32xf32>
    %86 = tpu.concatenate %80, %85 in 0 : vector<8x32xf32>, vector<8x32xf32> -> vector<16x32xf32>
    %c40 = arith.constant 40 : index
    %c0_15 = arith.constant 0 : index
    %87 = vector.load %arg2[%c40, %c0_15] : memref<1208x128xf32, #tpu.memory_space<vmem>>, vector<32x32xf32>
    %cst_16 = arith.constant dense<0.000000e+00> : vector<16x32xf32>
    %88 = tpu.matmul %86, %87, %cst_16 {dimension_numbers = #tpu.dot_dimension_numbers<[1], [0], [0], [1], [0, 0, 1, 1], [], []>} : vector<16x32xf32>, vector<32x32xf32>, vector<16x32xf32> -> vector<16x32xf32>
    %c72 = arith.constant 72 : index
    %c0_17 = arith.constant 0 : index
    %89 = vector.load %arg2[%c72, %c0_17] : memref<1208x128xf32, #tpu.memory_space<vmem>>, vector<1x32xf32>
    %90 = vector.broadcast %89 : vector<1x32xf32> to vector<16x32xf32>
    %91 = arith.addf %88, %90 : vector<16x32xf32>
    %92 = arith.addf %19, %91 : vector<16x32xf32>
    %c80 = arith.constant 80 : index
    %c0_18 = arith.constant 0 : index
    %93 = vector.load %arg2[%c80, %c0_18] : memref<1208x128xf32, #tpu.memory_space<vmem>>, vector<1x32xf32>
    %c88 = arith.constant 88 : index
    %c0_19 = arith.constant 0 : index
    %94 = vector.load %arg2[%c88, %c0_19] : memref<1208x128xf32, #tpu.memory_space<vmem>>, vector<1x32xf32>
    %cst_20 = arith.constant dense<0.000000e+00> : vector<16xf32>
    %95 = vector.multi_reduction <add>, %92, %cst_20 [1] : vector<16x32xf32> to vector<16xf32>
    %96 = vector.shape_cast %95 : vector<16xf32> to vector<16x1xf32>
    %cst_21 = arith.constant 3.200000e+01 : f32
    %97 = vector.broadcast %cst_21 : f32 to vector<16x1xf32>
    %98 = arith.divf %96, %97 : vector<16x1xf32>
    %99 = vector.broadcast %98 : vector<16x1xf32> to vector<16x32xf32>
    %100 = arith.subf %92, %99 : vector<16x32xf32>
    %101 = arith.mulf %100, %100 : vector<16x32xf32>
    %cst_22 = arith.constant dense<0.000000e+00> : vector<16xf32>
    %102 = vector.multi_reduction <add>, %101, %cst_22 [1] : vector<16x32xf32> to vector<16xf32>
    %103 = vector.shape_cast %102 : vector<16xf32> to vector<16x1xf32>
    %cst_23 = arith.constant 3.200000e+01 : f32
    %104 = vector.broadcast %cst_23 : f32 to vector<16x1xf32>
    %105 = arith.divf %103, %104 : vector<16x1xf32>
    %106 = vector.broadcast %98 : vector<16x1xf32> to vector<16x32xf32>
    %107 = arith.subf %92, %106 : vector<16x32xf32>
    %cst_24 = arith.constant 9.99999974E-6 : f32
    %108 = vector.broadcast %cst_24 : f32 to vector<16x1xf32>
    %109 = arith.addf %105, %108 : vector<16x1xf32>
    %110 = math.rsqrt %109 : vector<16x1xf32>
    %111 = vector.broadcast %110 : vector<16x1xf32> to vector<16x32xf32>
    %112 = arith.mulf %107, %111 : vector<16x32xf32>
    %113 = vector.broadcast %93 : vector<1x32xf32> to vector<16x32xf32>
    %114 = arith.mulf %112, %113 : vector<16x32xf32>
    %115 = vector.broadcast %94 : vector<1x32xf32> to vector<16x32xf32>
    %116 = arith.addf %114, %115 : vector<16x32xf32>
    %c96 = arith.constant 96 : index
    %c0_25 = arith.constant 0 : index
    %117 = vector.load %arg2[%c96, %c0_25] : memref<1208x128xf32, #tpu.memory_space<vmem>>, vector<32x64xf32>
    %cst_26 = arith.constant dense<0.000000e+00> : vector<16x64xf32>
    %118 = tpu.matmul %116, %117, %cst_26 {dimension_numbers = #tpu.dot_dimension_numbers<[1], [0], [0], [1], [0, 0, 1, 1], [], []>} : vector<16x32xf32>, vector<32x64xf32>, vector<16x64xf32> -> vector<16x64xf32>
    %c128 = arith.constant 128 : index
    %c0_27 = arith.constant 0 : index
    %119 = vector.load %arg2[%c128, %c0_27] : memref<1208x128xf32, #tpu.memory_space<vmem>>, vector<1x64xf32>
    %120 = vector.broadcast %119 : vector<1x64xf32> to vector<16x64xf32>
    %121 = arith.addf %118, %120 : vector<16x64xf32>
    %cst_28 = arith.constant 0.000000e+00 : f32
    %122 = vector.broadcast %cst_28 : f32 to vector<16x64xf32>
    %123 = arith.maximumf %121, %122 : vector<16x64xf32>
    %c136 = arith.constant 136 : index
    %c0_29 = arith.constant 0 : index
    %124 = vector.load %arg2[%c136, %c0_29] : memref<1208x128xf32, #tpu.memory_space<vmem>>, vector<64x32xf32>
    %cst_30 = arith.constant dense<0.000000e+00> : vector<16x32xf32>
    %125 = tpu.matmul %123, %124, %cst_30 {dimension_numbers = #tpu.dot_dimension_numbers<[1], [0], [0], [1], [0, 0, 1, 1], [], []>} : vector<16x64xf32>, vector<64x32xf32>, vector<16x32xf32> -> vector<16x32xf32>
    %c200 = arith.constant 200 : index
    %c0_31 = arith.constant 0 : index
    %126 = vector.load %arg2[%c200, %c0_31] : memref<1208x128xf32, #tpu.memory_space<vmem>>, vector<1x32xf32>
    %127 = vector.broadcast %126 : vector<1x32xf32> to vector<16x32xf32>
    %128 = arith.addf %125, %127 : vector<16x32xf32>
    %129 = arith.addf %116, %128 : vector<16x32xf32>
    %c208 = arith.constant 208 : index
    %c0_32 = arith.constant 0 : index
    %130 = vector.load %arg2[%c208, %c0_32] : memref<1208x128xf32, #tpu.memory_space<vmem>>, vector<1x32xf32>
    %c216 = arith.constant 216 : index
    %c0_33 = arith.constant 0 : index
    %131 = vector.load %arg2[%c216, %c0_33] : memref<1208x128xf32, #tpu.memory_space<vmem>>, vector<1x32xf32>
    %cst_34 = arith.constant dense<0.000000e+00> : vector<16xf32>
    %132 = vector.multi_reduction <add>, %129, %cst_34 [1] : vector<16x32xf32> to vector<16xf32>
    %133 = vector.shape_cast %132 : vector<16xf32> to vector<16x1xf32>
    %cst_35 = arith.constant 3.200000e+01 : f32
    %134 = vector.broadcast %cst_35 : f32 to vector<16x1xf32>
    %135 = arith.divf %133, %134 : vector<16x1xf32>
    %136 = vector.broadcast %135 : vector<16x1xf32> to vector<16x32xf32>
    %137 = arith.subf %129, %136 : vector<16x32xf32>
    %138 = arith.mulf %137, %137 : vector<16x32xf32>
    %cst_36 = arith.constant dense<0.000000e+00> : vector<16xf32>
    %139 = vector.multi_reduction <add>, %138, %cst_36 [1] : vector<16x32xf32> to vector<16xf32>
    %140 = vector.shape_cast %139 : vector<16xf32> to vector<16x1xf32>
    %cst_37 = arith.constant 3.200000e+01 : f32
    %141 = vector.broadcast %cst_37 : f32 to vector<16x1xf32>
    %142 = arith.divf %140, %141 : vector<16x1xf32>
    %143 = vector.broadcast %135 : vector<16x1xf32> to vector<16x32xf32>
    %144 = arith.subf %129, %143 : vector<16x32xf32>
    %cst_38 = arith.constant 9.99999974E-6 : f32
    %145 = vector.broadcast %cst_38 : f32 to vector<16x1xf32>
    %146 = arith.addf %142, %145 : vector<16x1xf32>
    %147 = math.rsqrt %146 : vector<16x1xf32>
    %148 = vector.broadcast %147 : vector<16x1xf32> to vector<16x32xf32>
    %149 = arith.mulf %144, %148 : vector<16x32xf32>
    %150 = vector.broadcast %130 : vector<1x32xf32> to vector<16x32xf32>
    %151 = arith.mulf %149, %150 : vector<16x32xf32>
    %152 = vector.broadcast %131 : vector<1x32xf32> to vector<16x32xf32>
    %153 = arith.addf %151, %152 : vector<16x32xf32>
    %c224 = arith.constant 224 : index
    %c0_39 = arith.constant 0 : index
    %154 = vector.load %arg2[%c224, %c0_39] : memref<1208x128xf32, #tpu.memory_space<vmem>>, vector<32x96xf32>
    %cst_40 = arith.constant dense<0.000000e+00> : vector<16x96xf32>
    %155 = tpu.matmul %153, %154, %cst_40 {dimension_numbers = #tpu.dot_dimension_numbers<[1], [0], [0], [1], [0, 0, 1, 1], [], []>} : vector<16x32xf32>, vector<32x96xf32>, vector<16x96xf32> -> vector<16x96xf32>
    %c256 = arith.constant 256 : index
    %c0_41 = arith.constant 0 : index
    %156 = vector.load %arg2[%c256, %c0_41] : memref<1208x128xf32, #tpu.memory_space<vmem>>, vector<1x96xf32>
    %157 = vector.broadcast %156 : vector<1x96xf32> to vector<16x96xf32>
    %158 = arith.addf %155, %157 : vector<16x96xf32>
    %159 = vector.extract_strided_slice %158 {offsets = [0, 0], sizes = [16, 32], strides = [1, 1]} : vector<16x96xf32> to vector<16x32xf32>
    %160 = vector.extract_strided_slice %158 {offsets = [0, 32], sizes = [16, 32], strides = [1, 1]} : vector<16x96xf32> to vector<16x32xf32>
    %161 = vector.extract_strided_slice %158 {offsets = [0, 64], sizes = [16, 32], strides = [1, 1]} : vector<16x96xf32> to vector<16x32xf32>
    %162 = vector.extract_strided_slice %159 {offsets = [0, 0], sizes = [8, 32], strides = [1, 1]} : vector<16x32xf32> to vector<8x32xf32>
    %163 = vector.extract_strided_slice %162 {offsets = [0, 0], sizes = [8, 8], strides = [1, 1]} : vector<8x32xf32> to vector<8x8xf32>
    %164 = vector.extract_strided_slice %162 {offsets = [0, 8], sizes = [8, 8], strides = [1, 1]} : vector<8x32xf32> to vector<8x8xf32>
    %165 = vector.extract_strided_slice %162 {offsets = [0, 16], sizes = [8, 8], strides = [1, 1]} : vector<8x32xf32> to vector<8x8xf32>
    %166 = vector.extract_strided_slice %162 {offsets = [0, 24], sizes = [8, 8], strides = [1, 1]} : vector<8x32xf32> to vector<8x8xf32>
    %167 = vector.extract_strided_slice %159 {offsets = [8, 0], sizes = [8, 32], strides = [1, 1]} : vector<16x32xf32> to vector<8x32xf32>
    %168 = vector.extract_strided_slice %167 {offsets = [0, 0], sizes = [8, 8], strides = [1, 1]} : vector<8x32xf32> to vector<8x8xf32>
    %169 = vector.extract_strided_slice %167 {offsets = [0, 8], sizes = [8, 8], strides = [1, 1]} : vector<8x32xf32> to vector<8x8xf32>
    %170 = vector.extract_strided_slice %167 {offsets = [0, 16], sizes = [8, 8], strides = [1, 1]} : vector<8x32xf32> to vector<8x8xf32>
    %171 = vector.extract_strided_slice %167 {offsets = [0, 24], sizes = [8, 8], strides = [1, 1]} : vector<8x32xf32> to vector<8x8xf32>
    %172 = tpu.concatenate %163, %164, %165, %166, %168, %169, %170, %171 in 0 : vector<8x8xf32>, vector<8x8xf32>, vector<8x8xf32>, vector<8x8xf32>, vector<8x8xf32>, vector<8x8xf32>, vector<8x8xf32>, vector<8x8xf32> -> vector<64x8xf32>
    %173 = vector.extract_strided_slice %160 {offsets = [0, 0], sizes = [8, 32], strides = [1, 1]} : vector<16x32xf32> to vector<8x32xf32>
    %174 = vector.extract_strided_slice %173 {offsets = [0, 0], sizes = [8, 8], strides = [1, 1]} : vector<8x32xf32> to vector<8x8xf32>
    %175 = vector.extract_strided_slice %173 {offsets = [0, 8], sizes = [8, 8], strides = [1, 1]} : vector<8x32xf32> to vector<8x8xf32>
    %176 = vector.extract_strided_slice %173 {offsets = [0, 16], sizes = [8, 8], strides = [1, 1]} : vector<8x32xf32> to vector<8x8xf32>
    %177 = vector.extract_strided_slice %173 {offsets = [0, 24], sizes = [8, 8], strides = [1, 1]} : vector<8x32xf32> to vector<8x8xf32>
    %178 = vector.extract_strided_slice %160 {offsets = [8, 0], sizes = [8, 32], strides = [1, 1]} : vector<16x32xf32> to vector<8x32xf32>
    %179 = vector.extract_strided_slice %178 {offsets = [0, 0], sizes = [8, 8], strides = [1, 1]} : vector<8x32xf32> to vector<8x8xf32>
    %180 = vector.extract_strided_slice %178 {offsets = [0, 8], sizes = [8, 8], strides = [1, 1]} : vector<8x32xf32> to vector<8x8xf32>
    %181 = vector.extract_strided_slice %178 {offsets = [0, 16], sizes = [8, 8], strides = [1, 1]} : vector<8x32xf32> to vector<8x8xf32>
    %182 = vector.extract_strided_slice %178 {offsets = [0, 24], sizes = [8, 8], strides = [1, 1]} : vector<8x32xf32> to vector<8x8xf32>
    %183 = tpu.concatenate %174, %175, %176, %177, %179, %180, %181, %182 in 0 : vector<8x8xf32>, vector<8x8xf32>, vector<8x8xf32>, vector<8x8xf32>, vector<8x8xf32>, vector<8x8xf32>, vector<8x8xf32>, vector<8x8xf32> -> vector<64x8xf32>
    %184 = vector.extract_strided_slice %161 {offsets = [0, 0], sizes = [8, 32], strides = [1, 1]} : vector<16x32xf32> to vector<8x32xf32>
    %185 = vector.extract_strided_slice %184 {offsets = [0, 0], sizes = [8, 8], strides = [1, 1]} : vector<8x32xf32> to vector<8x8xf32>
    %186 = vector.extract_strided_slice %184 {offsets = [0, 8], sizes = [8, 8], strides = [1, 1]} : vector<8x32xf32> to vector<8x8xf32>
    %187 = vector.extract_strided_slice %184 {offsets = [0, 16], sizes = [8, 8], strides = [1, 1]} : vector<8x32xf32> to vector<8x8xf32>
    %188 = vector.extract_strided_slice %184 {offsets = [0, 24], sizes = [8, 8], strides = [1, 1]} : vector<8x32xf32> to vector<8x8xf32>
    %189 = vector.extract_strided_slice %161 {offsets = [8, 0], sizes = [8, 32], strides = [1, 1]} : vector<16x32xf32> to vector<8x32xf32>
    %190 = vector.extract_strided_slice %189 {offsets = [0, 0], sizes = [8, 8], strides = [1, 1]} : vector<8x32xf32> to vector<8x8xf32>
    %191 = vector.extract_strided_slice %189 {offsets = [0, 8], sizes = [8, 8], strides = [1, 1]} : vector<8x32xf32> to vector<8x8xf32>
    %192 = vector.extract_strided_slice %189 {offsets = [0, 16], sizes = [8, 8], strides = [1, 1]} : vector<8x32xf32> to vector<8x8xf32>
    %193 = vector.extract_strided_slice %189 {offsets = [0, 24], sizes = [8, 8], strides = [1, 1]} : vector<8x32xf32> to vector<8x8xf32>
    %194 = tpu.concatenate %185, %186, %187, %188, %190, %191, %192, %193 in 0 : vector<8x8xf32>, vector<8x8xf32>, vector<8x8xf32>, vector<8x8xf32>, vector<8x8xf32>, vector<8x8xf32>, vector<8x8xf32>, vector<8x8xf32> -> vector<64x8xf32>
    %cst_42 = arith.constant dense<0.000000e+00> : vector<64x64xf32>
    %195 = tpu.matmul %172, %183, %cst_42 {dimension_numbers = #tpu.dot_dimension_numbers<[1], [1], [0], [0], [0, 0, 1, 0], [], []>} : vector<64x8xf32>, vector<64x8xf32>, vector<64x64xf32> -> vector<64x64xf32>
    %cst_43 = arith.constant 0.353553385 : f32
    %196 = vector.broadcast %cst_43 : f32 to vector<64x64xf32>
    %197 = arith.mulf %195, %196 : vector<64x64xf32>
    %198 = arith.addf %197, %14 : vector<64x64xf32>
    %cst_44 = arith.constant dense<0xFF800000> : vector<64xf32>
    %199 = vector.multi_reduction <maximumf>, %198, %cst_44 [1] : vector<64x64xf32> to vector<64xf32>
    %200 = vector.shape_cast %199 : vector<64xf32> to vector<64x1xf32>
    %201 = vector.broadcast %200 : vector<64x1xf32> to vector<64x64xf32>
    %202 = arith.subf %198, %201 : vector<64x64xf32>
    %203 = math.exp %202 : vector<64x64xf32>
    %cst_45 = arith.constant dense<0.000000e+00> : vector<64xf32>
    %204 = vector.multi_reduction <add>, %203, %cst_45 [1] : vector<64x64xf32> to vector<64xf32>
    %205 = vector.shape_cast %204 : vector<64xf32> to vector<64x1xf32>
    %206 = tpu.reciprocal %205 {approx = true} : vector<64x1xf32> -> vector<64x1xf32>
    %207 = vector.broadcast %206 : vector<64x1xf32> to vector<64x64xf32>
    %208 = arith.mulf %203, %207 : vector<64x64xf32>
    %cst_46 = arith.constant dense<0.000000e+00> : vector<64x8xf32>
    %209 = tpu.matmul %208, %194, %cst_46 {dimension_numbers = #tpu.dot_dimension_numbers<[1], [0], [0], [1], [0, 0, 1, 1], [], []>} : vector<64x64xf32>, vector<64x8xf32>, vector<64x8xf32> -> vector<64x8xf32>
    %210 = vector.extract_strided_slice %209 {offsets = [0, 0], sizes = [8, 8], strides = [1, 1]} : vector<64x8xf32> to vector<8x8xf32>
    %211 = vector.extract_strided_slice %209 {offsets = [8, 0], sizes = [8, 8], strides = [1, 1]} : vector<64x8xf32> to vector<8x8xf32>
    %212 = vector.extract_strided_slice %209 {offsets = [16, 0], sizes = [8, 8], strides = [1, 1]} : vector<64x8xf32> to vector<8x8xf32>
    %213 = vector.extract_strided_slice %209 {offsets = [24, 0], sizes = [8, 8], strides = [1, 1]} : vector<64x8xf32> to vector<8x8xf32>
    %214 = tpu.concatenate %210, %211, %212, %213 in 1 : vector<8x8xf32>, vector<8x8xf32>, vector<8x8xf32>, vector<8x8xf32> -> vector<8x32xf32>
    %215 = vector.extract_strided_slice %209 {offsets = [32, 0], sizes = [8, 8], strides = [1, 1]} : vector<64x8xf32> to vector<8x8xf32>
    %216 = vector.extract_strided_slice %209 {offsets = [40, 0], sizes = [8, 8], strides = [1, 1]} : vector<64x8xf32> to vector<8x8xf32>
    %217 = vector.extract_strided_slice %209 {offsets = [48, 0], sizes = [8, 8], strides = [1, 1]} : vector<64x8xf32> to vector<8x8xf32>
    %218 = vector.extract_strided_slice %209 {offsets = [56, 0], sizes = [8, 8], strides = [1, 1]} : vector<64x8xf32> to vector<8x8xf32>
    %219 = tpu.concatenate %215, %216, %217, %218 in 1 : vector<8x8xf32>, vector<8x8xf32>, vector<8x8xf32>, vector<8x8xf32> -> vector<8x32xf32>
    %220 = tpu.concatenate %214, %219 in 0 : vector<8x32xf32>, vector<8x32xf32> -> vector<16x32xf32>
    %c264 = arith.constant 264 : index
    %c0_47 = arith.constant 0 : index
    %221 = vector.load %arg2[%c264, %c0_47] : memref<1208x128xf32, #tpu.memory_space<vmem>>, vector<32x32xf32>
    %cst_48 = arith.constant dense<0.000000e+00> : vector<16x32xf32>
    %222 = tpu.matmul %220, %221, %cst_48 {dimension_numbers = #tpu.dot_dimension_numbers<[1], [0], [0], [1], [0, 0, 1, 1], [], []>} : vector<16x32xf32>, vector<32x32xf32>, vector<16x32xf32> -> vector<16x32xf32>
    %c296 = arith.constant 296 : index
    %c0_49 = arith.constant 0 : index
    %223 = vector.load %arg2[%c296, %c0_49] : memref<1208x128xf32, #tpu.memory_space<vmem>>, vector<1x32xf32>
    %224 = vector.broadcast %223 : vector<1x32xf32> to vector<16x32xf32>
    %225 = arith.addf %222, %224 : vector<16x32xf32>
    %226 = arith.addf %153, %225 : vector<16x32xf32>
    %c304 = arith.constant 304 : index
    %c0_50 = arith.constant 0 : index
    %227 = vector.load %arg2[%c304, %c0_50] : memref<1208x128xf32, #tpu.memory_space<vmem>>, vector<1x32xf32>
    %c312 = arith.constant 312 : index
    %c0_51 = arith.constant 0 : index
    %228 = vector.load %arg2[%c312, %c0_51] : memref<1208x128xf32, #tpu.memory_space<vmem>>, vector<1x32xf32>
    %cst_52 = arith.constant dense<0.000000e+00> : vector<16xf32>
    %229 = vector.multi_reduction <add>, %226, %cst_52 [1] : vector<16x32xf32> to vector<16xf32>
    %230 = vector.shape_cast %229 : vector<16xf32> to vector<16x1xf32>
    %cst_53 = arith.constant 3.200000e+01 : f32
    %231 = vector.broadcast %cst_53 : f32 to vector<16x1xf32>
    %232 = arith.divf %230, %231 : vector<16x1xf32>
    %233 = vector.broadcast %232 : vector<16x1xf32> to vector<16x32xf32>
    %234 = arith.subf %226, %233 : vector<16x32xf32>
    %235 = arith.mulf %234, %234 : vector<16x32xf32>
    %cst_54 = arith.constant dense<0.000000e+00> : vector<16xf32>
    %236 = vector.multi_reduction <add>, %235, %cst_54 [1] : vector<16x32xf32> to vector<16xf32>
    %237 = vector.shape_cast %236 : vector<16xf32> to vector<16x1xf32>
    %cst_55 = arith.constant 3.200000e+01 : f32
    %238 = vector.broadcast %cst_55 : f32 to vector<16x1xf32>
    %239 = arith.divf %237, %238 : vector<16x1xf32>
    %240 = vector.broadcast %232 : vector<16x1xf32> to vector<16x32xf32>
    %241 = arith.subf %226, %240 : vector<16x32xf32>
    %cst_56 = arith.constant 9.99999974E-6 : f32
    %242 = vector.broadcast %cst_56 : f32 to vector<16x1xf32>
    %243 = arith.addf %239, %242 : vector<16x1xf32>
    %244 = math.rsqrt %243 : vector<16x1xf32>
    %245 = vector.broadcast %244 : vector<16x1xf32> to vector<16x32xf32>
    %246 = arith.mulf %241, %245 : vector<16x32xf32>
    %247 = vector.broadcast %227 : vector<1x32xf32> to vector<16x32xf32>
    %248 = arith.mulf %246, %247 : vector<16x32xf32>
    %249 = vector.broadcast %228 : vector<1x32xf32> to vector<16x32xf32>
    %250 = arith.addf %248, %249 : vector<16x32xf32>
    %c320 = arith.constant 320 : index
    %c0_57 = arith.constant 0 : index
    %251 = vector.load %arg2[%c320, %c0_57] : memref<1208x128xf32, #tpu.memory_space<vmem>>, vector<32x64xf32>
    %cst_58 = arith.constant dense<0.000000e+00> : vector<16x64xf32>
    %252 = tpu.matmul %250, %251, %cst_58 {dimension_numbers = #tpu.dot_dimension_numbers<[1], [0], [0], [1], [0, 0, 1, 1], [], []>} : vector<16x32xf32>, vector<32x64xf32>, vector<16x64xf32> -> vector<16x64xf32>
    %c352 = arith.constant 352 : index
    %c0_59 = arith.constant 0 : index
    %253 = vector.load %arg2[%c352, %c0_59] : memref<1208x128xf32, #tpu.memory_space<vmem>>, vector<1x64xf32>
    %254 = vector.broadcast %253 : vector<1x64xf32> to vector<16x64xf32>
    %255 = arith.addf %252, %254 : vector<16x64xf32>
    %cst_60 = arith.constant 0.000000e+00 : f32
    %256 = vector.broadcast %cst_60 : f32 to vector<16x64xf32>
    %257 = arith.maximumf %255, %256 : vector<16x64xf32>
    %c360 = arith.constant 360 : index
    %c0_61 = arith.constant 0 : index
    %258 = vector.load %arg2[%c360, %c0_61] : memref<1208x128xf32, #tpu.memory_space<vmem>>, vector<64x32xf32>
    %cst_62 = arith.constant dense<0.000000e+00> : vector<16x32xf32>
    %259 = tpu.matmul %257, %258, %cst_62 {dimension_numbers = #tpu.dot_dimension_numbers<[1], [0], [0], [1], [0, 0, 1, 1], [], []>} : vector<16x64xf32>, vector<64x32xf32>, vector<16x32xf32> -> vector<16x32xf32>
    %c424 = arith.constant 424 : index
    %c0_63 = arith.constant 0 : index
    %260 = vector.load %arg2[%c424, %c0_63] : memref<1208x128xf32, #tpu.memory_space<vmem>>, vector<1x32xf32>
    %261 = vector.broadcast %260 : vector<1x32xf32> to vector<16x32xf32>
    %262 = arith.addf %259, %261 : vector<16x32xf32>
    %263 = arith.addf %250, %262 : vector<16x32xf32>
    %c432 = arith.constant 432 : index
    %c0_64 = arith.constant 0 : index
    %264 = vector.load %arg2[%c432, %c0_64] : memref<1208x128xf32, #tpu.memory_space<vmem>>, vector<1x32xf32>
    %c440 = arith.constant 440 : index
    %c0_65 = arith.constant 0 : index
    %265 = vector.load %arg2[%c440, %c0_65] : memref<1208x128xf32, #tpu.memory_space<vmem>>, vector<1x32xf32>
    %cst_66 = arith.constant dense<0.000000e+00> : vector<16xf32>
    %266 = vector.multi_reduction <add>, %263, %cst_66 [1] : vector<16x32xf32> to vector<16xf32>
    %267 = vector.shape_cast %266 : vector<16xf32> to vector<16x1xf32>
    %cst_67 = arith.constant 3.200000e+01 : f32
    %268 = vector.broadcast %cst_67 : f32 to vector<16x1xf32>
    %269 = arith.divf %267, %268 : vector<16x1xf32>
    %270 = vector.broadcast %269 : vector<16x1xf32> to vector<16x32xf32>
    %271 = arith.subf %263, %270 : vector<16x32xf32>
    %272 = arith.mulf %271, %271 : vector<16x32xf32>
    %cst_68 = arith.constant dense<0.000000e+00> : vector<16xf32>
    %273 = vector.multi_reduction <add>, %272, %cst_68 [1] : vector<16x32xf32> to vector<16xf32>
    %274 = vector.shape_cast %273 : vector<16xf32> to vector<16x1xf32>
    %cst_69 = arith.constant 3.200000e+01 : f32
    %275 = vector.broadcast %cst_69 : f32 to vector<16x1xf32>
    %276 = arith.divf %274, %275 : vector<16x1xf32>
    %277 = vector.broadcast %269 : vector<16x1xf32> to vector<16x32xf32>
    %278 = arith.subf %263, %277 : vector<16x32xf32>
    %cst_70 = arith.constant 9.99999974E-6 : f32
    %279 = vector.broadcast %cst_70 : f32 to vector<16x1xf32>
    %280 = arith.addf %276, %279 : vector<16x1xf32>
    %281 = math.rsqrt %280 : vector<16x1xf32>
    %282 = vector.broadcast %281 : vector<16x1xf32> to vector<16x32xf32>
    %283 = arith.mulf %278, %282 : vector<16x32xf32>
    %284 = vector.broadcast %264 : vector<1x32xf32> to vector<16x32xf32>
    %285 = arith.mulf %283, %284 : vector<16x32xf32>
    %286 = vector.broadcast %265 : vector<1x32xf32> to vector<16x32xf32>
    %287 = arith.addf %285, %286 : vector<16x32xf32>
    %c0_71 = arith.constant 0 : index
    %c0_72 = arith.constant 0 : index
    %288 = vector.load %arg1[%c0_71, %c0_72] : memref<16x32xf32, #tpu.memory_space<vmem>>, vector<16x32xf32>
    %c448 = arith.constant 448 : index
    %c0_73 = arith.constant 0 : index
    %289 = vector.load %arg2[%c448, %c0_73] : memref<1208x128xf32, #tpu.memory_space<vmem>>, vector<32x96xf32>
    %cst_74 = arith.constant dense<0.000000e+00> : vector<16x96xf32>
    %290 = tpu.matmul %288, %289, %cst_74 {dimension_numbers = #tpu.dot_dimension_numbers<[1], [0], [0], [1], [0, 0, 1, 1], [], []>} : vector<16x32xf32>, vector<32x96xf32>, vector<16x96xf32> -> vector<16x96xf32>
    %c480 = arith.constant 480 : index
    %c0_75 = arith.constant 0 : index
    %291 = vector.load %arg2[%c480, %c0_75] : memref<1208x128xf32, #tpu.memory_space<vmem>>, vector<1x96xf32>
    %292 = vector.broadcast %291 : vector<1x96xf32> to vector<16x96xf32>
    %293 = arith.addf %290, %292 : vector<16x96xf32>
    %294 = vector.extract_strided_slice %293 {offsets = [0, 0], sizes = [16, 32], strides = [1, 1]} : vector<16x96xf32> to vector<16x32xf32>
    %295 = vector.extract_strided_slice %293 {offsets = [0, 32], sizes = [16, 32], strides = [1, 1]} : vector<16x96xf32> to vector<16x32xf32>
    %296 = vector.extract_strided_slice %293 {offsets = [0, 64], sizes = [16, 32], strides = [1, 1]} : vector<16x96xf32> to vector<16x32xf32>
    %297 = vector.extract_strided_slice %294 {offsets = [0, 0], sizes = [8, 32], strides = [1, 1]} : vector<16x32xf32> to vector<8x32xf32>
    %298 = vector.extract_strided_slice %297 {offsets = [0, 0], sizes = [8, 8], strides = [1, 1]} : vector<8x32xf32> to vector<8x8xf32>
    %299 = vector.extract_strided_slice %297 {offsets = [0, 8], sizes = [8, 8], strides = [1, 1]} : vector<8x32xf32> to vector<8x8xf32>
    %300 = vector.extract_strided_slice %297 {offsets = [0, 16], sizes = [8, 8], strides = [1, 1]} : vector<8x32xf32> to vector<8x8xf32>
    %301 = vector.extract_strided_slice %297 {offsets = [0, 24], sizes = [8, 8], strides = [1, 1]} : vector<8x32xf32> to vector<8x8xf32>
    %302 = vector.extract_strided_slice %294 {offsets = [8, 0], sizes = [8, 32], strides = [1, 1]} : vector<16x32xf32> to vector<8x32xf32>
    %303 = vector.extract_strided_slice %302 {offsets = [0, 0], sizes = [8, 8], strides = [1, 1]} : vector<8x32xf32> to vector<8x8xf32>
    %304 = vector.extract_strided_slice %302 {offsets = [0, 8], sizes = [8, 8], strides = [1, 1]} : vector<8x32xf32> to vector<8x8xf32>
    %305 = vector.extract_strided_slice %302 {offsets = [0, 16], sizes = [8, 8], strides = [1, 1]} : vector<8x32xf32> to vector<8x8xf32>
    %306 = vector.extract_strided_slice %302 {offsets = [0, 24], sizes = [8, 8], strides = [1, 1]} : vector<8x32xf32> to vector<8x8xf32>
    %307 = tpu.concatenate %298, %299, %300, %301, %303, %304, %305, %306 in 0 : vector<8x8xf32>, vector<8x8xf32>, vector<8x8xf32>, vector<8x8xf32>, vector<8x8xf32>, vector<8x8xf32>, vector<8x8xf32>, vector<8x8xf32> -> vector<64x8xf32>
    %308 = vector.extract_strided_slice %295 {offsets = [0, 0], sizes = [8, 32], strides = [1, 1]} : vector<16x32xf32> to vector<8x32xf32>
    %309 = vector.extract_strided_slice %308 {offsets = [0, 0], sizes = [8, 8], strides = [1, 1]} : vector<8x32xf32> to vector<8x8xf32>
    %310 = vector.extract_strided_slice %308 {offsets = [0, 8], sizes = [8, 8], strides = [1, 1]} : vector<8x32xf32> to vector<8x8xf32>
    %311 = vector.extract_strided_slice %308 {offsets = [0, 16], sizes = [8, 8], strides = [1, 1]} : vector<8x32xf32> to vector<8x8xf32>
    %312 = vector.extract_strided_slice %308 {offsets = [0, 24], sizes = [8, 8], strides = [1, 1]} : vector<8x32xf32> to vector<8x8xf32>
    %313 = vector.extract_strided_slice %295 {offsets = [8, 0], sizes = [8, 32], strides = [1, 1]} : vector<16x32xf32> to vector<8x32xf32>
    %314 = vector.extract_strided_slice %313 {offsets = [0, 0], sizes = [8, 8], strides = [1, 1]} : vector<8x32xf32> to vector<8x8xf32>
    %315 = vector.extract_strided_slice %313 {offsets = [0, 8], sizes = [8, 8], strides = [1, 1]} : vector<8x32xf32> to vector<8x8xf32>
    %316 = vector.extract_strided_slice %313 {offsets = [0, 16], sizes = [8, 8], strides = [1, 1]} : vector<8x32xf32> to vector<8x8xf32>
    %317 = vector.extract_strided_slice %313 {offsets = [0, 24], sizes = [8, 8], strides = [1, 1]} : vector<8x32xf32> to vector<8x8xf32>
    %318 = tpu.concatenate %309, %310, %311, %312, %314, %315, %316, %317 in 0 : vector<8x8xf32>, vector<8x8xf32>, vector<8x8xf32>, vector<8x8xf32>, vector<8x8xf32>, vector<8x8xf32>, vector<8x8xf32>, vector<8x8xf32> -> vector<64x8xf32>
    %319 = vector.extract_strided_slice %296 {offsets = [0, 0], sizes = [8, 32], strides = [1, 1]} : vector<16x32xf32> to vector<8x32xf32>
    %320 = vector.extract_strided_slice %319 {offsets = [0, 0], sizes = [8, 8], strides = [1, 1]} : vector<8x32xf32> to vector<8x8xf32>
    %321 = vector.extract_strided_slice %319 {offsets = [0, 8], sizes = [8, 8], strides = [1, 1]} : vector<8x32xf32> to vector<8x8xf32>
    %322 = vector.extract_strided_slice %319 {offsets = [0, 16], sizes = [8, 8], strides = [1, 1]} : vector<8x32xf32> to vector<8x8xf32>
    %323 = vector.extract_strided_slice %319 {offsets = [0, 24], sizes = [8, 8], strides = [1, 1]} : vector<8x32xf32> to vector<8x8xf32>
    %324 = vector.extract_strided_slice %296 {offsets = [8, 0], sizes = [8, 32], strides = [1, 1]} : vector<16x32xf32> to vector<8x32xf32>
    %325 = vector.extract_strided_slice %324 {offsets = [0, 0], sizes = [8, 8], strides = [1, 1]} : vector<8x32xf32> to vector<8x8xf32>
    %326 = vector.extract_strided_slice %324 {offsets = [0, 8], sizes = [8, 8], strides = [1, 1]} : vector<8x32xf32> to vector<8x8xf32>
    %327 = vector.extract_strided_slice %324 {offsets = [0, 16], sizes = [8, 8], strides = [1, 1]} : vector<8x32xf32> to vector<8x8xf32>
    %328 = vector.extract_strided_slice %324 {offsets = [0, 24], sizes = [8, 8], strides = [1, 1]} : vector<8x32xf32> to vector<8x8xf32>
    %329 = tpu.concatenate %320, %321, %322, %323, %325, %326, %327, %328 in 0 : vector<8x8xf32>, vector<8x8xf32>, vector<8x8xf32>, vector<8x8xf32>, vector<8x8xf32>, vector<8x8xf32>, vector<8x8xf32>, vector<8x8xf32> -> vector<64x8xf32>
    %cst_76 = arith.constant dense<0.000000e+00> : vector<64x64xf32>
    %330 = tpu.matmul %307, %318, %cst_76 {dimension_numbers = #tpu.dot_dimension_numbers<[1], [1], [0], [0], [0, 0, 1, 0], [], []>} : vector<64x8xf32>, vector<64x8xf32>, vector<64x64xf32> -> vector<64x64xf32>
    %cst_77 = arith.constant 0.353553385 : f32
    %331 = vector.broadcast %cst_77 : f32 to vector<64x64xf32>
    %332 = arith.mulf %330, %331 : vector<64x64xf32>
    %333 = arith.addf %332, %18 : vector<64x64xf32>
    %cst_78 = arith.constant dense<0xFF800000> : vector<64xf32>
    %334 = vector.multi_reduction <maximumf>, %333, %cst_78 [1] : vector<64x64xf32> to vector<64xf32>
    %335 = vector.shape_cast %334 : vector<64xf32> to vector<64x1xf32>
    %336 = vector.broadcast %335 : vector<64x1xf32> to vector<64x64xf32>
    %337 = arith.subf %333, %336 : vector<64x64xf32>
    %338 = math.exp %337 : vector<64x64xf32>
    %cst_79 = arith.constant dense<0.000000e+00> : vector<64xf32>
    %339 = vector.multi_reduction <add>, %338, %cst_79 [1] : vector<64x64xf32> to vector<64xf32>
    %340 = vector.shape_cast %339 : vector<64xf32> to vector<64x1xf32>
    %341 = tpu.reciprocal %340 {approx = true} : vector<64x1xf32> -> vector<64x1xf32>
    %342 = vector.broadcast %341 : vector<64x1xf32> to vector<64x64xf32>
    %343 = arith.mulf %338, %342 : vector<64x64xf32>
    %cst_80 = arith.constant dense<0.000000e+00> : vector<64x8xf32>
    %344 = tpu.matmul %343, %329, %cst_80 {dimension_numbers = #tpu.dot_dimension_numbers<[1], [0], [0], [1], [0, 0, 1, 1], [], []>} : vector<64x64xf32>, vector<64x8xf32>, vector<64x8xf32> -> vector<64x8xf32>
    %345 = vector.extract_strided_slice %344 {offsets = [0, 0], sizes = [8, 8], strides = [1, 1]} : vector<64x8xf32> to vector<8x8xf32>
    %346 = vector.extract_strided_slice %344 {offsets = [8, 0], sizes = [8, 8], strides = [1, 1]} : vector<64x8xf32> to vector<8x8xf32>
    %347 = vector.extract_strided_slice %344 {offsets = [16, 0], sizes = [8, 8], strides = [1, 1]} : vector<64x8xf32> to vector<8x8xf32>
    %348 = vector.extract_strided_slice %344 {offsets = [24, 0], sizes = [8, 8], strides = [1, 1]} : vector<64x8xf32> to vector<8x8xf32>
    %349 = tpu.concatenate %345, %346, %347, %348 in 1 : vector<8x8xf32>, vector<8x8xf32>, vector<8x8xf32>, vector<8x8xf32> -> vector<8x32xf32>
    %350 = vector.extract_strided_slice %344 {offsets = [32, 0], sizes = [8, 8], strides = [1, 1]} : vector<64x8xf32> to vector<8x8xf32>
    %351 = vector.extract_strided_slice %344 {offsets = [40, 0], sizes = [8, 8], strides = [1, 1]} : vector<64x8xf32> to vector<8x8xf32>
    %352 = vector.extract_strided_slice %344 {offsets = [48, 0], sizes = [8, 8], strides = [1, 1]} : vector<64x8xf32> to vector<8x8xf32>
    %353 = vector.extract_strided_slice %344 {offsets = [56, 0], sizes = [8, 8], strides = [1, 1]} : vector<64x8xf32> to vector<8x8xf32>
    %354 = tpu.concatenate %350, %351, %352, %353 in 1 : vector<8x8xf32>, vector<8x8xf32>, vector<8x8xf32>, vector<8x8xf32> -> vector<8x32xf32>
    %355 = tpu.concatenate %349, %354 in 0 : vector<8x32xf32>, vector<8x32xf32> -> vector<16x32xf32>
    %c488 = arith.constant 488 : index
    %c0_81 = arith.constant 0 : index
    %356 = vector.load %arg2[%c488, %c0_81] : memref<1208x128xf32, #tpu.memory_space<vmem>>, vector<32x32xf32>
    %cst_82 = arith.constant dense<0.000000e+00> : vector<16x32xf32>
    %357 = tpu.matmul %355, %356, %cst_82 {dimension_numbers = #tpu.dot_dimension_numbers<[1], [0], [0], [1], [0, 0, 1, 1], [], []>} : vector<16x32xf32>, vector<32x32xf32>, vector<16x32xf32> -> vector<16x32xf32>
    %c520 = arith.constant 520 : index
    %c0_83 = arith.constant 0 : index
    %358 = vector.load %arg2[%c520, %c0_83] : memref<1208x128xf32, #tpu.memory_space<vmem>>, vector<1x32xf32>
    %359 = vector.broadcast %358 : vector<1x32xf32> to vector<16x32xf32>
    %360 = arith.addf %357, %359 : vector<16x32xf32>
    %361 = arith.addf %288, %360 : vector<16x32xf32>
    %c528 = arith.constant 528 : index
    %c0_84 = arith.constant 0 : index
    %362 = vector.load %arg2[%c528, %c0_84] : memref<1208x128xf32, #tpu.memory_space<vmem>>, vector<1x32xf32>
    %c536 = arith.constant 536 : index
    %c0_85 = arith.constant 0 : index
    %363 = vector.load %arg2[%c536, %c0_85] : memref<1208x128xf32, #tpu.memory_space<vmem>>, vector<1x32xf32>
    %cst_86 = arith.constant dense<0.000000e+00> : vector<16xf32>
    %364 = vector.multi_reduction <add>, %361, %cst_86 [1] : vector<16x32xf32> to vector<16xf32>
    %365 = vector.shape_cast %364 : vector<16xf32> to vector<16x1xf32>
    %cst_87 = arith.constant 3.200000e+01 : f32
    %366 = vector.broadcast %cst_87 : f32 to vector<16x1xf32>
    %367 = arith.divf %365, %366 : vector<16x1xf32>
    %368 = vector.broadcast %367 : vector<16x1xf32> to vector<16x32xf32>
    %369 = arith.subf %361, %368 : vector<16x32xf32>
    %370 = arith.mulf %369, %369 : vector<16x32xf32>
    %cst_88 = arith.constant dense<0.000000e+00> : vector<16xf32>
    %371 = vector.multi_reduction <add>, %370, %cst_88 [1] : vector<16x32xf32> to vector<16xf32>
    %372 = vector.shape_cast %371 : vector<16xf32> to vector<16x1xf32>
    %cst_89 = arith.constant 3.200000e+01 : f32
    %373 = vector.broadcast %cst_89 : f32 to vector<16x1xf32>
    %374 = arith.divf %372, %373 : vector<16x1xf32>
    %375 = vector.broadcast %367 : vector<16x1xf32> to vector<16x32xf32>
    %376 = arith.subf %361, %375 : vector<16x32xf32>
    %cst_90 = arith.constant 9.99999974E-6 : f32
    %377 = vector.broadcast %cst_90 : f32 to vector<16x1xf32>
    %378 = arith.addf %374, %377 : vector<16x1xf32>
    %379 = math.rsqrt %378 : vector<16x1xf32>
    %380 = vector.broadcast %379 : vector<16x1xf32> to vector<16x32xf32>
    %381 = arith.mulf %376, %380 : vector<16x32xf32>
    %382 = vector.broadcast %362 : vector<1x32xf32> to vector<16x32xf32>
    %383 = arith.mulf %381, %382 : vector<16x32xf32>
    %384 = vector.broadcast %363 : vector<1x32xf32> to vector<16x32xf32>
    %385 = arith.addf %383, %384 : vector<16x32xf32>
    %c544 = arith.constant 544 : index
    %c0_91 = arith.constant 0 : index
    %386 = vector.load %arg2[%c544, %c0_91] : memref<1208x128xf32, #tpu.memory_space<vmem>>, vector<32x32xf32>
    %cst_92 = arith.constant dense<0.000000e+00> : vector<16x32xf32>
    %387 = tpu.matmul %385, %386, %cst_92 {dimension_numbers = #tpu.dot_dimension_numbers<[1], [0], [0], [1], [0, 0, 1, 1], [], []>} : vector<16x32xf32>, vector<32x32xf32>, vector<16x32xf32> -> vector<16x32xf32>
    %c576 = arith.constant 576 : index
    %c0_93 = arith.constant 0 : index
    %388 = vector.load %arg2[%c576, %c0_93] : memref<1208x128xf32, #tpu.memory_space<vmem>>, vector<1x32xf32>
    %389 = vector.broadcast %388 : vector<1x32xf32> to vector<16x32xf32>
    %390 = arith.addf %387, %389 : vector<16x32xf32>
    %c584 = arith.constant 584 : index
    %c0_94 = arith.constant 0 : index
    %391 = vector.load %arg2[%c584, %c0_94] : memref<1208x128xf32, #tpu.memory_space<vmem>>, vector<32x64xf32>
    %cst_95 = arith.constant dense<0.000000e+00> : vector<16x64xf32>
    %392 = tpu.matmul %287, %391, %cst_95 {dimension_numbers = #tpu.dot_dimension_numbers<[1], [0], [0], [1], [0, 0, 1, 1], [], []>} : vector<16x32xf32>, vector<32x64xf32>, vector<16x64xf32> -> vector<16x64xf32>
    %c616 = arith.constant 616 : index
    %c0_96 = arith.constant 0 : index
    %393 = vector.load %arg2[%c616, %c0_96] : memref<1208x128xf32, #tpu.memory_space<vmem>>, vector<1x64xf32>
    %394 = vector.broadcast %393 : vector<1x64xf32> to vector<16x64xf32>
    %395 = arith.addf %392, %394 : vector<16x64xf32>
    %396 = vector.extract_strided_slice %395 {offsets = [0, 0], sizes = [16, 32], strides = [1, 1]} : vector<16x64xf32> to vector<16x32xf32>
    %397 = vector.extract_strided_slice %395 {offsets = [0, 32], sizes = [16, 32], strides = [1, 1]} : vector<16x64xf32> to vector<16x32xf32>
    %398 = vector.extract_strided_slice %390 {offsets = [0, 0], sizes = [8, 32], strides = [1, 1]} : vector<16x32xf32> to vector<8x32xf32>
    %399 = vector.extract_strided_slice %398 {offsets = [0, 0], sizes = [8, 8], strides = [1, 1]} : vector<8x32xf32> to vector<8x8xf32>
    %400 = vector.extract_strided_slice %398 {offsets = [0, 8], sizes = [8, 8], strides = [1, 1]} : vector<8x32xf32> to vector<8x8xf32>
    %401 = vector.extract_strided_slice %398 {offsets = [0, 16], sizes = [8, 8], strides = [1, 1]} : vector<8x32xf32> to vector<8x8xf32>
    %402 = vector.extract_strided_slice %398 {offsets = [0, 24], sizes = [8, 8], strides = [1, 1]} : vector<8x32xf32> to vector<8x8xf32>
    %403 = vector.extract_strided_slice %390 {offsets = [8, 0], sizes = [8, 32], strides = [1, 1]} : vector<16x32xf32> to vector<8x32xf32>
    %404 = vector.extract_strided_slice %403 {offsets = [0, 0], sizes = [8, 8], strides = [1, 1]} : vector<8x32xf32> to vector<8x8xf32>
    %405 = vector.extract_strided_slice %403 {offsets = [0, 8], sizes = [8, 8], strides = [1, 1]} : vector<8x32xf32> to vector<8x8xf32>
    %406 = vector.extract_strided_slice %403 {offsets = [0, 16], sizes = [8, 8], strides = [1, 1]} : vector<8x32xf32> to vector<8x8xf32>
    %407 = vector.extract_strided_slice %403 {offsets = [0, 24], sizes = [8, 8], strides = [1, 1]} : vector<8x32xf32> to vector<8x8xf32>
    %408 = tpu.concatenate %399, %400, %401, %402, %404, %405, %406, %407 in 0 : vector<8x8xf32>, vector<8x8xf32>, vector<8x8xf32>, vector<8x8xf32>, vector<8x8xf32>, vector<8x8xf32>, vector<8x8xf32>, vector<8x8xf32> -> vector<64x8xf32>
    %409 = vector.extract_strided_slice %396 {offsets = [0, 0], sizes = [8, 32], strides = [1, 1]} : vector<16x32xf32> to vector<8x32xf32>
    %410 = vector.extract_strided_slice %409 {offsets = [0, 0], sizes = [8, 8], strides = [1, 1]} : vector<8x32xf32> to vector<8x8xf32>
    %411 = vector.extract_strided_slice %409 {offsets = [0, 8], sizes = [8, 8], strides = [1, 1]} : vector<8x32xf32> to vector<8x8xf32>
    %412 = vector.extract_strided_slice %409 {offsets = [0, 16], sizes = [8, 8], strides = [1, 1]} : vector<8x32xf32> to vector<8x8xf32>
    %413 = vector.extract_strided_slice %409 {offsets = [0, 24], sizes = [8, 8], strides = [1, 1]} : vector<8x32xf32> to vector<8x8xf32>
    %414 = vector.extract_strided_slice %396 {offsets = [8, 0], sizes = [8, 32], strides = [1, 1]} : vector<16x32xf32> to vector<8x32xf32>
    %415 = vector.extract_strided_slice %414 {offsets = [0, 0], sizes = [8, 8], strides = [1, 1]} : vector<8x32xf32> to vector<8x8xf32>
    %416 = vector.extract_strided_slice %414 {offsets = [0, 8], sizes = [8, 8], strides = [1, 1]} : vector<8x32xf32> to vector<8x8xf32>
    %417 = vector.extract_strided_slice %414 {offsets = [0, 16], sizes = [8, 8], strides = [1, 1]} : vector<8x32xf32> to vector<8x8xf32>
    %418 = vector.extract_strided_slice %414 {offsets = [0, 24], sizes = [8, 8], strides = [1, 1]} : vector<8x32xf32> to vector<8x8xf32>
    %419 = tpu.concatenate %410, %411, %412, %413, %415, %416, %417, %418 in 0 : vector<8x8xf32>, vector<8x8xf32>, vector<8x8xf32>, vector<8x8xf32>, vector<8x8xf32>, vector<8x8xf32>, vector<8x8xf32>, vector<8x8xf32> -> vector<64x8xf32>
    %420 = vector.extract_strided_slice %397 {offsets = [0, 0], sizes = [8, 32], strides = [1, 1]} : vector<16x32xf32> to vector<8x32xf32>
    %421 = vector.extract_strided_slice %420 {offsets = [0, 0], sizes = [8, 8], strides = [1, 1]} : vector<8x32xf32> to vector<8x8xf32>
    %422 = vector.extract_strided_slice %420 {offsets = [0, 8], sizes = [8, 8], strides = [1, 1]} : vector<8x32xf32> to vector<8x8xf32>
    %423 = vector.extract_strided_slice %420 {offsets = [0, 16], sizes = [8, 8], strides = [1, 1]} : vector<8x32xf32> to vector<8x8xf32>
    %424 = vector.extract_strided_slice %420 {offsets = [0, 24], sizes = [8, 8], strides = [1, 1]} : vector<8x32xf32> to vector<8x8xf32>
    %425 = vector.extract_strided_slice %397 {offsets = [8, 0], sizes = [8, 32], strides = [1, 1]} : vector<16x32xf32> to vector<8x32xf32>
    %426 = vector.extract_strided_slice %425 {offsets = [0, 0], sizes = [8, 8], strides = [1, 1]} : vector<8x32xf32> to vector<8x8xf32>
    %427 = vector.extract_strided_slice %425 {offsets = [0, 8], sizes = [8, 8], strides = [1, 1]} : vector<8x32xf32> to vector<8x8xf32>
    %428 = vector.extract_strided_slice %425 {offsets = [0, 16], sizes = [8, 8], strides = [1, 1]} : vector<8x32xf32> to vector<8x8xf32>
    %429 = vector.extract_strided_slice %425 {offsets = [0, 24], sizes = [8, 8], strides = [1, 1]} : vector<8x32xf32> to vector<8x8xf32>
    %430 = tpu.concatenate %421, %422, %423, %424, %426, %427, %428, %429 in 0 : vector<8x8xf32>, vector<8x8xf32>, vector<8x8xf32>, vector<8x8xf32>, vector<8x8xf32>, vector<8x8xf32>, vector<8x8xf32>, vector<8x8xf32> -> vector<64x8xf32>
    %cst_97 = arith.constant dense<0.000000e+00> : vector<64x64xf32>
    %431 = tpu.matmul %408, %419, %cst_97 {dimension_numbers = #tpu.dot_dimension_numbers<[1], [1], [0], [0], [0, 0, 1, 0], [], []>} : vector<64x8xf32>, vector<64x8xf32>, vector<64x64xf32> -> vector<64x64xf32>
    %cst_98 = arith.constant 0.353553385 : f32
    %432 = vector.broadcast %cst_98 : f32 to vector<64x64xf32>
    %433 = arith.mulf %431, %432 : vector<64x64xf32>
    %434 = arith.addf %433, %14 : vector<64x64xf32>
    %cst_99 = arith.constant dense<0xFF800000> : vector<64xf32>
    %435 = vector.multi_reduction <maximumf>, %434, %cst_99 [1] : vector<64x64xf32> to vector<64xf32>
    %436 = vector.shape_cast %435 : vector<64xf32> to vector<64x1xf32>
    %437 = vector.broadcast %436 : vector<64x1xf32> to vector<64x64xf32>
    %438 = arith.subf %434, %437 : vector<64x64xf32>
    %439 = math.exp %438 : vector<64x64xf32>
    %cst_100 = arith.constant dense<0.000000e+00> : vector<64xf32>
    %440 = vector.multi_reduction <add>, %439, %cst_100 [1] : vector<64x64xf32> to vector<64xf32>
    %441 = vector.shape_cast %440 : vector<64xf32> to vector<64x1xf32>
    %442 = tpu.reciprocal %441 {approx = true} : vector<64x1xf32> -> vector<64x1xf32>
    %443 = vector.broadcast %442 : vector<64x1xf32> to vector<64x64xf32>
    %444 = arith.mulf %439, %443 : vector<64x64xf32>
    %cst_101 = arith.constant dense<0.000000e+00> : vector<64x8xf32>
    %445 = tpu.matmul %444, %430, %cst_101 {dimension_numbers = #tpu.dot_dimension_numbers<[1], [0], [0], [1], [0, 0, 1, 1], [], []>} : vector<64x64xf32>, vector<64x8xf32>, vector<64x8xf32> -> vector<64x8xf32>
    %446 = vector.extract_strided_slice %445 {offsets = [0, 0], sizes = [8, 8], strides = [1, 1]} : vector<64x8xf32> to vector<8x8xf32>
    %447 = vector.extract_strided_slice %445 {offsets = [8, 0], sizes = [8, 8], strides = [1, 1]} : vector<64x8xf32> to vector<8x8xf32>
    %448 = vector.extract_strided_slice %445 {offsets = [16, 0], sizes = [8, 8], strides = [1, 1]} : vector<64x8xf32> to vector<8x8xf32>
    %449 = vector.extract_strided_slice %445 {offsets = [24, 0], sizes = [8, 8], strides = [1, 1]} : vector<64x8xf32> to vector<8x8xf32>
    %450 = tpu.concatenate %446, %447, %448, %449 in 1 : vector<8x8xf32>, vector<8x8xf32>, vector<8x8xf32>, vector<8x8xf32> -> vector<8x32xf32>
    %451 = vector.extract_strided_slice %445 {offsets = [32, 0], sizes = [8, 8], strides = [1, 1]} : vector<64x8xf32> to vector<8x8xf32>
    %452 = vector.extract_strided_slice %445 {offsets = [40, 0], sizes = [8, 8], strides = [1, 1]} : vector<64x8xf32> to vector<8x8xf32>
    %453 = vector.extract_strided_slice %445 {offsets = [48, 0], sizes = [8, 8], strides = [1, 1]} : vector<64x8xf32> to vector<8x8xf32>
    %454 = vector.extract_strided_slice %445 {offsets = [56, 0], sizes = [8, 8], strides = [1, 1]} : vector<64x8xf32> to vector<8x8xf32>
    %455 = tpu.concatenate %451, %452, %453, %454 in 1 : vector<8x8xf32>, vector<8x8xf32>, vector<8x8xf32>, vector<8x8xf32> -> vector<8x32xf32>
    %456 = tpu.concatenate %450, %455 in 0 : vector<8x32xf32>, vector<8x32xf32> -> vector<16x32xf32>
    %c624 = arith.constant 624 : index
    %c0_102 = arith.constant 0 : index
    %457 = vector.load %arg2[%c624, %c0_102] : memref<1208x128xf32, #tpu.memory_space<vmem>>, vector<32x32xf32>
    %cst_103 = arith.constant dense<0.000000e+00> : vector<16x32xf32>
    %458 = tpu.matmul %456, %457, %cst_103 {dimension_numbers = #tpu.dot_dimension_numbers<[1], [0], [0], [1], [0, 0, 1, 1], [], []>} : vector<16x32xf32>, vector<32x32xf32>, vector<16x32xf32> -> vector<16x32xf32>
    %c656 = arith.constant 656 : index
    %c0_104 = arith.constant 0 : index
    %459 = vector.load %arg2[%c656, %c0_104] : memref<1208x128xf32, #tpu.memory_space<vmem>>, vector<1x32xf32>
    %460 = vector.broadcast %459 : vector<1x32xf32> to vector<16x32xf32>
    %461 = arith.addf %458, %460 : vector<16x32xf32>
    %462 = arith.addf %385, %461 : vector<16x32xf32>
    %c664 = arith.constant 664 : index
    %c0_105 = arith.constant 0 : index
    %463 = vector.load %arg2[%c664, %c0_105] : memref<1208x128xf32, #tpu.memory_space<vmem>>, vector<1x32xf32>
    %c672 = arith.constant 672 : index
    %c0_106 = arith.constant 0 : index
    %464 = vector.load %arg2[%c672, %c0_106] : memref<1208x128xf32, #tpu.memory_space<vmem>>, vector<1x32xf32>
    %cst_107 = arith.constant dense<0.000000e+00> : vector<16xf32>
    %465 = vector.multi_reduction <add>, %462, %cst_107 [1] : vector<16x32xf32> to vector<16xf32>
    %466 = vector.shape_cast %465 : vector<16xf32> to vector<16x1xf32>
    %cst_108 = arith.constant 3.200000e+01 : f32
    %467 = vector.broadcast %cst_108 : f32 to vector<16x1xf32>
    %468 = arith.divf %466, %467 : vector<16x1xf32>
    %469 = vector.broadcast %468 : vector<16x1xf32> to vector<16x32xf32>
    %470 = arith.subf %462, %469 : vector<16x32xf32>
    %471 = arith.mulf %470, %470 : vector<16x32xf32>
    %cst_109 = arith.constant dense<0.000000e+00> : vector<16xf32>
    %472 = vector.multi_reduction <add>, %471, %cst_109 [1] : vector<16x32xf32> to vector<16xf32>
    %473 = vector.shape_cast %472 : vector<16xf32> to vector<16x1xf32>
    %cst_110 = arith.constant 3.200000e+01 : f32
    %474 = vector.broadcast %cst_110 : f32 to vector<16x1xf32>
    %475 = arith.divf %473, %474 : vector<16x1xf32>
    %476 = vector.broadcast %468 : vector<16x1xf32> to vector<16x32xf32>
    %477 = arith.subf %462, %476 : vector<16x32xf32>
    %cst_111 = arith.constant 9.99999974E-6 : f32
    %478 = vector.broadcast %cst_111 : f32 to vector<16x1xf32>
    %479 = arith.addf %475, %478 : vector<16x1xf32>
    %480 = math.rsqrt %479 : vector<16x1xf32>
    %481 = vector.broadcast %480 : vector<16x1xf32> to vector<16x32xf32>
    %482 = arith.mulf %477, %481 : vector<16x32xf32>
    %483 = vector.broadcast %463 : vector<1x32xf32> to vector<16x32xf32>
    %484 = arith.mulf %482, %483 : vector<16x32xf32>
    %485 = vector.broadcast %464 : vector<1x32xf32> to vector<16x32xf32>
    %486 = arith.addf %484, %485 : vector<16x32xf32>
    %c680 = arith.constant 680 : index
    %c0_112 = arith.constant 0 : index
    %487 = vector.load %arg2[%c680, %c0_112] : memref<1208x128xf32, #tpu.memory_space<vmem>>, vector<32x64xf32>
    %cst_113 = arith.constant dense<0.000000e+00> : vector<16x64xf32>
    %488 = tpu.matmul %486, %487, %cst_113 {dimension_numbers = #tpu.dot_dimension_numbers<[1], [0], [0], [1], [0, 0, 1, 1], [], []>} : vector<16x32xf32>, vector<32x64xf32>, vector<16x64xf32> -> vector<16x64xf32>
    %c712 = arith.constant 712 : index
    %c0_114 = arith.constant 0 : index
    %489 = vector.load %arg2[%c712, %c0_114] : memref<1208x128xf32, #tpu.memory_space<vmem>>, vector<1x64xf32>
    %490 = vector.broadcast %489 : vector<1x64xf32> to vector<16x64xf32>
    %491 = arith.addf %488, %490 : vector<16x64xf32>
    %cst_115 = arith.constant 0.000000e+00 : f32
    %492 = vector.broadcast %cst_115 : f32 to vector<16x64xf32>
    %493 = arith.maximumf %491, %492 : vector<16x64xf32>
    %c720 = arith.constant 720 : index
    %c0_116 = arith.constant 0 : index
    %494 = vector.load %arg2[%c720, %c0_116] : memref<1208x128xf32, #tpu.memory_space<vmem>>, vector<64x32xf32>
    %cst_117 = arith.constant dense<0.000000e+00> : vector<16x32xf32>
    %495 = tpu.matmul %493, %494, %cst_117 {dimension_numbers = #tpu.dot_dimension_numbers<[1], [0], [0], [1], [0, 0, 1, 1], [], []>} : vector<16x64xf32>, vector<64x32xf32>, vector<16x32xf32> -> vector<16x32xf32>
    %c784 = arith.constant 784 : index
    %c0_118 = arith.constant 0 : index
    %496 = vector.load %arg2[%c784, %c0_118] : memref<1208x128xf32, #tpu.memory_space<vmem>>, vector<1x32xf32>
    %497 = vector.broadcast %496 : vector<1x32xf32> to vector<16x32xf32>
    %498 = arith.addf %495, %497 : vector<16x32xf32>
    %499 = arith.addf %486, %498 : vector<16x32xf32>
    %c792 = arith.constant 792 : index
    %c0_119 = arith.constant 0 : index
    %500 = vector.load %arg2[%c792, %c0_119] : memref<1208x128xf32, #tpu.memory_space<vmem>>, vector<1x32xf32>
    %c800 = arith.constant 800 : index
    %c0_120 = arith.constant 0 : index
    %501 = vector.load %arg2[%c800, %c0_120] : memref<1208x128xf32, #tpu.memory_space<vmem>>, vector<1x32xf32>
    %cst_121 = arith.constant dense<0.000000e+00> : vector<16xf32>
    %502 = vector.multi_reduction <add>, %499, %cst_121 [1] : vector<16x32xf32> to vector<16xf32>
    %503 = vector.shape_cast %502 : vector<16xf32> to vector<16x1xf32>
    %cst_122 = arith.constant 3.200000e+01 : f32
    %504 = vector.broadcast %cst_122 : f32 to vector<16x1xf32>
    %505 = arith.divf %503, %504 : vector<16x1xf32>
    %506 = vector.broadcast %505 : vector<16x1xf32> to vector<16x32xf32>
    %507 = arith.subf %499, %506 : vector<16x32xf32>
    %508 = arith.mulf %507, %507 : vector<16x32xf32>
    %cst_123 = arith.constant dense<0.000000e+00> : vector<16xf32>
    %509 = vector.multi_reduction <add>, %508, %cst_123 [1] : vector<16x32xf32> to vector<16xf32>
    %510 = vector.shape_cast %509 : vector<16xf32> to vector<16x1xf32>
    %cst_124 = arith.constant 3.200000e+01 : f32
    %511 = vector.broadcast %cst_124 : f32 to vector<16x1xf32>
    %512 = arith.divf %510, %511 : vector<16x1xf32>
    %513 = vector.broadcast %505 : vector<16x1xf32> to vector<16x32xf32>
    %514 = arith.subf %499, %513 : vector<16x32xf32>
    %cst_125 = arith.constant 9.99999974E-6 : f32
    %515 = vector.broadcast %cst_125 : f32 to vector<16x1xf32>
    %516 = arith.addf %512, %515 : vector<16x1xf32>
    %517 = math.rsqrt %516 : vector<16x1xf32>
    %518 = vector.broadcast %517 : vector<16x1xf32> to vector<16x32xf32>
    %519 = arith.mulf %514, %518 : vector<16x32xf32>
    %520 = vector.broadcast %500 : vector<1x32xf32> to vector<16x32xf32>
    %521 = arith.mulf %519, %520 : vector<16x32xf32>
    %522 = vector.broadcast %501 : vector<1x32xf32> to vector<16x32xf32>
    %523 = arith.addf %521, %522 : vector<16x32xf32>
    %c808 = arith.constant 808 : index
    %c0_126 = arith.constant 0 : index
    %524 = vector.load %arg2[%c808, %c0_126] : memref<1208x128xf32, #tpu.memory_space<vmem>>, vector<32x96xf32>
    %cst_127 = arith.constant dense<0.000000e+00> : vector<16x96xf32>
    %525 = tpu.matmul %523, %524, %cst_127 {dimension_numbers = #tpu.dot_dimension_numbers<[1], [0], [0], [1], [0, 0, 1, 1], [], []>} : vector<16x32xf32>, vector<32x96xf32>, vector<16x96xf32> -> vector<16x96xf32>
    %c840 = arith.constant 840 : index
    %c0_128 = arith.constant 0 : index
    %526 = vector.load %arg2[%c840, %c0_128] : memref<1208x128xf32, #tpu.memory_space<vmem>>, vector<1x96xf32>
    %527 = vector.broadcast %526 : vector<1x96xf32> to vector<16x96xf32>
    %528 = arith.addf %525, %527 : vector<16x96xf32>
    %529 = vector.extract_strided_slice %528 {offsets = [0, 0], sizes = [16, 32], strides = [1, 1]} : vector<16x96xf32> to vector<16x32xf32>
    %530 = vector.extract_strided_slice %528 {offsets = [0, 32], sizes = [16, 32], strides = [1, 1]} : vector<16x96xf32> to vector<16x32xf32>
    %531 = vector.extract_strided_slice %528 {offsets = [0, 64], sizes = [16, 32], strides = [1, 1]} : vector<16x96xf32> to vector<16x32xf32>
    %532 = vector.extract_strided_slice %529 {offsets = [0, 0], sizes = [8, 32], strides = [1, 1]} : vector<16x32xf32> to vector<8x32xf32>
    %533 = vector.extract_strided_slice %532 {offsets = [0, 0], sizes = [8, 8], strides = [1, 1]} : vector<8x32xf32> to vector<8x8xf32>
    %534 = vector.extract_strided_slice %532 {offsets = [0, 8], sizes = [8, 8], strides = [1, 1]} : vector<8x32xf32> to vector<8x8xf32>
    %535 = vector.extract_strided_slice %532 {offsets = [0, 16], sizes = [8, 8], strides = [1, 1]} : vector<8x32xf32> to vector<8x8xf32>
    %536 = vector.extract_strided_slice %532 {offsets = [0, 24], sizes = [8, 8], strides = [1, 1]} : vector<8x32xf32> to vector<8x8xf32>
    %537 = vector.extract_strided_slice %529 {offsets = [8, 0], sizes = [8, 32], strides = [1, 1]} : vector<16x32xf32> to vector<8x32xf32>
    %538 = vector.extract_strided_slice %537 {offsets = [0, 0], sizes = [8, 8], strides = [1, 1]} : vector<8x32xf32> to vector<8x8xf32>
    %539 = vector.extract_strided_slice %537 {offsets = [0, 8], sizes = [8, 8], strides = [1, 1]} : vector<8x32xf32> to vector<8x8xf32>
    %540 = vector.extract_strided_slice %537 {offsets = [0, 16], sizes = [8, 8], strides = [1, 1]} : vector<8x32xf32> to vector<8x8xf32>
    %541 = vector.extract_strided_slice %537 {offsets = [0, 24], sizes = [8, 8], strides = [1, 1]} : vector<8x32xf32> to vector<8x8xf32>
    %542 = tpu.concatenate %533, %534, %535, %536, %538, %539, %540, %541 in 0 : vector<8x8xf32>, vector<8x8xf32>, vector<8x8xf32>, vector<8x8xf32>, vector<8x8xf32>, vector<8x8xf32>, vector<8x8xf32>, vector<8x8xf32> -> vector<64x8xf32>
    %543 = vector.extract_strided_slice %530 {offsets = [0, 0], sizes = [8, 32], strides = [1, 1]} : vector<16x32xf32> to vector<8x32xf32>
    %544 = vector.extract_strided_slice %543 {offsets = [0, 0], sizes = [8, 8], strides = [1, 1]} : vector<8x32xf32> to vector<8x8xf32>
    %545 = vector.extract_strided_slice %543 {offsets = [0, 8], sizes = [8, 8], strides = [1, 1]} : vector<8x32xf32> to vector<8x8xf32>
    %546 = vector.extract_strided_slice %543 {offsets = [0, 16], sizes = [8, 8], strides = [1, 1]} : vector<8x32xf32> to vector<8x8xf32>
    %547 = vector.extract_strided_slice %543 {offsets = [0, 24], sizes = [8, 8], strides = [1, 1]} : vector<8x32xf32> to vector<8x8xf32>
    %548 = vector.extract_strided_slice %530 {offsets = [8, 0], sizes = [8, 32], strides = [1, 1]} : vector<16x32xf32> to vector<8x32xf32>
    %549 = vector.extract_strided_slice %548 {offsets = [0, 0], sizes = [8, 8], strides = [1, 1]} : vector<8x32xf32> to vector<8x8xf32>
    %550 = vector.extract_strided_slice %548 {offsets = [0, 8], sizes = [8, 8], strides = [1, 1]} : vector<8x32xf32> to vector<8x8xf32>
    %551 = vector.extract_strided_slice %548 {offsets = [0, 16], sizes = [8, 8], strides = [1, 1]} : vector<8x32xf32> to vector<8x8xf32>
    %552 = vector.extract_strided_slice %548 {offsets = [0, 24], sizes = [8, 8], strides = [1, 1]} : vector<8x32xf32> to vector<8x8xf32>
    %553 = tpu.concatenate %544, %545, %546, %547, %549, %550, %551, %552 in 0 : vector<8x8xf32>, vector<8x8xf32>, vector<8x8xf32>, vector<8x8xf32>, vector<8x8xf32>, vector<8x8xf32>, vector<8x8xf32>, vector<8x8xf32> -> vector<64x8xf32>
    %554 = vector.extract_strided_slice %531 {offsets = [0, 0], sizes = [8, 32], strides = [1, 1]} : vector<16x32xf32> to vector<8x32xf32>
    %555 = vector.extract_strided_slice %554 {offsets = [0, 0], sizes = [8, 8], strides = [1, 1]} : vector<8x32xf32> to vector<8x8xf32>
    %556 = vector.extract_strided_slice %554 {offsets = [0, 8], sizes = [8, 8], strides = [1, 1]} : vector<8x32xf32> to vector<8x8xf32>
    %557 = vector.extract_strided_slice %554 {offsets = [0, 16], sizes = [8, 8], strides = [1, 1]} : vector<8x32xf32> to vector<8x8xf32>
    %558 = vector.extract_strided_slice %554 {offsets = [0, 24], sizes = [8, 8], strides = [1, 1]} : vector<8x32xf32> to vector<8x8xf32>
    %559 = vector.extract_strided_slice %531 {offsets = [8, 0], sizes = [8, 32], strides = [1, 1]} : vector<16x32xf32> to vector<8x32xf32>
    %560 = vector.extract_strided_slice %559 {offsets = [0, 0], sizes = [8, 8], strides = [1, 1]} : vector<8x32xf32> to vector<8x8xf32>
    %561 = vector.extract_strided_slice %559 {offsets = [0, 8], sizes = [8, 8], strides = [1, 1]} : vector<8x32xf32> to vector<8x8xf32>
    %562 = vector.extract_strided_slice %559 {offsets = [0, 16], sizes = [8, 8], strides = [1, 1]} : vector<8x32xf32> to vector<8x8xf32>
    %563 = vector.extract_strided_slice %559 {offsets = [0, 24], sizes = [8, 8], strides = [1, 1]} : vector<8x32xf32> to vector<8x8xf32>
    %564 = tpu.concatenate %555, %556, %557, %558, %560, %561, %562, %563 in 0 : vector<8x8xf32>, vector<8x8xf32>, vector<8x8xf32>, vector<8x8xf32>, vector<8x8xf32>, vector<8x8xf32>, vector<8x8xf32>, vector<8x8xf32> -> vector<64x8xf32>
    %cst_129 = arith.constant dense<0.000000e+00> : vector<64x64xf32>
    %565 = tpu.matmul %542, %553, %cst_129 {dimension_numbers = #tpu.dot_dimension_numbers<[1], [1], [0], [0], [0, 0, 1, 0], [], []>} : vector<64x8xf32>, vector<64x8xf32>, vector<64x64xf32> -> vector<64x64xf32>
    %cst_130 = arith.constant 0.353553385 : f32
    %566 = vector.broadcast %cst_130 : f32 to vector<64x64xf32>
    %567 = arith.mulf %565, %566 : vector<64x64xf32>
    %568 = arith.addf %567, %18 : vector<64x64xf32>
    %cst_131 = arith.constant dense<0xFF800000> : vector<64xf32>
    %569 = vector.multi_reduction <maximumf>, %568, %cst_131 [1] : vector<64x64xf32> to vector<64xf32>
    %570 = vector.shape_cast %569 : vector<64xf32> to vector<64x1xf32>
    %571 = vector.broadcast %570 : vector<64x1xf32> to vector<64x64xf32>
    %572 = arith.subf %568, %571 : vector<64x64xf32>
    %573 = math.exp %572 : vector<64x64xf32>
    %cst_132 = arith.constant dense<0.000000e+00> : vector<64xf32>
    %574 = vector.multi_reduction <add>, %573, %cst_132 [1] : vector<64x64xf32> to vector<64xf32>
    %575 = vector.shape_cast %574 : vector<64xf32> to vector<64x1xf32>
    %576 = tpu.reciprocal %575 {approx = true} : vector<64x1xf32> -> vector<64x1xf32>
    %577 = vector.broadcast %576 : vector<64x1xf32> to vector<64x64xf32>
    %578 = arith.mulf %573, %577 : vector<64x64xf32>
    %cst_133 = arith.constant dense<0.000000e+00> : vector<64x8xf32>
    %579 = tpu.matmul %578, %564, %cst_133 {dimension_numbers = #tpu.dot_dimension_numbers<[1], [0], [0], [1], [0, 0, 1, 1], [], []>} : vector<64x64xf32>, vector<64x8xf32>, vector<64x8xf32> -> vector<64x8xf32>
    %580 = vector.extract_strided_slice %579 {offsets = [0, 0], sizes = [8, 8], strides = [1, 1]} : vector<64x8xf32> to vector<8x8xf32>
    %581 = vector.extract_strided_slice %579 {offsets = [8, 0], sizes = [8, 8], strides = [1, 1]} : vector<64x8xf32> to vector<8x8xf32>
    %582 = vector.extract_strided_slice %579 {offsets = [16, 0], sizes = [8, 8], strides = [1, 1]} : vector<64x8xf32> to vector<8x8xf32>
    %583 = vector.extract_strided_slice %579 {offsets = [24, 0], sizes = [8, 8], strides = [1, 1]} : vector<64x8xf32> to vector<8x8xf32>
    %584 = tpu.concatenate %580, %581, %582, %583 in 1 : vector<8x8xf32>, vector<8x8xf32>, vector<8x8xf32>, vector<8x8xf32> -> vector<8x32xf32>
    %585 = vector.extract_strided_slice %579 {offsets = [32, 0], sizes = [8, 8], strides = [1, 1]} : vector<64x8xf32> to vector<8x8xf32>
    %586 = vector.extract_strided_slice %579 {offsets = [40, 0], sizes = [8, 8], strides = [1, 1]} : vector<64x8xf32> to vector<8x8xf32>
    %587 = vector.extract_strided_slice %579 {offsets = [48, 0], sizes = [8, 8], strides = [1, 1]} : vector<64x8xf32> to vector<8x8xf32>
    %588 = vector.extract_strided_slice %579 {offsets = [56, 0], sizes = [8, 8], strides = [1, 1]} : vector<64x8xf32> to vector<8x8xf32>
    %589 = tpu.concatenate %585, %586, %587, %588 in 1 : vector<8x8xf32>, vector<8x8xf32>, vector<8x8xf32>, vector<8x8xf32> -> vector<8x32xf32>
    %590 = tpu.concatenate %584, %589 in 0 : vector<8x32xf32>, vector<8x32xf32> -> vector<16x32xf32>
    %c848 = arith.constant 848 : index
    %c0_134 = arith.constant 0 : index
    %591 = vector.load %arg2[%c848, %c0_134] : memref<1208x128xf32, #tpu.memory_space<vmem>>, vector<32x32xf32>
    %cst_135 = arith.constant dense<0.000000e+00> : vector<16x32xf32>
    %592 = tpu.matmul %590, %591, %cst_135 {dimension_numbers = #tpu.dot_dimension_numbers<[1], [0], [0], [1], [0, 0, 1, 1], [], []>} : vector<16x32xf32>, vector<32x32xf32>, vector<16x32xf32> -> vector<16x32xf32>
    %c880 = arith.constant 880 : index
    %c0_136 = arith.constant 0 : index
    %593 = vector.load %arg2[%c880, %c0_136] : memref<1208x128xf32, #tpu.memory_space<vmem>>, vector<1x32xf32>
    %594 = vector.broadcast %593 : vector<1x32xf32> to vector<16x32xf32>
    %595 = arith.addf %592, %594 : vector<16x32xf32>
    %596 = arith.addf %523, %595 : vector<16x32xf32>
    %c888 = arith.constant 888 : index
    %c0_137 = arith.constant 0 : index
    %597 = vector.load %arg2[%c888, %c0_137] : memref<1208x128xf32, #tpu.memory_space<vmem>>, vector<1x32xf32>
    %c896 = arith.constant 896 : index
    %c0_138 = arith.constant 0 : index
    %598 = vector.load %arg2[%c896, %c0_138] : memref<1208x128xf32, #tpu.memory_space<vmem>>, vector<1x32xf32>
    %cst_139 = arith.constant dense<0.000000e+00> : vector<16xf32>
    %599 = vector.multi_reduction <add>, %596, %cst_139 [1] : vector<16x32xf32> to vector<16xf32>
    %600 = vector.shape_cast %599 : vector<16xf32> to vector<16x1xf32>
    %cst_140 = arith.constant 3.200000e+01 : f32
    %601 = vector.broadcast %cst_140 : f32 to vector<16x1xf32>
    %602 = arith.divf %600, %601 : vector<16x1xf32>
    %603 = vector.broadcast %602 : vector<16x1xf32> to vector<16x32xf32>
    %604 = arith.subf %596, %603 : vector<16x32xf32>
    %605 = arith.mulf %604, %604 : vector<16x32xf32>
    %cst_141 = arith.constant dense<0.000000e+00> : vector<16xf32>
    %606 = vector.multi_reduction <add>, %605, %cst_141 [1] : vector<16x32xf32> to vector<16xf32>
    %607 = vector.shape_cast %606 : vector<16xf32> to vector<16x1xf32>
    %cst_142 = arith.constant 3.200000e+01 : f32
    %608 = vector.broadcast %cst_142 : f32 to vector<16x1xf32>
    %609 = arith.divf %607, %608 : vector<16x1xf32>
    %610 = vector.broadcast %602 : vector<16x1xf32> to vector<16x32xf32>
    %611 = arith.subf %596, %610 : vector<16x32xf32>
    %cst_143 = arith.constant 9.99999974E-6 : f32
    %612 = vector.broadcast %cst_143 : f32 to vector<16x1xf32>
    %613 = arith.addf %609, %612 : vector<16x1xf32>
    %614 = math.rsqrt %613 : vector<16x1xf32>
    %615 = vector.broadcast %614 : vector<16x1xf32> to vector<16x32xf32>
    %616 = arith.mulf %611, %615 : vector<16x32xf32>
    %617 = vector.broadcast %597 : vector<1x32xf32> to vector<16x32xf32>
    %618 = arith.mulf %616, %617 : vector<16x32xf32>
    %619 = vector.broadcast %598 : vector<1x32xf32> to vector<16x32xf32>
    %620 = arith.addf %618, %619 : vector<16x32xf32>
    %c904 = arith.constant 904 : index
    %c0_144 = arith.constant 0 : index
    %621 = vector.load %arg2[%c904, %c0_144] : memref<1208x128xf32, #tpu.memory_space<vmem>>, vector<32x32xf32>
    %cst_145 = arith.constant dense<0.000000e+00> : vector<16x32xf32>
    %622 = tpu.matmul %620, %621, %cst_145 {dimension_numbers = #tpu.dot_dimension_numbers<[1], [0], [0], [1], [0, 0, 1, 1], [], []>} : vector<16x32xf32>, vector<32x32xf32>, vector<16x32xf32> -> vector<16x32xf32>
    %c936 = arith.constant 936 : index
    %c0_146 = arith.constant 0 : index
    %623 = vector.load %arg2[%c936, %c0_146] : memref<1208x128xf32, #tpu.memory_space<vmem>>, vector<1x32xf32>
    %624 = vector.broadcast %623 : vector<1x32xf32> to vector<16x32xf32>
    %625 = arith.addf %622, %624 : vector<16x32xf32>
    %c944 = arith.constant 944 : index
    %c0_147 = arith.constant 0 : index
    %626 = vector.load %arg2[%c944, %c0_147] : memref<1208x128xf32, #tpu.memory_space<vmem>>, vector<32x64xf32>
    %cst_148 = arith.constant dense<0.000000e+00> : vector<16x64xf32>
    %627 = tpu.matmul %287, %626, %cst_148 {dimension_numbers = #tpu.dot_dimension_numbers<[1], [0], [0], [1], [0, 0, 1, 1], [], []>} : vector<16x32xf32>, vector<32x64xf32>, vector<16x64xf32> -> vector<16x64xf32>
    %c976 = arith.constant 976 : index
    %c0_149 = arith.constant 0 : index
    %628 = vector.load %arg2[%c976, %c0_149] : memref<1208x128xf32, #tpu.memory_space<vmem>>, vector<1x64xf32>
    %629 = vector.broadcast %628 : vector<1x64xf32> to vector<16x64xf32>
    %630 = arith.addf %627, %629 : vector<16x64xf32>
    %631 = vector.extract_strided_slice %630 {offsets = [0, 0], sizes = [16, 32], strides = [1, 1]} : vector<16x64xf32> to vector<16x32xf32>
    %632 = vector.extract_strided_slice %630 {offsets = [0, 32], sizes = [16, 32], strides = [1, 1]} : vector<16x64xf32> to vector<16x32xf32>
    %633 = vector.extract_strided_slice %625 {offsets = [0, 0], sizes = [8, 32], strides = [1, 1]} : vector<16x32xf32> to vector<8x32xf32>
    %634 = vector.extract_strided_slice %633 {offsets = [0, 0], sizes = [8, 8], strides = [1, 1]} : vector<8x32xf32> to vector<8x8xf32>
    %635 = vector.extract_strided_slice %633 {offsets = [0, 8], sizes = [8, 8], strides = [1, 1]} : vector<8x32xf32> to vector<8x8xf32>
    %636 = vector.extract_strided_slice %633 {offsets = [0, 16], sizes = [8, 8], strides = [1, 1]} : vector<8x32xf32> to vector<8x8xf32>
    %637 = vector.extract_strided_slice %633 {offsets = [0, 24], sizes = [8, 8], strides = [1, 1]} : vector<8x32xf32> to vector<8x8xf32>
    %638 = vector.extract_strided_slice %625 {offsets = [8, 0], sizes = [8, 32], strides = [1, 1]} : vector<16x32xf32> to vector<8x32xf32>
    %639 = vector.extract_strided_slice %638 {offsets = [0, 0], sizes = [8, 8], strides = [1, 1]} : vector<8x32xf32> to vector<8x8xf32>
    %640 = vector.extract_strided_slice %638 {offsets = [0, 8], sizes = [8, 8], strides = [1, 1]} : vector<8x32xf32> to vector<8x8xf32>
    %641 = vector.extract_strided_slice %638 {offsets = [0, 16], sizes = [8, 8], strides = [1, 1]} : vector<8x32xf32> to vector<8x8xf32>
    %642 = vector.extract_strided_slice %638 {offsets = [0, 24], sizes = [8, 8], strides = [1, 1]} : vector<8x32xf32> to vector<8x8xf32>
    %643 = tpu.concatenate %634, %635, %636, %637, %639, %640, %641, %642 in 0 : vector<8x8xf32>, vector<8x8xf32>, vector<8x8xf32>, vector<8x8xf32>, vector<8x8xf32>, vector<8x8xf32>, vector<8x8xf32>, vector<8x8xf32> -> vector<64x8xf32>
    %644 = vector.extract_strided_slice %631 {offsets = [0, 0], sizes = [8, 32], strides = [1, 1]} : vector<16x32xf32> to vector<8x32xf32>
    %645 = vector.extract_strided_slice %644 {offsets = [0, 0], sizes = [8, 8], strides = [1, 1]} : vector<8x32xf32> to vector<8x8xf32>
    %646 = vector.extract_strided_slice %644 {offsets = [0, 8], sizes = [8, 8], strides = [1, 1]} : vector<8x32xf32> to vector<8x8xf32>
    %647 = vector.extract_strided_slice %644 {offsets = [0, 16], sizes = [8, 8], strides = [1, 1]} : vector<8x32xf32> to vector<8x8xf32>
    %648 = vector.extract_strided_slice %644 {offsets = [0, 24], sizes = [8, 8], strides = [1, 1]} : vector<8x32xf32> to vector<8x8xf32>
    %649 = vector.extract_strided_slice %631 {offsets = [8, 0], sizes = [8, 32], strides = [1, 1]} : vector<16x32xf32> to vector<8x32xf32>
    %650 = vector.extract_strided_slice %649 {offsets = [0, 0], sizes = [8, 8], strides = [1, 1]} : vector<8x32xf32> to vector<8x8xf32>
    %651 = vector.extract_strided_slice %649 {offsets = [0, 8], sizes = [8, 8], strides = [1, 1]} : vector<8x32xf32> to vector<8x8xf32>
    %652 = vector.extract_strided_slice %649 {offsets = [0, 16], sizes = [8, 8], strides = [1, 1]} : vector<8x32xf32> to vector<8x8xf32>
    %653 = vector.extract_strided_slice %649 {offsets = [0, 24], sizes = [8, 8], strides = [1, 1]} : vector<8x32xf32> to vector<8x8xf32>
    %654 = tpu.concatenate %645, %646, %647, %648, %650, %651, %652, %653 in 0 : vector<8x8xf32>, vector<8x8xf32>, vector<8x8xf32>, vector<8x8xf32>, vector<8x8xf32>, vector<8x8xf32>, vector<8x8xf32>, vector<8x8xf32> -> vector<64x8xf32>
    %655 = vector.extract_strided_slice %632 {offsets = [0, 0], sizes = [8, 32], strides = [1, 1]} : vector<16x32xf32> to vector<8x32xf32>
    %656 = vector.extract_strided_slice %655 {offsets = [0, 0], sizes = [8, 8], strides = [1, 1]} : vector<8x32xf32> to vector<8x8xf32>
    %657 = vector.extract_strided_slice %655 {offsets = [0, 8], sizes = [8, 8], strides = [1, 1]} : vector<8x32xf32> to vector<8x8xf32>
    %658 = vector.extract_strided_slice %655 {offsets = [0, 16], sizes = [8, 8], strides = [1, 1]} : vector<8x32xf32> to vector<8x8xf32>
    %659 = vector.extract_strided_slice %655 {offsets = [0, 24], sizes = [8, 8], strides = [1, 1]} : vector<8x32xf32> to vector<8x8xf32>
    %660 = vector.extract_strided_slice %632 {offsets = [8, 0], sizes = [8, 32], strides = [1, 1]} : vector<16x32xf32> to vector<8x32xf32>
    %661 = vector.extract_strided_slice %660 {offsets = [0, 0], sizes = [8, 8], strides = [1, 1]} : vector<8x32xf32> to vector<8x8xf32>
    %662 = vector.extract_strided_slice %660 {offsets = [0, 8], sizes = [8, 8], strides = [1, 1]} : vector<8x32xf32> to vector<8x8xf32>
    %663 = vector.extract_strided_slice %660 {offsets = [0, 16], sizes = [8, 8], strides = [1, 1]} : vector<8x32xf32> to vector<8x8xf32>
    %664 = vector.extract_strided_slice %660 {offsets = [0, 24], sizes = [8, 8], strides = [1, 1]} : vector<8x32xf32> to vector<8x8xf32>
    %665 = tpu.concatenate %656, %657, %658, %659, %661, %662, %663, %664 in 0 : vector<8x8xf32>, vector<8x8xf32>, vector<8x8xf32>, vector<8x8xf32>, vector<8x8xf32>, vector<8x8xf32>, vector<8x8xf32>, vector<8x8xf32> -> vector<64x8xf32>
    %cst_150 = arith.constant dense<0.000000e+00> : vector<64x64xf32>
    %666 = tpu.matmul %643, %654, %cst_150 {dimension_numbers = #tpu.dot_dimension_numbers<[1], [1], [0], [0], [0, 0, 1, 0], [], []>} : vector<64x8xf32>, vector<64x8xf32>, vector<64x64xf32> -> vector<64x64xf32>
    %cst_151 = arith.constant 0.353553385 : f32
    %667 = vector.broadcast %cst_151 : f32 to vector<64x64xf32>
    %668 = arith.mulf %666, %667 : vector<64x64xf32>
    %669 = arith.addf %668, %14 : vector<64x64xf32>
    %cst_152 = arith.constant dense<0xFF800000> : vector<64xf32>
    %670 = vector.multi_reduction <maximumf>, %669, %cst_152 [1] : vector<64x64xf32> to vector<64xf32>
    %671 = vector.shape_cast %670 : vector<64xf32> to vector<64x1xf32>
    %672 = vector.broadcast %671 : vector<64x1xf32> to vector<64x64xf32>
    %673 = arith.subf %669, %672 : vector<64x64xf32>
    %674 = math.exp %673 : vector<64x64xf32>
    %cst_153 = arith.constant dense<0.000000e+00> : vector<64xf32>
    %675 = vector.multi_reduction <add>, %674, %cst_153 [1] : vector<64x64xf32> to vector<64xf32>
    %676 = vector.shape_cast %675 : vector<64xf32> to vector<64x1xf32>
    %677 = tpu.reciprocal %676 {approx = true} : vector<64x1xf32> -> vector<64x1xf32>
    %678 = vector.broadcast %677 : vector<64x1xf32> to vector<64x64xf32>
    %679 = arith.mulf %674, %678 : vector<64x64xf32>
    %cst_154 = arith.constant dense<0.000000e+00> : vector<64x8xf32>
    %680 = tpu.matmul %679, %665, %cst_154 {dimension_numbers = #tpu.dot_dimension_numbers<[1], [0], [0], [1], [0, 0, 1, 1], [], []>} : vector<64x64xf32>, vector<64x8xf32>, vector<64x8xf32> -> vector<64x8xf32>
    %681 = vector.extract_strided_slice %680 {offsets = [0, 0], sizes = [8, 8], strides = [1, 1]} : vector<64x8xf32> to vector<8x8xf32>
    %682 = vector.extract_strided_slice %680 {offsets = [8, 0], sizes = [8, 8], strides = [1, 1]} : vector<64x8xf32> to vector<8x8xf32>
    %683 = vector.extract_strided_slice %680 {offsets = [16, 0], sizes = [8, 8], strides = [1, 1]} : vector<64x8xf32> to vector<8x8xf32>
    %684 = vector.extract_strided_slice %680 {offsets = [24, 0], sizes = [8, 8], strides = [1, 1]} : vector<64x8xf32> to vector<8x8xf32>
    %685 = tpu.concatenate %681, %682, %683, %684 in 1 : vector<8x8xf32>, vector<8x8xf32>, vector<8x8xf32>, vector<8x8xf32> -> vector<8x32xf32>
    %686 = vector.extract_strided_slice %680 {offsets = [32, 0], sizes = [8, 8], strides = [1, 1]} : vector<64x8xf32> to vector<8x8xf32>
    %687 = vector.extract_strided_slice %680 {offsets = [40, 0], sizes = [8, 8], strides = [1, 1]} : vector<64x8xf32> to vector<8x8xf32>
    %688 = vector.extract_strided_slice %680 {offsets = [48, 0], sizes = [8, 8], strides = [1, 1]} : vector<64x8xf32> to vector<8x8xf32>
    %689 = vector.extract_strided_slice %680 {offsets = [56, 0], sizes = [8, 8], strides = [1, 1]} : vector<64x8xf32> to vector<8x8xf32>
    %690 = tpu.concatenate %686, %687, %688, %689 in 1 : vector<8x8xf32>, vector<8x8xf32>, vector<8x8xf32>, vector<8x8xf32> -> vector<8x32xf32>
    %691 = tpu.concatenate %685, %690 in 0 : vector<8x32xf32>, vector<8x32xf32> -> vector<16x32xf32>
    %c984 = arith.constant 984 : index
    %c0_155 = arith.constant 0 : index
    %692 = vector.load %arg2[%c984, %c0_155] : memref<1208x128xf32, #tpu.memory_space<vmem>>, vector<32x32xf32>
    %cst_156 = arith.constant dense<0.000000e+00> : vector<16x32xf32>
    %693 = tpu.matmul %691, %692, %cst_156 {dimension_numbers = #tpu.dot_dimension_numbers<[1], [0], [0], [1], [0, 0, 1, 1], [], []>} : vector<16x32xf32>, vector<32x32xf32>, vector<16x32xf32> -> vector<16x32xf32>
    %c1016 = arith.constant 1016 : index
    %c0_157 = arith.constant 0 : index
    %694 = vector.load %arg2[%c1016, %c0_157] : memref<1208x128xf32, #tpu.memory_space<vmem>>, vector<1x32xf32>
    %695 = vector.broadcast %694 : vector<1x32xf32> to vector<16x32xf32>
    %696 = arith.addf %693, %695 : vector<16x32xf32>
    %697 = arith.addf %620, %696 : vector<16x32xf32>
    %c1024 = arith.constant 1024 : index
    %c0_158 = arith.constant 0 : index
    %698 = vector.load %arg2[%c1024, %c0_158] : memref<1208x128xf32, #tpu.memory_space<vmem>>, vector<1x32xf32>
    %c1032 = arith.constant 1032 : index
    %c0_159 = arith.constant 0 : index
    %699 = vector.load %arg2[%c1032, %c0_159] : memref<1208x128xf32, #tpu.memory_space<vmem>>, vector<1x32xf32>
    %cst_160 = arith.constant dense<0.000000e+00> : vector<16xf32>
    %700 = vector.multi_reduction <add>, %697, %cst_160 [1] : vector<16x32xf32> to vector<16xf32>
    %701 = vector.shape_cast %700 : vector<16xf32> to vector<16x1xf32>
    %cst_161 = arith.constant 3.200000e+01 : f32
    %702 = vector.broadcast %cst_161 : f32 to vector<16x1xf32>
    %703 = arith.divf %701, %702 : vector<16x1xf32>
    %704 = vector.broadcast %703 : vector<16x1xf32> to vector<16x32xf32>
    %705 = arith.subf %697, %704 : vector<16x32xf32>
    %706 = arith.mulf %705, %705 : vector<16x32xf32>
    %cst_162 = arith.constant dense<0.000000e+00> : vector<16xf32>
    %707 = vector.multi_reduction <add>, %706, %cst_162 [1] : vector<16x32xf32> to vector<16xf32>
    %708 = vector.shape_cast %707 : vector<16xf32> to vector<16x1xf32>
    %cst_163 = arith.constant 3.200000e+01 : f32
    %709 = vector.broadcast %cst_163 : f32 to vector<16x1xf32>
    %710 = arith.divf %708, %709 : vector<16x1xf32>
    %711 = vector.broadcast %703 : vector<16x1xf32> to vector<16x32xf32>
    %712 = arith.subf %697, %711 : vector<16x32xf32>
    %cst_164 = arith.constant 9.99999974E-6 : f32
    %713 = vector.broadcast %cst_164 : f32 to vector<16x1xf32>
    %714 = arith.addf %710, %713 : vector<16x1xf32>
    %715 = math.rsqrt %714 : vector<16x1xf32>
    %716 = vector.broadcast %715 : vector<16x1xf32> to vector<16x32xf32>
    %717 = arith.mulf %712, %716 : vector<16x32xf32>
    %718 = vector.broadcast %698 : vector<1x32xf32> to vector<16x32xf32>
    %719 = arith.mulf %717, %718 : vector<16x32xf32>
    %720 = vector.broadcast %699 : vector<1x32xf32> to vector<16x32xf32>
    %721 = arith.addf %719, %720 : vector<16x32xf32>
    %c1040 = arith.constant 1040 : index
    %c0_165 = arith.constant 0 : index
    %722 = vector.load %arg2[%c1040, %c0_165] : memref<1208x128xf32, #tpu.memory_space<vmem>>, vector<32x64xf32>
    %cst_166 = arith.constant dense<0.000000e+00> : vector<16x64xf32>
    %723 = tpu.matmul %721, %722, %cst_166 {dimension_numbers = #tpu.dot_dimension_numbers<[1], [0], [0], [1], [0, 0, 1, 1], [], []>} : vector<16x32xf32>, vector<32x64xf32>, vector<16x64xf32> -> vector<16x64xf32>
    %c1072 = arith.constant 1072 : index
    %c0_167 = arith.constant 0 : index
    %724 = vector.load %arg2[%c1072, %c0_167] : memref<1208x128xf32, #tpu.memory_space<vmem>>, vector<1x64xf32>
    %725 = vector.broadcast %724 : vector<1x64xf32> to vector<16x64xf32>
    %726 = arith.addf %723, %725 : vector<16x64xf32>
    %cst_168 = arith.constant 0.000000e+00 : f32
    %727 = vector.broadcast %cst_168 : f32 to vector<16x64xf32>
    %728 = arith.maximumf %726, %727 : vector<16x64xf32>
    %c1080 = arith.constant 1080 : index
    %c0_169 = arith.constant 0 : index
    %729 = vector.load %arg2[%c1080, %c0_169] : memref<1208x128xf32, #tpu.memory_space<vmem>>, vector<64x32xf32>
    %cst_170 = arith.constant dense<0.000000e+00> : vector<16x32xf32>
    %730 = tpu.matmul %728, %729, %cst_170 {dimension_numbers = #tpu.dot_dimension_numbers<[1], [0], [0], [1], [0, 0, 1, 1], [], []>} : vector<16x64xf32>, vector<64x32xf32>, vector<16x32xf32> -> vector<16x32xf32>
    %c1144 = arith.constant 1144 : index
    %c0_171 = arith.constant 0 : index
    %731 = vector.load %arg2[%c1144, %c0_171] : memref<1208x128xf32, #tpu.memory_space<vmem>>, vector<1x32xf32>
    %732 = vector.broadcast %731 : vector<1x32xf32> to vector<16x32xf32>
    %733 = arith.addf %730, %732 : vector<16x32xf32>
    %734 = arith.addf %721, %733 : vector<16x32xf32>
    %c1152 = arith.constant 1152 : index
    %c0_172 = arith.constant 0 : index
    %735 = vector.load %arg2[%c1152, %c0_172] : memref<1208x128xf32, #tpu.memory_space<vmem>>, vector<1x32xf32>
    %c1160 = arith.constant 1160 : index
    %c0_173 = arith.constant 0 : index
    %736 = vector.load %arg2[%c1160, %c0_173] : memref<1208x128xf32, #tpu.memory_space<vmem>>, vector<1x32xf32>
    %cst_174 = arith.constant dense<0.000000e+00> : vector<16xf32>
    %737 = vector.multi_reduction <add>, %734, %cst_174 [1] : vector<16x32xf32> to vector<16xf32>
    %738 = vector.shape_cast %737 : vector<16xf32> to vector<16x1xf32>
    %cst_175 = arith.constant 3.200000e+01 : f32
    %739 = vector.broadcast %cst_175 : f32 to vector<16x1xf32>
    %740 = arith.divf %738, %739 : vector<16x1xf32>
    %741 = vector.broadcast %740 : vector<16x1xf32> to vector<16x32xf32>
    %742 = arith.subf %734, %741 : vector<16x32xf32>
    %743 = arith.mulf %742, %742 : vector<16x32xf32>
    %cst_176 = arith.constant dense<0.000000e+00> : vector<16xf32>
    %744 = vector.multi_reduction <add>, %743, %cst_176 [1] : vector<16x32xf32> to vector<16xf32>
    %745 = vector.shape_cast %744 : vector<16xf32> to vector<16x1xf32>
    %cst_177 = arith.constant 3.200000e+01 : f32
    %746 = vector.broadcast %cst_177 : f32 to vector<16x1xf32>
    %747 = arith.divf %745, %746 : vector<16x1xf32>
    %748 = vector.broadcast %740 : vector<16x1xf32> to vector<16x32xf32>
    %749 = arith.subf %734, %748 : vector<16x32xf32>
    %cst_178 = arith.constant 9.99999974E-6 : f32
    %750 = vector.broadcast %cst_178 : f32 to vector<16x1xf32>
    %751 = arith.addf %747, %750 : vector<16x1xf32>
    %752 = math.rsqrt %751 : vector<16x1xf32>
    %753 = vector.broadcast %752 : vector<16x1xf32> to vector<16x32xf32>
    %754 = arith.mulf %749, %753 : vector<16x32xf32>
    %755 = vector.broadcast %735 : vector<1x32xf32> to vector<16x32xf32>
    %756 = arith.mulf %754, %755 : vector<16x32xf32>
    %757 = vector.broadcast %736 : vector<1x32xf32> to vector<16x32xf32>
    %758 = arith.addf %756, %757 : vector<16x32xf32>
    %c1168 = arith.constant 1168 : index
    %c0_179 = arith.constant 0 : index
    %759 = vector.load %arg2[%c1168, %c0_179] : memref<1208x128xf32, #tpu.memory_space<vmem>>, vector<32x32xf32>
    %cst_180 = arith.constant dense<0.000000e+00> : vector<16x32xf32>
    %760 = tpu.matmul %758, %759, %cst_180 {dimension_numbers = #tpu.dot_dimension_numbers<[1], [0], [0], [1], [0, 0, 1, 1], [], []>} : vector<16x32xf32>, vector<32x32xf32>, vector<16x32xf32> -> vector<16x32xf32>
    %c1200 = arith.constant 1200 : index
    %c0_181 = arith.constant 0 : index
    %761 = vector.load %arg2[%c1200, %c0_181] : memref<1208x128xf32, #tpu.memory_space<vmem>>, vector<1x32xf32>
    %762 = vector.broadcast %761 : vector<1x32xf32> to vector<16x32xf32>
    %763 = arith.addf %760, %762 : vector<16x32xf32>
    %c0_182 = arith.constant 0 : index
    %c0_183 = arith.constant 0 : index
    %764 = vector.load %arg3[%c0_182, %c0_183] : memref<16x32xf32, #tpu.memory_space<vmem>>, vector<16x32xf32>
    tpu.vector_store %arg3[%c0_182, %c0_183], %763 {strides = array<i32>} : memref<16x32xf32, #tpu.memory_space<vmem>>, vector<16x32xf32>,
    return
  }
}

</mosaic_0001>

<bundles_post_ra>
// kernel: encoder_decoder_forward.1
= control target key start
LH: loop header
LB: loop body
LE: loop exit
PB: predicated region body
PF: predicated region fallthrough
CT: control target
= control target key end

     0   :  { %8 = vsyncpa [#allocation3], 0  ;;  %s5457_s0 = inlined_call_operand.vmem [shape: f32[16,32], index: 0, kind: input, shape index: {}]   ;;  %s5458_s1 = inlined_call_operand.vmem [shape: f32[16,32], index: 1, kind: input, shape index: {}]   ;;  %s5459_s2 = inlined_call_operand.hbm [shape: f32[1208,128], index: 2, kind: input, shape index: {}]   ;;  %s5460_s3 = inlined_call_operand.hbm [shape: f32[16,32], index: 3, kind: output, shape index: {}]  }
   0x1   :  { %9 = vsyncpa [#allocation4], 0  ;;  %s18_s14 = sshll.u32 %s5459_s2, 4  ;;  %s4112_s15 = smov [#allocation2]   ;;  %s19_s14 = int_to_ptr.hbm [resolvable:$true] %s18_s14 }
   0x2   :  { %s20_s16 = sshll.u32 %s4112_s15, 4  ;;  %s4113_s17 = smov 128   ;;  %s21_s16 = int_to_ptr.vmem [resolvable:$true] %s20_s16 }
   0x3   :  { %s4114_s18 = smov 8  }
   0x4   :  { %26 = dma.hbm_to_vmem [thread:$0]  %s19_s14, 19328, %s21_s16, [#allocation3], %s4113_s17, %s4113_s17, %s4114_s18  }
   0x5   :  { %4108 = dma.done.wait [#allocation3], 19328  }
   0x6   :  { %4109 = vsyncadd [#allocation3], 4294947968  ;;  %v105_v0 = vld [vmem:[#allocation2 + $0x18] sm:$0xff]  ;;  %v104_v1 = vld [vmem:[#allocation2 + $0x10] sm:$0xff]  ;;  %vm108_vm0 = vcmask 261120   ;;  %s4115_s22 = smov 112   ;;  %v31_v25 = vlaneseq }
   0x7   :  { %127 = vmatpush.msra.mxu0 %v105_v0  ;;  %v103_v2 = vld [vmem:[#allocation2 + $0x8] sm:$0xff]  ;;  %v102_v3 = vld [vmem:[#allocation2] sm:$0xff]  ;;  %s4116_s23 = smov 120   ;;  %s4118_s24 = smov 96   ;;  %vm168_vm1 = vcmask 64512   ;;  %vm258_vm3 = vcmask 523264  }
   0x8   :  { %v4154_v4 = vld [vmem:[%s5457_s0] sm:$0xff]  ;;  %v4161_v5 = vld [vmem:[%s5457_s0 + $0x8] sm:$0xff]  ;;  %s4117_s0 = smov 104   ;;  %v4233_v26 = vshrl.u32 %v31_v25, 7  ;;  %v4235_v27 = vand.u32 127, %v31_v25  ;;  %s4120_s25 = smov 64  }
   0x9   :  { %128 = vmatpush.msra.mxu0 %v104_v1  ;;  %v3783_v6 = vld [vmem:[#allocation2 + $0x20] ss:$0 sm:$0xff]  ;;  %v4119_v33 = vmov -1e+09   ;;  %s4121_s26 = smov 16   ;;  %s4122_s27 = smov 24  }
   0xa   :  { %v42_v28 = vshra.s32 %v4233_v26, 3  ;;  %v4239_v29 = vshra.s32 %v4235_v27, 3  ;;  %v4247_v31 = vadd.s32 8, %v4233_v26  ;;  %v4266_v40 = vadd.s32 16, %v4233_v26  ;;  %s3439_s8 = sshll.u32 %s5460_s3, 4  ;;  %s3440_s8 = int_to_ptr.hbm [resolvable:$true] %s3439_s8 }
   0xb   :  { %129 = vmatpush.msra.mxu0 %v103_v2  ;;  %v4285_v48 = vadd.s32 24, %v4233_v26  ;;  %v4304_v56 = vadd.s32 32, %v4233_v26  ;;  %vm449_vm11 = vcmask 130048   ;;  %vm5461_vm12 = vcmask 195584  }
   0xc   :  { %vm4242_vm2 = vcmp.eq.s32.totalorder %v42_v28, %v4239_v29  ;;  %v43_v36 = vshra.s32 %v4247_v31, 3  ;;  %v44_v44 = vshra.s32 %v4266_v40, 3 }
   0xd   :  { %130 = vmatpush.msra.mxu0 %v102_v3  ;;  %v4252_v34 = vsel %vm4242_vm2, 0.0, %v4119_v33  ;;  %v45_v52 = vshra.s32 %v4285_v48, 3  ;;  %v46_v60 = vshra.s32 %v4304_v56, 3  ;;  %v62_v39 = vand.u32 7, %v4285_v48 }
   0xe   :  { %3452 = vmatmul.msk.f32.vlgmr.msra.gmra.mxu0 %vm108_vm0, %v4154_v4  ;;  %vm4261_vm4 = vcmp.eq.s32.totalorder %v43_v36, %v4239_v29  ;;  %vm4280_vm5 = vcmp.eq.s32.totalorder %v44_v44, %v4239_v29  ;;  %v63_v47 = vand.u32 7, %v4304_v56 }
   0xf   :  { %v4271_v42 = vsel %vm4261_vm4, 0.0, %v4119_v33  ;;  %v4290_v50 = vsel %vm4280_vm5, 0.0, %v4119_v33  ;;  %vm4299_vm6 = vcmp.eq.s32.totalorder %v45_v52, %v4239_v29  ;;  %vm4315_vm7 = vcmp.eq.s32.totalorder %v46_v60, %v4239_v29 }
  0x10   :  { %v4309_v58 = vsel %vm4299_vm6, 0.0, %v4119_v33  ;;  %v4324_v2 = vsel %vm4315_vm7, 0.0, %v4119_v33 }
  0x16   :  { %3453 = vmatmul.msk.f32.gmra.mxu0 %vm108_vm0, %v4161_v5 }
  0x8b   :  { %v132_v7 = vpop.f32.mrf.mxu0 }
  0x8c   :  { %v4165_v8 = vadd.f32 %v3783_v6, %v132_v7 }
  0x8e   :  { %141 = vrot.lane.b32.xlu2 %v4165_v8, %s4115_s22 }
  0x93   :  { %v135_v9 = vpop.f32.mrf.mxu0 }
  0x94   :  { %v4169_v10 = vadd.f32 %v3783_v6, %v135_v9  ;;  %v4330_v9 = vadd.s32 48, %v4233_v26 }
  0x96   :  { %146 = vrot.lane.b32.xlu1 %v4169_v10, %s4116_s23  ;;  %150 = vrot.lane.b32.xlu0 %v4169_v10, %s4117_s0 }
  0x97   :  { %139 = vrot.lane.b32.xlu2 %v4165_v8, %s4116_s23 }
  0x9e   :  { %148 = vrot.lane.b32.xlu0 %v4169_v10, %s4115_s22  ;;  %143 = vrot.lane.b32.xlu1 %v4165_v8, %s4117_s0 }
  0xe8   :  { %v4189_v13 = vpop.permute.xlu2 %141 }
  0xf1   :  { %v4199_v15 = vpop.permute.xlu2 %139 }
  0xf2   :  { %v3678_v52 = vpack.i.bf16 %v4165_v8, %v4199_v15 }
 0x108   :  { %v4181_v11 = vpop.permute.xlu1 %146  ;;  %v4183_v12 = vpop.permute.xlu0 %150 }
 0x109   :  { %166 = vrot.lane.b32.xlu0 %v4183_v12, %s4118_s24  ;;  %162 = vrot.lane.b32.xlu2 %v4181_v11, %s4118_s24  ;;  %v3668_v1 = vpack.i.bf16 %v4169_v10, %v4181_v11 }
 0x110   :  { %v4191_v14 = vpop.permute.xlu0 %148  ;;  %v4201_v16 = vpop.permute.xlu1 %143 }
 0x111   :  { %160 = vrot.lane.b32.xlu0 %v4169_v10, %s4118_s24  ;;  %156 = vrot.lane.b32.xlu2 %v4189_v13, %s4118_s24 }
 0x112   :  { %164 = vrot.lane.b32.xlu1 %v4191_v14, %s4118_s24 }
 0x119   :  { %154 = vrot.lane.b32.xlu0 %v4199_v15, %s4118_s24 }
 0x11a   :  { %158 = vrot.lane.b32.xlu1 %v4201_v16, %s4118_s24 }
 0x122   :  { %152 = vrot.lane.b32.xlu1 %v4165_v8, %s4118_s24 }
 0x163   :  { %v163_v19 = vpop.permute.xlu2 %162 }
 0x16b   :  { %v157_v22 = vpop.permute.xlu2 %156 }
 0x17b   :  { %v167_v17 = vpop.permute.xlu0 %166 }
 0x17c   :  { %3454 = vmatpush.xpose.msk.msra.mxu1 %vm168_vm1, %v167_v17 }
 0x183   :  { %v161_v20 = vpop.permute.xlu0 %160 }
 0x184   :  { %v165_v18 = vpop.permute.xlu1 %164 }
 0x185   :  { %3455 = vmatpush.xpose.msk.msra.mxu1 %vm168_vm1, %v165_v18 }
 0x189   :  { %3456 = vmatpush.xpose.msk.msra.mxu1 %vm168_vm1, %v163_v19 }
 0x18b   :  { %v155_v23 = vpop.permute.xlu0 %154 }
 0x18c   :  { %v159_v21 = vpop.permute.xlu1 %158 }
 0x18d   :  { %3457 = vmatpush.xpose.msk.msra.mxu1 %vm168_vm1, %v161_v20 }
 0x191   :  { %3458 = vmatpush.xpose.msk.msra.mxu1 %vm168_vm1, %v159_v21 }
 0x194   :  { %v153_v24 = vpop.permute.xlu1 %152 }
 0x195   :  { %3459 = vmatpush.xpose.msk.msra.mxu1 %vm168_vm1, %v157_v22 }
 0x199   :  { %3460 = vmatpush.xpose.msk.msra.mxu1 %vm168_vm1, %v155_v23 }
 0x19d   :  { %3461 = vmatpush.xpose.msk.msra.mxu1 %vm168_vm1, %v153_v24 }
 0x1a0   :  { %3462 = vmatmul.msk.f32.vlgmr.msra.gmra.mxu1 %vm168_vm1, %v4165_v8 }
 0x1a8   :  { %3463 = vmatmul.msk.f32.gmra.mxu1 %vm168_vm1, %v4199_v15 }
 0x1b0   :  { %3464 = vmatmul.msk.f32.gmra.mxu1 %vm168_vm1, %v4189_v13 }
 0x1b8   :  { %3465 = vmatmul.msk.f32.gmra.mxu1 %vm168_vm1, %v4201_v16 }
 0x1c0   :  { %3466 = vmatmul.msk.f32.gmra.mxu1 %vm168_vm1, %v4169_v10  ;;  %v48_v10 = vshra.s32 %v4330_v9, 3 }
 0x1c2   :  { %vm4336_vm8 = vcmp.eq.s32.totalorder %v48_v10, %v4239_v29 }
 0x1c3   :  { %v4344_v20 = vsel %vm4336_vm8, 0.0, %v4119_v33 }
 0x1c8   :  { %3467 = vmatmul.msk.f32.gmra.mxu1 %vm168_vm1, %v4181_v11  ;;  %v3663_v11 = vpack.i.bf16 %v4191_v14, %v4183_v12 }
 0x1d0   :  { %3468 = vmatmul.msk.f32.gmra.mxu1 %vm168_vm1, %v4191_v14  ;;  %v4352_v14 = vadd.s32 40, %v4233_v26 }
 0x1d2   :  { %v47_v23 = vshra.s32 %v4352_v14, 3  ;;  %v64_v18 = vand.u32 7, %v4352_v14 }
 0x1d4   :  { %vm4356_vm9 = vcmp.eq.s32.totalorder %v47_v23, %v4239_v29 }
 0x1d5   :  { %v4363_v28 = vsel %vm4356_vm9, 0.0, %v4119_v33 }
 0x1d8   :  { %3469 = vmatmul.msk.f32.gmra.mxu1 %vm168_vm1, %v4183_v12 }
 0x21d   :  { %v218_v32 = vpop.f32.mrf.mxu1 }
 0x21e   :  { %v242_v35 = vmul.f32 0.35355338, %v218_v32  ;;  %v4366_v32 = vadd.s32 56, %v4233_v26 }
 0x220   :  { %v4256_v37 = vadd.f32 %v242_v35, %v4252_v34  ;;  %v49_v36 = vshra.s32 %v4366_v32, 3 }
 0x222   :  { %v259_v38 = vsel %vm258_vm3, %v4256_v37, -inf  ;;  %vm4375_vm10 = vcmp.eq.s32.totalorder %v49_v36, %v4239_v29 }
 0x223   :  { %260 = vmax.xlane.f32.xlu2 %v259_v38 }
 0x225   :  { %v221_v41 = vpop.f32.mrf.mxu1 }
 0x226   :  { %v243_v43 = vmul.f32 0.35355338, %v221_v41 }
 0x228   :  { %v4275_v45 = vadd.f32 %v243_v43, %v4271_v42 }
 0x22a   :  { %v262_v46 = vsel %vm258_vm3, %v4275_v45, -inf }
 0x22b   :  { %263 = vmax.xlane.f32.xlu0 %v262_v46  ;;  %v4382_v46 = vsel %vm4375_vm10, 0.0, %v4119_v33 }
 0x22d   :  { %v224_v49 = vpop.f32.mrf.mxu1 }
 0x22e   :  { %v244_v51 = vmul.f32 0.35355338, %v224_v49 }
 0x230   :  { %v4294_v53 = vadd.f32 %v244_v51, %v4290_v50 }
 0x232   :  { %v265_v54 = vsel %vm258_vm3, %v4294_v53, -inf }
 0x233   :  { %266 = vmax.xlane.f32.xlu1 %v265_v54 }
 0x235   :  { %v227_v57 = vpop.f32.mrf.mxu1 }
 0x236   :  { %v245_v59 = vmul.f32 0.35355338, %v227_v57 }
 0x238   :  { %v253_v61 = vadd.f32 %v245_v59, %v4309_v58 }
 0x23a   :  { %v268_v62 = vsel %vm258_vm3, %v253_v61, -inf }
 0x23b   :  { %269 = vmax.xlane.f32.xlu2 %v268_v62 }
 0x23d   :  { %v230_v0 = vpop.f32.mrf.mxu1 }
 0x23e   :  { %v246_v3 = vmul.f32 0.35355338, %v230_v0 }
 0x23f   :  { %3669 = vrot.lane.b32.xlu0 %v3668_v1, %s4120_s25 }
 0x240   :  { %v254_v6 = vadd.f32 %v246_v3, %v4324_v2 }
 0x242   :  { %v271_v7 = vsel %vm258_vm3, %v254_v6, -inf }
 0x243   :  { %272 = vmax.xlane.f32.xlu2 %v271_v7 }
 0x245   :  { %v233_v17 = vpop.f32.mrf.mxu1 }
 0x246   :  { %v247_v25 = vmul.f32 0.35355338, %v233_v17 }
 0x248   :  { %v4369_v35 = vadd.f32 %v247_v25, %v4363_v28 }
 0x24a   :  { %v274_v38 = vsel %vm258_vm3, %v4369_v35, -inf }
 0x24c   :  { %3664 = vrot.lane.b32.xlu1 %v3663_v11, %s4120_s25 }
 0x24d   :  { %v236_v19 = vpop.f32.mrf.mxu1 }
 0x24e   :  { %v248_v21 = vmul.f32 0.35355338, %v236_v19 }
 0x250   :  { %v4347_v22 = vadd.f32 %v248_v21, %v4344_v20  ;;  %v3673_v21 = vpack.i.bf16 %v4189_v13, %v4201_v16 }
 0x252   :  { %v277_v12 = vsel %vm258_vm3, %v4347_v22, -inf }
 0x253   :  { %278 = vmax.xlane.f32.xlu2 %v277_v12 }
 0x255   :  { %v239_v41 = vpop.f32.mrf.mxu1 }
 0x256   :  { %v249_v44 = vmul.f32 0.35355338, %v239_v41 }
 0x258   :  { %v4385_v49 = vadd.f32 %v249_v44, %v4382_v46 }
 0x25a   :  { %v280_v51 = vsel %vm258_vm3, %v4385_v49, -inf }
 0x269   :  { %275 = vmax.xlane.f32.xlu0 %v274_v38 }
 0x276   :  { %281 = vmax.xlane.f32.xlu1 %v280_v51 }
 0x27d   :  { %3679 = vrot.lane.b32.xlu0 %v3678_v52, %s4120_s25 }
 0x296   :  { %v261_v29 = vpop.xlane.xlu2 %260 }
 0x297   :  { %v283_v54 = vsub.f32 %v4256_v37, %v261_v29 }
 0x299   :  { %v291_v57 = vmul.f32 1.442695, %v283_v54 }
 0x29b   :  { %3826 = vpow2.f32 %v291_v57 }
 0x29e   :  { %v264_v59 = vpop.xlane.xlu0 %263 }
 0x29f   :  { %v284_v60 = vsub.f32 %v4275_v45, %v264_v59 }
 0x2a1   :  { %v4394_v62 = vpop.eup %3826  ;;  %v293_v0 = vmul.f32 1.442695, %v284_v60 }
 0x2a2   :  { %v307_v1 = vsel %vm258_vm3, %v4394_v62, 0.0 }
 0x2a3   :  { %3828 = vpow2.f32 %v293_v0  ;;  %308 = vadd.xlane.f32.xlu2 %v307_v1 }
 0x2a6   :  { %v267_v17 = vpop.xlane.xlu1 %266 }
 0x2a7   :  { %v285_v29 = vsub.f32 %v4294_v53, %v267_v17 }
 0x2a9   :  { %v4398_v3 = vpop.eup %3828  ;;  %v295_v57 = vmul.f32 1.442695, %v285_v29 }
 0x2aa   :  { %v310_v8 = vsel %vm258_vm3, %v4398_v3, 0.0 }
 0x2ab   :  { %311 = vadd.xlane.f32.xlu0 %v310_v8 }
 0x2ae   :  { %v270_v15 = vpop.xlane.xlu2 %269 }
 0x2af   :  { %v286_v37 = vsub.f32 %v253_v61, %v270_v15 }
 0x2b1   :  { %v297_v7 = vmul.f32 1.442695, %v286_v37  ;;  %v3670_v25 = vpop.permute.xlu0 %3669 }
 0x2b2   :  { %v3671_v13 = vunpack.i.l.bf16 %v3670_v25  ;;  %v3672_v16 = vunpack.i.h.bf16 %v3670_v25 }
 0x2b3   :  { %3830 = vpow2.f32 %v297_v7 }
 0x2b6   :  { %v273_v45 = vpop.xlane.xlu2 %272 }
 0x2b7   :  { %v287_v10 = vsub.f32 %v254_v6, %v273_v45 }
 0x2b9   :  { %v4402_v11 = vpop.eup %3830  ;;  %v299_v19 = vmul.f32 1.442695, %v287_v10 }
 0x2ba   :  { %v316_v12 = vsel %vm258_vm3, %v4402_v11, 0.0 }
 0x2bb   :  { %3832 = vpow2.f32 %v299_v19  ;;  %3674 = vrot.lane.b32.xlu2 %v3673_v21, %s4120_s25  ;;  %317 = vadd.xlane.f32.xlu1 %v316_v12 }
 0x2be   :  { %v3665_v23 = vpop.permute.xlu1 %3664 }
 0x2bf   :  { %v3666_v61 = vunpack.i.l.bf16 %v3665_v23  ;;  %v3667_v6 = vunpack.i.h.bf16 %v3665_v23 }
 0x2c1   :  { %v4409_v36 = vpop.eup %3832  ;;  %403 = vmatpush.msra.mxu2 %v3666_v61 }
 0x2c2   :  { %v319_v38 = vsel %vm258_vm3, %v4409_v36, 0.0 }
 0x2c3   :  { %404 = vmatpush.msra.mxu2 %v3667_v6  ;;  %320 = vadd.xlane.f32.xlu1 %v319_v38 }
 0x2c5   :  { %405 = vmatpush.msra.mxu2 %v3671_v13 }
 0x2c6   :  { %v279_v41 = vpop.xlane.xlu2 %278 }
 0x2c7   :  { %v289_v44 = vsub.f32 %v4347_v22, %v279_v41  ;;  %406 = vmatpush.msra.mxu2 %v3672_v16 }
 0x2c9   :  { %v303_v51 = vmul.f32 1.442695, %v289_v44 }
 0x2cb   :  { %3834 = vpow2.f32 %v303_v51 }
 0x2cc   :  { %3836 = vpow2.f32 %v295_v57 }
 0x2d1   :  { %v4414_v52 = vpop.eup %3834 }
 0x2d2   :  { %v325_v54 = vsel %vm258_vm3, %v4414_v52, 0.0  ;;  %v3837_v1 = vpop.eup %3836 }
 0x2d3   :  { %326 = vadd.xlane.f32.xlu1 %v325_v54  ;;  %v313_v22 = vsel %vm258_vm3, %v3837_v1, 0.0 }
 0x2dc   :  { %v276_v59 = vpop.xlane.xlu0 %275 }
 0x2dd   :  { %v288_v60 = vsub.f32 %v4369_v35, %v276_v59 }
 0x2df   :  { %v301_v0 = vmul.f32 1.442695, %v288_v60 }
 0x2e1   :  { %3838 = vpow2.f32 %v301_v0 }
 0x2e4   :  { %314 = vadd.xlane.f32.xlu2 %v313_v22 }
 0x2e7   :  { %v3839_v8 = vpop.eup %3838 }
 0x2e8   :  { %v322_v15 = vsel %vm258_vm3, %v3839_v8, 0.0 }
 0x2e9   :  { %323 = vadd.xlane.f32.xlu0 %v322_v15  ;;  %v282_v53 = vpop.xlane.xlu1 %281 }
 0x2ea   :  { %v290_v37 = vsub.f32 %v4385_v49, %v282_v53 }
 0x2ec   :  { %v305_v7 = vmul.f32 1.442695, %v290_v37 }
 0x2ee   :  { %3840 = vpow2.f32 %v305_v7 }
 0x2ef   :  { %v3680_v10 = vpop.permute.xlu0 %3679 }
 0x2f0   :  { %v3681_v25 = vunpack.i.l.bf16 %v3680_v10  ;;  %v3682_v49 = vunpack.i.h.bf16 %v3680_v10 }
 0x2f4   :  { %v3841_v17 = vpop.eup %3840 }
 0x2f5   :  { %v328_v45 = vsel %vm258_vm3, %v3841_v17, 0.0 }
 0x2f6   :  { %329 = vadd.xlane.f32.xlu0 %v328_v45 }
 0x316   :  { %v309_v35 = vpop.xlane.xlu2 %308 }
 0x317   :  { %3842 = vrcp.f32 %v309_v35 }
 0x31d   :  { %v3843_v61 = vpop.eup %3842 }
 0x31e   :  { %v3675_v19 = vpop.permute.xlu2 %3674  ;;  %v312_v23 = vpop.xlane.xlu0 %311  ;;  %v339_v6 = vmul.f32 %v3843_v61, %v4394_v62 }
 0x31f   :  { %v3676_v21 = vunpack.i.l.bf16 %v3675_v19  ;;  %v3677_v12 = vunpack.i.h.bf16 %v3675_v19  ;;  %3844 = vrcp.f32 %v312_v23  ;;  %v471_v19 = vld [vmem:[#allocation2 + $0x40] sm:$0xff]  ;;  %v468_v23 = vld [vmem:[#allocation2 + $0x28] sm:$0xff] }
 0x320   :  { %492 = vmatpush.msra.mxu3 %v471_v19 }
 0x321   :  { %407 = vmatpush.msra.mxu2 %v3676_v21  ;;  %v470_v21 = vld [vmem:[#allocation2 + $0x38] sm:$0xff] }
 0x322   :  { %493 = vmatpush.msra.mxu3 %v470_v21 }
 0x323   :  { %408 = vmatpush.msra.mxu2 %v3677_v12  ;;  %v469_v12 = vld [vmem:[#allocation2 + $0x30] sm:$0xff] }
 0x324   :  { %494 = vmatpush.msra.mxu3 %v469_v12 }
 0x325   :  { %409 = vmatpush.msra.mxu2 %v3681_v25  ;;  %v3845_v38 = vpop.eup %3844 }
 0x326   :  { %v340_v13 = vmul.f32 %v3845_v38, %v4398_v3  ;;  %495 = vmatpush.msra.mxu3 %v468_v23 }
 0x327   :  { %410 = vmatpush.msra.mxu2 %v3682_v49 }
 0x328   :  { %3470 = vmatmul.msk.f32.vlgmr.msra.gmra.mxu2 %vm258_vm3, %v339_v6 }
 0x32e   :  { %v318_v41 = vpop.xlane.xlu1 %317 }
 0x330   :  { %3471 = vmatmul.msk.f32.gmra.mxu2 %vm258_vm3, %v340_v13 }
 0x336   :  { %v321_v29 = vpop.xlane.xlu1 %320 }
 0x346   :  { %v327_v60 = vpop.xlane.xlu1 %326 }
 0x357   :  { %v315_v16 = vpop.xlane.xlu2 %314 }
 0x358   :  { %3846 = vrcp.f32 %v315_v16 }
 0x359   :  { %3848 = vrcp.f32 %v318_v41 }
 0x35a   :  { %3850 = vrcp.f32 %v321_v29 }
 0x35c   :  { %v324_v57 = vpop.xlane.xlu0 %323 }
 0x35d   :  { %3852 = vrcp.f32 %v324_v57 }
 0x35e   :  { %v3847_v44 = vpop.eup %3846  ;;  %3854 = vrcp.f32 %v327_v60 }
 0x35f   :  { %v341_v51 = vmul.f32 %v3847_v44, %v3837_v1  ;;  %v3849_v54 = vpop.eup %3848 }
 0x360   :  { %v342_v62 = vmul.f32 %v3849_v54, %v4402_v11  ;;  %v3851_v59 = vpop.eup %3850 }
 0x361   :  { %3472 = vmatmul.msk.f32.gmra.mxu2 %vm258_vm3, %v341_v51  ;;  %v343_v3 = vmul.f32 %v3851_v59, %v4409_v36 }
 0x363   :  { %v3853_v0 = vpop.eup %3852 }
 0x364   :  { %v344_v1 = vmul.f32 %v3853_v0, %v3839_v8  ;;  %v3855_v15 = vpop.eup %3854 }
 0x365   :  { %v345_v11 = vmul.f32 %v3855_v15, %v4414_v52 }
 0x369   :  { %3473 = vmatmul.msk.f32.gmra.mxu2 %vm258_vm3, %v342_v62  ;;  %v330_v22 = vpop.xlane.xlu0 %329  ;;  %v3784_v62 = vld [vmem:[#allocation2 + $0x48] ss:$0 sm:$0xff] }
 0x36a   :  { %3856 = vrcp.f32 %v330_v22 }
 0x370   :  { %v3857_v53 = vpop.eup %3856 }
 0x371   :  { %3474 = vmatmul.msk.f32.gmra.mxu2 %vm258_vm3, %v343_v3  ;;  %v346_v37 = vmul.f32 %v3857_v53, %v3841_v17 }
 0x379   :  { %3475 = vmatmul.msk.f32.gmra.mxu2 %vm258_vm3, %v344_v1 }
 0x381   :  { %3476 = vmatmul.msk.f32.gmra.mxu2 %vm258_vm3, %v345_v11  ;;  %v4123_v11 = vmov 32.0  }
 0x382   :  { %3858 = vrcp.f32 %v4123_v11  ;;  %v606_v11 = vld [vmem:[#allocation2 + $0xb0] sm:$0xff] }
 0x388   :  { %v3859_v53 = vpop.eup %3858 }
 0x389   :  { %3477 = vmatmul.msk.f32.gmra.mxu2 %vm258_vm3, %v346_v37  ;;  %v514_v37 = vmul.f32 32.0, %v3859_v53  ;;  %vm518_vm13 = vweird.f32 %v3859_v53 }
 0x3ab   :  { %v412_v36 = vpop.f32.mrf.mxu2 }
 0x3b3   :  { %v415_v7 = vpop.f32.mrf.mxu2 }
 0x3b4   :  { %437 = vrot.lane.b32.xlu2 %v415_v7, %s4114_s18 }
 0x3e4   :  { %v418_v45 = vpop.f32.mrf.mxu2 }
 0x3e5   :  { %441 = vrot.lane.b32.xlu1 %v418_v45, %s4121_s26 }
 0x3ec   :  { %v421_v8 = vpop.f32.mrf.mxu2 }
 0x3ed   :  { %445 = vrot.lane.b32.xlu0 %v421_v8, %s4122_s27 }
 0x3f4   :  { %v424_v35 = vpop.f32.mrf.mxu2 }
 0x3fc   :  { %v427_v52 = vpop.f32.mrf.mxu2 }
 0x3fd   :  { %454 = vrot.lane.b32.xlu2 %v427_v52, %s4114_s18 }
 0x404   :  { %v430_v10 = vpop.f32.mrf.mxu2 }
 0x405   :  { %458 = vrot.lane.b32.xlu0 %v430_v10, %s4121_s26 }
 0x40c   :  { %v433_v17 = vpop.f32.mrf.mxu2 }
 0x40d   :  { %462 = vrot.lane.b32.xlu1 %v433_v17, %s4122_s27 }
 0x40e   :  { %v438_v61 = vpop.permute.xlu2 %437 }
 0x40f   :  { %v448_v49 = vsel %vm168_vm1, %v412_v36, %v438_v61  ;;  %v515_v36 = vsub.f32 1.0, %v514_v37  ;;  %v567_v61 = vld [vmem:[#allocation2 + $0x78] sm:$0xff] }
 0x410   :  { %588 = vmatpush.msrb.mxu0 %v567_v61 }
 0x411   :  { %v516_v7 = vmul.f32 %v3859_v53, %v515_v36  ;;  %v605_v36 = vld [vmem:[#allocation2 + $0xa8] sm:$0xff] }
 0x413   :  { %v517_v45 = vadd.f32 %v3859_v53, %v516_v7 }
 0x415   :  { %v4455_v8 = vsel %vm518_vm13, %v3859_v53, %v517_v45  ;;  %v604_v45 = vld [vmem:[#allocation2 + $0xa0] sm:$0xff] }
 0x457   :  { %v442_v25 = vpop.permute.xlu1 %441  ;;  %v455_v16 = vpop.permute.xlu2 %454 }
 0x458   :  { %v450_v6 = vsel %vm449_vm11, %v448_v49, %v442_v25  ;;  %v465_v44 = vsel %vm168_vm1, %v424_v35, %v455_v16  ;;  %v566_v25 = vld [vmem:[#allocation2 + $0x70] sm:$0xff]  ;;  %v565_v49 = vld [vmem:[#allocation2 + $0x68] sm:$0xff] }
 0x459   :  { %589 = vmatpush.msrb.mxu0 %v566_v25  ;;  %v603_v25 = vld [vmem:[#allocation2 + $0x98] sm:$0xff] }
 0x45b   :  { %590 = vmatpush.msrb.mxu0 %v565_v49  ;;  %v602_v49 = vld [vmem:[#allocation2 + $0x90] sm:$0xff] }
 0x45f   :  { %v446_v38 = vpop.permute.xlu0 %445 }
 0x460   :  { %v452_v13 = vsel %vm5461_vm12, %v450_v6, %v446_v38  ;;  %v564_v6 = vld [vmem:[#allocation2 + $0x60] sm:$0xff] }
 0x461   :  { %3478 = vmatmul.msk.f32.vlgmr.msra.gmra.mxu3 %vm108_vm0, %v452_v13  ;;  %591 = vmatpush.msrb.mxu0 %v564_v6  ;;  %v601_v6 = vld [vmem:[#allocation2 + $0x88] sm:$0xff] }
 0x477   :  { %v459_v41 = vpop.permute.xlu0 %458 }
 0x478   :  { %v466_v51 = vsel %vm449_vm11, %v465_v44, %v459_v41 }
 0x47f   :  { %v463_v29 = vpop.permute.xlu1 %462 }
 0x480   :  { %v467_v54 = vsel %vm5461_vm12, %v466_v51, %v463_v29 }
 0x481   :  { %3479 = vmatmul.msk.f32.gmra.mxu3 %vm108_vm0, %v467_v54 }
 0x4e4   :  { %v497_v57 = vpop.f32.mrf.mxu3 }
 0x4e5   :  { %v498_v59 = vadd.f32 %v3784_v62, %v497_v57  ;;  %v3785_v57 = vld [vmem:[#allocation2 + $0x50] ss:$0 sm:$0xff] }
 0x4e7   :  { %v503_v3 = vadd.f32 %v498_v59, %v4154_v4 }
 0x4e9   :  { %v507_v60 = vsel %vm108_vm0, %v503_v3, 0.0 }
 0x4ea   :  { %508 = vadd.xlane.f32.xlu2 %v507_v60  ;;  %v3786_v60 = vld [vmem:[#allocation2 + $0x58] ss:$0 sm:$0xff] }
 0x504   :  { %v500_v0 = vpop.f32.mrf.mxu3 }
 0x505   :  { %v501_v1 = vadd.f32 %v3784_v62, %v500_v0 }
 0x507   :  { %v504_v22 = vadd.f32 %v501_v1, %v4161_v5 }
 0x509   :  { %v510_v15 = vsel %vm108_vm0, %v504_v22, 0.0 }
 0x50a   :  { %511 = vadd.xlane.f32.xlu0 %v510_v15  ;;  %v607_v15 = vld [vmem:[#allocation2 + $0xb8] sm:$0xff] }
 0x55d   :  { %v509_v4 = vpop.xlane.xlu2 %508 }
 0x55e   :  { %v520_v35 = vmul.f32 %v4455_v8, %v509_v4 }
 0x560   :  { %v522_v52 = vsub.f32 %v503_v3, %v520_v35 }
 0x562   :  { %v524_v10 = vmul.f32 %v522_v52, %v522_v52 }
 0x564   :  { %v526_v5 = vsel %vm108_vm0, %v524_v10, 0.0 }
 0x565   :  { %527 = vadd.xlane.f32.xlu1 %v526_v5 }
 0x57d   :  { %v512_v17 = vpop.xlane.xlu0 %511 }
 0x57e   :  { %v521_v19 = vmul.f32 %v4455_v8, %v512_v17 }
 0x580   :  { %v523_v21 = vsub.f32 %v504_v22, %v521_v19  ;;  %v608_v22 = vld [vmem:[#allocation2 + $0xc0] sm:$0xff] }
 0x581   :  { %625 = vmatpush.msrb.mxu3 %v608_v22 }
 0x582   :  { %v525_v12 = vmul.f32 %v523_v21, %v523_v21 }
 0x583   :  { %626 = vmatpush.msrb.mxu3 %v607_v15 }
 0x584   :  { %v529_v23 = vsel %vm108_vm0, %v525_v12, 0.0 }
 0x585   :  { %530 = vadd.xlane.f32.xlu2 %v529_v23  ;;  %627 = vmatpush.msrb.mxu3 %v606_v11 }
 0x587   :  { %628 = vmatpush.msrb.mxu3 %v605_v36 }
 0x589   :  { %629 = vmatpush.msrb.mxu3 %v604_v45 }
 0x58b   :  { %630 = vmatpush.msrb.mxu3 %v603_v25 }
 0x58d   :  { %631 = vmatpush.msrb.mxu3 %v602_v49 }
 0x58f   :  { %632 = vmatpush.msrb.mxu3 %v601_v6 }
 0x5d8   :  { %v528_v38 = vpop.xlane.xlu1 %527 }
 0x5d9   :  { %v532_v13 = vmul.f32 %v528_v38, %v4455_v8  ;;  %v3787_v38 = vld [vmem:[#allocation2 + $0x80] ss:$0 sm:$0xff] }
 0x5db   :  { %v534_v16 = vadd.f32 1e-05, %v532_v13 }
 0x5dd   :  { %3860 = vrsqrt.f32 %v534_v16  ;;  %vm542_vm15 = vweird.f32 %v534_v16 }
 0x5e3   :  { %v3861_v41 = vpop.eup %3860 }
 0x5e4   :  { %v537_v44 = vmul.f32 %v3861_v41, %v534_v16  ;;  %vm543_vm14 = vweird.f32 %v3861_v41 }
 0x5e5   :  { %vm544_vm13 = vmor %vm542_vm15, %vm543_vm14 }
 0x5e6   :  { %v538_v51 = vmul.f32 %v3861_v41, %v537_v44 }
 0x5e8   :  { %v539_v29 = vmul.f32 0.5, %v538_v51 }
 0x5ea   :  { %v540_v54 = vsub.f32 1.5, %v539_v29 }
 0x5ec   :  { %v541_v62 = vmul.f32 %v3861_v41, %v540_v54 }
 0x5ee   :  { %v545_v59 = vsel %vm544_vm13, %v3861_v41, %v541_v62 }
 0x5ef   :  { %v556_v3 = vmul.f32 %v545_v59, %v522_v52 }
 0x5f1   :  { %v559_v0 = vmul.f32 %v3785_v57, %v556_v3 }
 0x5f3   :  { %v562_v1 = vadd.f32 %v3786_v60, %v559_v0 }
 0x5f5   :  { %3480 = vmatmul.msk.f32.vlgmr.msrb.gmra.mxu0 %vm108_vm0, %v562_v1 }
 0x5f8   :  { %v531_v53 = vpop.xlane.xlu2 %530 }
 0x5f9   :  { %v533_v37 = vmul.f32 %v531_v53, %v4455_v8 }
 0x5fb   :  { %v535_v7 = vadd.f32 1e-05, %v533_v37 }
 0x5fd   :  { %3862 = vrsqrt.f32 %v535_v7  ;;  %vm552_vm15 = vweird.f32 %v535_v7 }
 0x603   :  { %v3863_v4 = vpop.eup %3862 }
 0x604   :  { %v547_v35 = vmul.f32 %v3863_v4, %v535_v7  ;;  %vm553_vm14 = vweird.f32 %v3863_v4 }
 0x605   :  { %vm554_vm13 = vmor %vm552_vm15, %vm553_vm14 }
 0x606   :  { %v548_v52 = vmul.f32 %v3863_v4, %v547_v35 }
 0x608   :  { %v549_v10 = vmul.f32 0.5, %v548_v52  ;;  %v697_v52 = vld [vmem:[#allocation2 + $0xf8] sm:$0xff] }
 0x609   :  { %718 = vmatpush.msra.mxu0 %v697_v52 }
 0x60a   :  { %v550_v5 = vsub.f32 1.5, %v549_v10  ;;  %v696_v10 = vld [vmem:[#allocation2 + $0xf0] sm:$0xff] }
 0x60b   :  { %719 = vmatpush.msra.mxu0 %v696_v10 }
 0x60c   :  { %v551_v17 = vmul.f32 %v3863_v4, %v550_v5  ;;  %v695_v5 = vld [vmem:[#allocation2 + $0xe8] sm:$0xff] }
 0x60d   :  { %720 = vmatpush.msra.mxu0 %v695_v5 }
 0x60e   :  { %v555_v19 = vsel %vm554_vm13, %v3863_v4, %v551_v17  ;;  %v694_v17 = vld [vmem:[#allocation2 + $0xe0] sm:$0xff] }
 0x60f   :  { %v557_v12 = vmul.f32 %v555_v19, %v523_v21  ;;  %v3788_v21 = vld [vmem:[#allocation2 + $0xc8] ss:$0 sm:$0xff]  ;;  %721 = vmatpush.msra.mxu0 %v694_v17 }
 0x611   :  { %v560_v23 = vmul.f32 %v3785_v57, %v557_v12 }
 0x613   :  { %v563_v61 = vadd.f32 %v3786_v60, %v560_v23 }
 0x615   :  { %3481 = vmatmul.msk.f32.gmra.mxu0 %vm108_vm0, %v563_v61 }
 0x672   :  { %v593_v13 = vpop.f32.mrf.mxu0 }
 0x673   :  { %v594_v16 = vadd.f32 %v3787_v38, %v593_v13 }
 0x675   :  { %v599_v41 = vmax.f32 %v594_v16, 0.0  ;;  %v3789_v16 = vld [vmem:[#allocation2 + $0xd0] ss:$0 sm:$0xff] }
 0x677   :  { %3482 = vmatmul.msk.f32.vlgmr.msrb.gmra.mxu3 %vm258_vm3, %v599_v41 }
 0x692   :  { %v596_v44 = vpop.f32.mrf.mxu0 }
 0x693   :  { %v597_v51 = vadd.f32 %v3787_v38, %v596_v44 }
 0x695   :  { %v600_v29 = vmax.f32 %v597_v51, 0.0  ;;  %v3790_v51 = vld [vmem:[#allocation2 + $0xd8] ss:$0 sm:$0xff] }
 0x697   :  { %3483 = vmatmul.msk.f32.gmra.mxu3 %vm258_vm3, %v600_v29 }
 0x6fa   :  { %v634_v54 = vpop.f32.mrf.mxu3 }
 0x6fb   :  { %v635_v62 = vadd.f32 %v3788_v21, %v634_v54 }
 0x6fd   :  { %v640_v57 = vadd.f32 %v635_v62, %v562_v1 }
 0x6ff   :  { %v644_v59 = vsel %vm108_vm0, %v640_v57, 0.0 }
 0x700   :  { %645 = vadd.xlane.f32.xlu0 %v644_v59 }
 0x71a   :  { %v637_v3 = vpop.f32.mrf.mxu3 }
 0x71b   :  { %v638_v60 = vadd.f32 %v3788_v21, %v637_v3 }
 0x71d   :  { %v641_v0 = vadd.f32 %v638_v60, %v563_v61 }
 0x71f   :  { %v647_v22 = vsel %vm108_vm0, %v641_v0, 0.0 }
 0x720   :  { %648 = vadd.xlane.f32.xlu1 %v647_v22 }
 0x773   :  { %v646_v15 = vpop.xlane.xlu0 %645 }
 0x774   :  { %v650_v11 = vmul.f32 %v646_v15, %v4455_v8 }
 0x776   :  { %v652_v53 = vsub.f32 %v640_v57, %v650_v11 }
 0x778   :  { %v654_v37 = vmul.f32 %v652_v53, %v652_v53 }
 0x77a   :  { %v656_v36 = vsel %vm108_vm0, %v654_v37, 0.0 }
 0x77b   :  { %657 = vadd.xlane.f32.xlu2 %v656_v36 }
 0x793   :  { %v649_v7 = vpop.xlane.xlu1 %648 }
 0x794   :  { %v651_v1 = vmul.f32 %v649_v7, %v4455_v8 }
 0x796   :  { %v653_v45 = vsub.f32 %v641_v0, %v651_v1  ;;  %v3791_v1 = vld [vmem:[#allocation2 + $0x100] ss:$0 sm:$0xff] }
 0x798   :  { %v655_v4 = vmul.f32 %v653_v45, %v653_v45 }
 0x79a   :  { %v659_v35 = vsel %vm108_vm0, %v655_v4, 0.0 }
 0x79b   :  { %660 = vadd.xlane.f32.xlu0 %v659_v35 }
 0x7ee   :  { %v658_v19 = vpop.xlane.xlu2 %657 }
 0x7ef   :  { %v662_v12 = vmul.f32 %v658_v19, %v4455_v8 }
 0x7f1   :  { %v664_v23 = vadd.f32 1e-05, %v662_v12 }
 0x7f3   :  { %3864 = vrsqrt.f32 %v664_v23  ;;  %vm672_vm15 = vweird.f32 %v664_v23 }
 0x7f9   :  { %v3865_v61 = vpop.eup %3864 }
 0x7fa   :  { %v667_v25 = vmul.f32 %v3865_v61, %v664_v23  ;;  %vm673_vm14 = vweird.f32 %v3865_v61 }
 0x7fb   :  { %vm674_vm13 = vmor %vm672_vm15, %vm673_vm14 }
 0x7fc   :  { %v668_v49 = vmul.f32 %v3865_v61, %v667_v25 }
 0x7fe   :  { %v669_v6 = vmul.f32 0.5, %v668_v49 }
 0x800   :  { %v670_v38 = vsub.f32 1.5, %v669_v6 }
 0x802   :  { %v671_v13 = vmul.f32 %v3865_v61, %v670_v38 }
 0x804   :  { %v675_v41 = vsel %vm674_vm13, %v3865_v61, %v671_v13 }
 0x805   :  { %v686_v44 = vmul.f32 %v675_v41, %v652_v53 }
 0x807   :  { %v689_v29 = vmul.f32 %v3789_v16, %v686_v44 }
 0x809   :  { %v4474_v21 = vadd.f32 %v3790_v51, %v689_v29 }
 0x80b   :  { %3484 = vmatmul.msk.f32.vlgmr.msra.gmra.mxu0 %vm108_vm0, %v4474_v21 }
 0x80e   :  { %v661_v54 = vpop.xlane.xlu0 %660 }
 0x80f   :  { %v663_v62 = vmul.f32 %v661_v54, %v4455_v8 }
 0x811   :  { %v665_v57 = vadd.f32 1e-05, %v663_v62 }
 0x813   :  { %3866 = vrsqrt.f32 %v665_v57  ;;  %vm682_vm15 = vweird.f32 %v665_v57 }
 0x819   :  { %v3867_v59 = vpop.eup %3866 }
 0x81a   :  { %v677_v3 = vmul.f32 %v3867_v59, %v665_v57  ;;  %vm683_vm14 = vweird.f32 %v3867_v59 }
 0x81b   :  { %vm684_vm13 = vmor %vm682_vm15, %vm683_vm14 }
 0x81c   :  { %v678_v60 = vmul.f32 %v3867_v59, %v677_v3 }
 0x81e   :  { %v679_v0 = vmul.f32 0.5, %v678_v60 }
 0x820   :  { %v680_v22 = vsub.f32 1.5, %v679_v0 }
 0x822   :  { %v681_v15 = vmul.f32 %v3867_v59, %v680_v22 }
 0x824   :  { %v685_v11 = vsel %vm684_vm13, %v3867_v59, %v681_v15 }
 0x825   :  { %v687_v53 = vmul.f32 %v685_v11, %v653_v45 }
 0x827   :  { %v690_v37 = vmul.f32 %v3789_v16, %v687_v53 }
 0x829   :  { %v4479_v36 = vadd.f32 %v3790_v51, %v690_v37 }
 0x82b   :  { %3485 = vmatmul.msk.f32.gmra.mxu0 %vm108_vm0, %v4479_v36 }
 0x888   :  { %v723_v7 = vpop.f32.mrf.mxu0 }
 0x889   :  { %v4491_v45 = vadd.f32 %v3791_v1, %v723_v7 }
 0x8a8   :  { %v726_v4 = vpop.f32.mrf.mxu0 }
 0x8a9   :  { %v4483_v35 = vadd.f32 %v3791_v1, %v726_v4 }
 0x8ab   :  { %737 = vrot.lane.b32.xlu0 %v4483_v35, %s4116_s23  ;;  %739 = vrot.lane.b32.xlu2 %v4483_v35, %s4115_s22 }
 0x8ac   :  { %741 = vrot.lane.b32.xlu1 %v4483_v35, %s4117_s0 }
 0x8b3   :  { %732 = vrot.lane.b32.xlu0 %v4491_v45, %s4115_s22  ;;  %730 = vrot.lane.b32.xlu2 %v4491_v45, %s4116_s23 }
 0x8b4   :  { %734 = vrot.lane.b32.xlu1 %v4491_v45, %s4117_s0 }
 0x905   :  { %v4499_v52 = vpop.permute.xlu2 %739 }
 0x906   :  { %755 = vrot.lane.b32.xlu0 %v4499_v52, %s4118_s24 }
 0x90d   :  { %v4521_v12 = vpop.permute.xlu2 %730 }
 0x91d   :  { %v4503_v10 = vpop.permute.xlu0 %737 }
 0x91e   :  { %v4505_v5 = vpop.permute.xlu1 %741  ;;  %753 = vrot.lane.b32.xlu2 %v4503_v10, %s4118_s24 }
 0x91f   :  { %757 = vrot.lane.b32.xlu1 %v4505_v5, %s4118_s24 }
 0x925   :  { %v4511_v17 = vpop.permute.xlu0 %732 }
 0x926   :  { %v4513_v19 = vpop.permute.xlu1 %734  ;;  %747 = vrot.lane.b32.xlu2 %v4511_v17, %s4118_s24 }
 0x927   :  { %751 = vrot.lane.b32.xlu1 %v4483_v35, %s4118_s24  ;;  %749 = vrot.lane.b32.xlu0 %v4513_v19, %s4118_s24 }
 0x92f   :  { %745 = vrot.lane.b32.xlu1 %v4521_v12, %s4118_s24  ;;  %743 = vrot.lane.b32.xlu0 %v4491_v45, %s4118_s24 }
 0x978   :  { %v756_v61 = vpop.permute.xlu0 %755  ;;  %v754_v25 = vpop.permute.xlu2 %753 }
 0x980   :  { %v748_v38 = vpop.permute.xlu2 %747 }
 0x991   :  { %v758_v23 = vpop.permute.xlu1 %757 }
 0x992   :  { %3486 = vmatpush.xpose.msk.msra.mxu3 %vm168_vm1, %v758_v23 }
 0x996   :  { %3487 = vmatpush.xpose.msk.msra.mxu3 %vm168_vm1, %v756_v61 }
 0x999   :  { %v752_v49 = vpop.permute.xlu1 %751  ;;  %v750_v6 = vpop.permute.xlu0 %749 }
 0x99a   :  { %3488 = vmatpush.xpose.msk.msra.mxu3 %vm168_vm1, %v754_v25  ;;  %v3688_v25 = vpack.i.bf16 %v4483_v35, %v4503_v10 }
 0x99e   :  { %3489 = vmatpush.xpose.msk.msra.mxu3 %vm168_vm1, %v752_v49 }
 0x9a1   :  { %v746_v13 = vpop.permute.xlu1 %745  ;;  %v744_v16 = vpop.permute.xlu0 %743 }
 0x9a2   :  { %3490 = vmatpush.xpose.msk.msra.mxu3 %vm168_vm1, %v750_v6 }
 0x9a6   :  { %3491 = vmatpush.xpose.msk.msra.mxu3 %vm168_vm1, %v748_v38 }
 0x9aa   :  { %3492 = vmatpush.xpose.msk.msra.mxu3 %vm168_vm1, %v746_v13  ;;  %v3683_v13 = vpack.i.bf16 %v4499_v52, %v4505_v5 }
 0x9ae   :  { %3493 = vmatpush.xpose.msk.msra.mxu3 %vm168_vm1, %v744_v16 }
 0x9b1   :  { %3494 = vmatmul.msk.f32.vlgmr.msra.gmra.mxu3 %vm168_vm1, %v4491_v45 }
 0x9b9   :  { %3495 = vmatmul.msk.f32.gmra.mxu3 %vm168_vm1, %v4521_v12 }
 0x9c1   :  { %3496 = vmatmul.msk.f32.gmra.mxu3 %vm168_vm1, %v4511_v17 }
 0x9c9   :  { %3497 = vmatmul.msk.f32.gmra.mxu3 %vm168_vm1, %v4513_v19 }
 0x9d1   :  { %3498 = vmatmul.msk.f32.gmra.mxu3 %vm168_vm1, %v4483_v35 }
 0x9d9   :  { %3499 = vmatmul.msk.f32.gmra.mxu3 %vm168_vm1, %v4503_v10 }
 0x9e1   :  { %3500 = vmatmul.msk.f32.gmra.mxu3 %vm168_vm1, %v4499_v52 }
 0x9e9   :  { %3501 = vmatmul.msk.f32.gmra.mxu3 %vm168_vm1, %v4505_v5  ;;  %v3698_v5 = vpack.i.bf16 %v4491_v45, %v4521_v12 }
 0xa34   :  { %v808_v41 = vpop.f32.mrf.mxu3 }
 0xa35   :  { %v832_v44 = vmul.f32 0.35355338, %v808_v41 }
 0xa37   :  { %v840_v51 = vadd.f32 %v832_v44, %v4252_v34 }
 0xa39   :  { %v848_v29 = vsel %vm258_vm3, %v840_v51, -inf }
 0xa3a   :  { %849 = vmax.xlane.f32.xlu2 %v848_v29 }
 0xa3c   :  { %v811_v54 = vpop.f32.mrf.mxu3 }
 0xa3d   :  { %v833_v62 = vmul.f32 0.35355338, %v811_v54 }
 0xa3f   :  { %v841_v57 = vadd.f32 %v833_v62, %v4271_v42 }
 0xa41   :  { %v851_v59 = vsel %vm258_vm3, %v841_v57, -inf }
 0xa42   :  { %852 = vmax.xlane.f32.xlu1 %v851_v59 }
 0xa44   :  { %v814_v3 = vpop.f32.mrf.mxu3 }
 0xa45   :  { %v834_v60 = vmul.f32 0.35355338, %v814_v3 }
 0xa47   :  { %v4556_v0 = vadd.f32 %v834_v60, %v4290_v50 }
 0xa49   :  { %v854_v22 = vsel %vm258_vm3, %v4556_v0, -inf }
 0xa4a   :  { %855 = vmax.xlane.f32.xlu0 %v854_v22 }
 0xa4c   :  { %v817_v15 = vpop.f32.mrf.mxu3 }
 0xa4d   :  { %v835_v11 = vmul.f32 0.35355338, %v817_v15 }
 0xa4f   :  { %v843_v53 = vadd.f32 %v835_v11, %v4309_v58 }
 0xa51   :  { %v857_v37 = vsel %vm258_vm3, %v843_v53, -inf }
 0xa52   :  { %858 = vmax.xlane.f32.xlu2 %v857_v37 }
 0xa54   :  { %v820_v7 = vpop.f32.mrf.mxu3 }
 0xa55   :  { %v836_v1 = vmul.f32 0.35355338, %v820_v7 }
 0xa57   :  { %v844_v4 = vadd.f32 %v836_v1, %v4324_v2 }
 0xa59   :  { %v860_v23 = vsel %vm258_vm3, %v844_v4, -inf }
 0xa5a   :  { %861 = vmax.xlane.f32.xlu1 %v860_v23 }
 0xa5c   :  { %v823_v61 = vpop.f32.mrf.mxu3 }
 0xa5d   :  { %v837_v41 = vmul.f32 0.35355338, %v823_v61 }
 0xa5e   :  { %3689 = vrot.lane.b32.xlu0 %v3688_v25, %s4120_s25 }
 0xa5f   :  { %v4573_v44 = vadd.f32 %v837_v41, %v4363_v28 }
 0xa61   :  { %v863_v35 = vsel %vm258_vm3, %v4573_v44, -inf }
 0xa64   :  { %v826_v49 = vpop.f32.mrf.mxu3 }
 0xa65   :  { %v838_v6 = vmul.f32 0.35355338, %v826_v49 }
 0xa67   :  { %v846_v38 = vadd.f32 %v838_v6, %v4344_v20 }
 0xa69   :  { %v866_v16 = vsel %vm258_vm3, %v846_v38, -inf }
 0xa6a   :  { %3684 = vrot.lane.b32.xlu2 %v3683_v13, %s4120_s25  ;;  %867 = vmax.xlane.f32.xlu1 %v866_v16 }
 0xa6c   :  { %v829_v29 = vpop.f32.mrf.mxu3 }
 0xa6d   :  { %v839_v10 = vmul.f32 0.35355338, %v829_v29 }
 0xa6f   :  { %v4578_v54 = vadd.f32 %v839_v10, %v4382_v46 }
 0xa71   :  { %v869_v52 = vsel %vm258_vm3, %v4578_v54, -inf }
 0xa88   :  { %864 = vmax.xlane.f32.xlu0 %v863_v35 }
 0xa93   :  { %870 = vmax.xlane.f32.xlu2 %v869_v52 }
 0xa9c   :  { %3699 = vrot.lane.b32.xlu0 %v3698_v5, %s4120_s25 }
 0xaad   :  { %v850_v62 = vpop.xlane.xlu2 %849 }
 0xaae   :  { %v872_v59 = vsub.f32 %v840_v51, %v850_v62 }
 0xab0   :  { %v880_v3 = vmul.f32 1.442695, %v872_v59 }
 0xab2   :  { %3868 = vpow2.f32 %v880_v3 }
 0xab5   :  { %v853_v60 = vpop.xlane.xlu1 %852 }
 0xab6   :  { %v873_v22 = vsub.f32 %v841_v57, %v853_v60 }
 0xab8   :  { %v4585_v15 = vpop.eup %3868  ;;  %v882_v11 = vmul.f32 1.442695, %v873_v22 }
 0xab9   :  { %v896_v37 = vsel %vm258_vm3, %v4585_v15, 0.0 }
 0xaba   :  { %897 = vadd.xlane.f32.xlu1 %v896_v37  ;;  %3870 = vpow2.f32 %v882_v11 }
 0xabd   :  { %v856_v51 = vpop.xlane.xlu0 %855 }
 0xac0   :  { %v4589_v7 = vpop.eup %3870 }
 0xac1   :  { %v899_v45 = vsel %vm258_vm3, %v4589_v7, 0.0 }
 0xac5   :  { %v859_v1 = vpop.xlane.xlu2 %858 }
 0xac6   :  { %v875_v12 = vsub.f32 %v843_v53, %v859_v1  ;;  %900 = vadd.xlane.f32.xlu0 %v899_v45  ;;  %v3693_v53 = vpack.i.bf16 %v4511_v17, %v4513_v19  ;;  %v874_v19 = vsub.f32 %v4556_v0, %v856_v51 }
 0xac8   :  { %v886_v23 = vmul.f32 1.442695, %v875_v12  ;;  %v884_v60 = vmul.f32 1.442695, %v874_v19 }
 0xaca   :  { %3872 = vpow2.f32 %v886_v23 }
 0xacd   :  { %v3685_v57 = vpop.permute.xlu2 %3684  ;;  %v862_v61 = vpop.xlane.xlu1 %861 }
 0xace   :  { %v3686_v25 = vunpack.i.l.bf16 %v3685_v57  ;;  %v876_v49 = vsub.f32 %v844_v4, %v862_v61  ;;  %v3687_v13 = vunpack.i.h.bf16 %v3685_v57 }
 0xad0   :  { %v4593_v6 = vpop.eup %3872  ;;  %v888_v16 = vmul.f32 1.442695, %v876_v49  ;;  %v3690_v41 = vpop.permute.xlu0 %3689  ;;  %992 = vmatpush.msrb.mxu0 %v3686_v25 }
 0xad1   :  { %v3691_v29 = vunpack.i.l.bf16 %v3690_v41  ;;  %v905_v35 = vsel %vm258_vm3, %v4593_v6, 0.0  ;;  %v3692_v10 = vunpack.i.h.bf16 %v3690_v41 }
 0xad2   :  { %3874 = vpow2.f32 %v888_v16  ;;  %993 = vmatpush.msrb.mxu0 %v3687_v13  ;;  %906 = vadd.xlane.f32.xlu2 %v905_v35 }
 0xad3   :  { %3694 = vrot.lane.b32.xlu1 %v3693_v53, %s4120_s25 }
 0xad4   :  { %994 = vmatpush.msrb.mxu0 %v3691_v29 }
 0xad6   :  { %995 = vmatpush.msrb.mxu0 %v3692_v10 }
 0xad8   :  { %v4600_v4 = vpop.eup %3874 }
 0xad9   :  { %v908_v52 = vsel %vm258_vm3, %v4600_v4, 0.0 }
 0xada   :  { %909 = vadd.xlane.f32.xlu2 %v908_v52 }
 0xadd   :  { %v868_v5 = vpop.xlane.xlu1 %867 }
 0xade   :  { %v878_v62 = vsub.f32 %v846_v38, %v868_v5 }
 0xae0   :  { %v892_v59 = vmul.f32 1.442695, %v878_v62 }
 0xae2   :  { %3876 = vpow2.f32 %v892_v59 }
 0xae3   :  { %3878 = vpow2.f32 %v884_v60 }
 0xae8   :  { %v4604_v3 = vpop.eup %3876 }
 0xae9   :  { %v914_v17 = vsel %vm258_vm3, %v4604_v3, 0.0  ;;  %v3879_v22 = vpop.eup %3878 }
 0xaea   :  { %915 = vadd.xlane.f32.xlu2 %v914_v17  ;;  %v902_v1 = vsel %vm258_vm3, %v3879_v22, 0.0 }
 0xafb   :  { %v865_v11 = vpop.xlane.xlu0 %864 }
 0xafc   :  { %v877_v37 = vsub.f32 %v4573_v44, %v865_v11 }
 0xafd   :  { %903 = vadd.xlane.f32.xlu1 %v902_v1 }
 0xafe   :  { %v890_v38 = vmul.f32 1.442695, %v877_v37 }
 0xb00   :  { %3880 = vpow2.f32 %v890_v38 }
 0xb06   :  { %v3881_v45 = vpop.eup %3880  ;;  %v871_v12 = vpop.xlane.xlu2 %870 }
 0xb07   :  { %v879_v23 = vsub.f32 %v4578_v54, %v871_v12  ;;  %v911_v57 = vsel %vm258_vm3, %v3881_v45, 0.0 }
 0xb08   :  { %912 = vadd.xlane.f32.xlu0 %v911_v57 }
 0xb09   :  { %v894_v61 = vmul.f32 1.442695, %v879_v23 }
 0xb0b   :  { %3882 = vpow2.f32 %v894_v61 }
 0xb0e   :  { %v3700_v44 = vpop.permute.xlu0 %3699 }
 0xb0f   :  { %v3701_v35 = vunpack.i.l.bf16 %v3700_v44  ;;  %v3702_v54 = vunpack.i.h.bf16 %v3700_v44 }
 0xb11   :  { %v3883_v0 = vpop.eup %3882 }
 0xb12   :  { %v917_v51 = vsel %vm258_vm3, %v3883_v0, 0.0 }
 0xb13   :  { %918 = vadd.xlane.f32.xlu0 %v917_v51 }
 0xb2d   :  { %v898_v25 = vpop.xlane.xlu1 %897 }
 0xb2e   :  { %3884 = vrcp.f32 %v898_v25 }
 0xb34   :  { %v3885_v29 = vpop.eup %3884 }
 0xb35   :  { %v928_v53 = vmul.f32 %v3885_v29, %v4585_v15  ;;  %v1055_v29 = vld [vmem:[#allocation2 + $0x108] sm:$0xff] }
 0xb39   :  { %v901_v41 = vpop.xlane.xlu0 %900 }
 0xb3a   :  { %3886 = vrcp.f32 %v901_v41  ;;  %v1056_v41 = vld [vmem:[#allocation2 + $0x110] sm:$0xff] }
 0xb40   :  { %v3887_v10 = vpop.eup %3886 }
 0xb41   :  { %v929_v52 = vmul.f32 %v3887_v10, %v4589_v7 }
 0xb45   :  { %v3695_v49 = vpop.permute.xlu1 %3694  ;;  %v907_v62 = vpop.xlane.xlu2 %906 }
 0xb46   :  { %v3696_v13 = vunpack.i.l.bf16 %v3695_v49  ;;  %v3697_v16 = vunpack.i.h.bf16 %v3695_v49 }
 0xb48   :  { %996 = vmatpush.msrb.mxu0 %v3696_v13 }
 0xb4a   :  { %997 = vmatpush.msrb.mxu0 %v3697_v16  ;;  %v1057_v16 = vld [vmem:[#allocation2 + $0x118] sm:$0xff] }
 0xb4c   :  { %998 = vmatpush.msrb.mxu0 %v3701_v35 }
 0xb4d   :  { %v910_v19 = vpop.xlane.xlu2 %909 }
 0xb4e   :  { %999 = vmatpush.msrb.mxu0 %v3702_v54 }
 0xb4f   :  { %3502 = vmatmul.msk.f32.vlgmr.msrb.gmra.mxu0 %vm258_vm3, %v928_v53 }
 0xb57   :  { %3503 = vmatmul.msk.f32.gmra.mxu0 %vm258_vm3, %v929_v52 }
 0xb5d   :  { %v916_v1 = vpop.xlane.xlu2 %915 }
 0xb70   :  { %v904_v5 = vpop.xlane.xlu1 %903 }
 0xb71   :  { %3888 = vrcp.f32 %v904_v5 }
 0xb72   :  { %3890 = vrcp.f32 %v907_v62 }
 0xb73   :  { %3892 = vrcp.f32 %v910_v19 }
 0xb77   :  { %v3889_v59 = vpop.eup %3888 }
 0xb78   :  { %v930_v17 = vmul.f32 %v3889_v59, %v3879_v22  ;;  %v3891_v60 = vpop.eup %3890 }
 0xb79   :  { %v931_v15 = vmul.f32 %v3891_v60, %v4593_v6  ;;  %v3893_v37 = vpop.eup %3892 }
 0xb7a   :  { %3504 = vmatmul.msk.f32.gmra.mxu0 %vm258_vm3, %v930_v17  ;;  %v932_v7 = vmul.f32 %v3893_v37, %v4600_v4 }
 0xb7b   :  { %v913_v11 = vpop.xlane.xlu0 %912 }
 0xb7c   :  { %3894 = vrcp.f32 %v913_v11  ;;  %v3792_v11 = vld [vmem:[#allocation2 + $0x128] ss:$0 sm:$0xff] }
 0xb7d   :  { %3896 = vrcp.f32 %v916_v1 }
 0xb82   :  { %3505 = vmatmul.msk.f32.gmra.mxu0 %vm258_vm3, %v931_v15  ;;  %v3895_v38 = vpop.eup %3894 }
 0xb83   :  { %v933_v22 = vmul.f32 %v3895_v38, %v3881_v45  ;;  %v3897_v23 = vpop.eup %3896 }
 0xb84   :  { %v934_v6 = vmul.f32 %v3897_v23, %v4604_v3  ;;  %v1058_v3 = vld [vmem:[#allocation2 + $0x120] sm:$0xff] }
 0xb85   :  { %1079 = vmatpush.msrb.mxu2 %v1058_v3  ;;  %v1147_v3 = vld [vmem:[#allocation2 + $0x158] sm:$0xff] }
 0xb86   :  { %v919_v12 = vpop.xlane.xlu0 %918  ;;  %1168 = vmatpush.msrb.mxu1 %v1147_v3 }
 0xb87   :  { %3898 = vrcp.f32 %v919_v12  ;;  %1080 = vmatpush.msrb.mxu2 %v1057_v16  ;;  %v1144_v16 = vld [vmem:[#allocation2 + $0x140] sm:$0xff] }
 0xb89   :  { %1081 = vmatpush.msrb.mxu2 %v1056_v41 }
 0xb8a   :  { %3506 = vmatmul.msk.f32.gmra.mxu0 %vm258_vm3, %v932_v7 }
 0xb8b   :  { %1082 = vmatpush.msrb.mxu2 %v1055_v29 }
 0xb8d   :  { %v3899_v57 = vpop.eup %3898 }
 0xb8e   :  { %v935_v61 = vmul.f32 %v3899_v57, %v3883_v0 }
 0xb92   :  { %3507 = vmatmul.msk.f32.gmra.mxu0 %vm258_vm3, %v933_v22 }
 0xb9a   :  { %3508 = vmatmul.msk.f32.gmra.mxu0 %vm258_vm3, %v934_v6 }
 0xba2   :  { %3509 = vmatmul.msk.f32.gmra.mxu0 %vm258_vm3, %v935_v61 }
 0xbcc   :  { %v1001_v4 = vpop.f32.mrf.mxu0 }
 0xbd4   :  { %v1004_v51 = vpop.f32.mrf.mxu0 }
 0xbd5   :  { %1026 = vrot.lane.b32.xlu2 %v1004_v51, %s4114_s18 }
 0xbf7   :  { %v1007_v25 = vpop.f32.mrf.mxu0 }
 0xbf8   :  { %1030 = vrot.lane.b32.xlu1 %v1007_v25, %s4121_s26 }
 0xbff   :  { %v1010_v45 = vpop.f32.mrf.mxu0 }
 0xc00   :  { %1034 = vrot.lane.b32.xlu0 %v1010_v45, %s4122_s27 }
 0xc07   :  { %v1013_v44 = vpop.f32.mrf.mxu0 }
 0xc0f   :  { %v1016_v49 = vpop.f32.mrf.mxu0 }
 0xc10   :  { %1041 = vrot.lane.b32.xlu2 %v1016_v49, %s4114_s18 }
 0xc17   :  { %v1019_v13 = vpop.f32.mrf.mxu0 }
 0xc18   :  { %1045 = vrot.lane.b32.xlu0 %v1019_v13, %s4121_s26  ;;  %v1146_v13 = vld [vmem:[#allocation2 + $0x150] sm:$0xff] }
 0xc19   :  { %1169 = vmatpush.msrb.mxu1 %v1146_v13 }
 0xc1f   :  { %v1022_v0 = vpop.f32.mrf.mxu0 }
 0xc20   :  { %1049 = vrot.lane.b32.xlu1 %v1022_v0, %s4122_s27  ;;  %v1145_v0 = vld [vmem:[#allocation2 + $0x148] sm:$0xff] }
 0xc21   :  { %1170 = vmatpush.msrb.mxu1 %v1145_v0 }
 0xc23   :  { %1171 = vmatpush.msrb.mxu1 %v1144_v16 }
 0xc2f   :  { %v1027_v35 = vpop.permute.xlu2 %1026 }
 0xc30   :  { %v1037_v53 = vsel %vm168_vm1, %v1001_v4, %v1027_v35 }
 0xc6a   :  { %v1031_v54 = vpop.permute.xlu1 %1030  ;;  %v1042_v62 = vpop.permute.xlu2 %1041 }
 0xc6b   :  { %v1038_v10 = vsel %vm449_vm11, %v1037_v53, %v1031_v54  ;;  %v1052_v17 = vsel %vm168_vm1, %v1013_v44, %v1042_v62 }
 0xc72   :  { %v1035_v52 = vpop.permute.xlu0 %1034 }
 0xc73   :  { %v1039_v5 = vsel %vm5461_vm12, %v1038_v10, %v1035_v52 }
 0xc74   :  { %3510 = vmatmul.msk.f32.vlgmr.msrb.gmra.mxu2 %vm108_vm0, %v1039_v5 }
 0xc8a   :  { %v1046_v59 = vpop.permute.xlu0 %1045 }
 0xc8b   :  { %v1053_v19 = vsel %vm449_vm11, %v1052_v17, %v1046_v59  ;;  %v3793_v59 = vld [vmem:[#allocation2 + $0x130] ss:$0 sm:$0xff] }
 0xc92   :  { %v1050_v60 = vpop.permute.xlu1 %1049 }
 0xc93   :  { %v1054_v15 = vsel %vm5461_vm12, %v1053_v19, %v1050_v60  ;;  %v3794_v60 = vld [vmem:[#allocation2 + $0x138] ss:$0 sm:$0xff] }
 0xc94   :  { %3511 = vmatmul.msk.f32.gmra.mxu2 %vm108_vm0, %v1054_v15 }
 0xcf7   :  { %v1084_v37 = vpop.f32.mrf.mxu2 }
 0xcf8   :  { %v1085_v7 = vadd.f32 %v3792_v11, %v1084_v37  ;;  %v1279_v37 = vld [vmem:[#allocation2 + $0x1d8] sm:$0xff] }
 0xcf9   :  { %1300 = vmatpush.msra.mxu1 %v1279_v37 }
 0xcfa   :  { %v1090_v1 = vadd.f32 %v1085_v7, %v4474_v21  ;;  %v1278_v7 = vld [vmem:[#allocation2 + $0x1d0] sm:$0xff] }
 0xcfb   :  { %1301 = vmatpush.msra.mxu1 %v1278_v7 }
 0xcfc   :  { %v1094_v38 = vsel %vm108_vm0, %v1090_v1, 0.0 }
 0xcfd   :  { %1095 = vadd.xlane.f32.xlu2 %v1094_v38 }
 0xd17   :  { %v1087_v22 = vpop.f32.mrf.mxu2 }
 0xd18   :  { %v1088_v12 = vadd.f32 %v3792_v11, %v1087_v22 }
 0xd1a   :  { %v1091_v23 = vadd.f32 %v1088_v12, %v4479_v36  ;;  %v1276_v12 = vld [vmem:[#allocation2 + $0x1c0] sm:$0xff] }
 0xd1c   :  { %v1097_v6 = vsel %vm108_vm0, %v1091_v23, 0.0 }
 0xd1d   :  { %1098 = vadd.xlane.f32.xlu0 %v1097_v6 }
 0xd70   :  { %v1096_v57 = vpop.xlane.xlu2 %1095 }
 0xd71   :  { %v1100_v61 = vmul.f32 %v1096_v57, %v4455_v8 }
 0xd73   :  { %v1102_v4 = vsub.f32 %v1090_v1, %v1100_v61  ;;  %v1277_v1 = vld [vmem:[#allocation2 + $0x1c8] sm:$0xff]  ;;  %v1188_v61 = vld [vmem:[#allocation2 + $0x1a0] sm:$0xff] }
 0xd74   :  { %1302 = vmatpush.msra.mxu1 %v1277_v1  ;;  %1205 = vmatpush.msra.mxu2 %v1188_v61 }
 0xd75   :  { %v1104_v51 = vmul.f32 %v1102_v4, %v1102_v4 }
 0xd76   :  { %1303 = vmatpush.msra.mxu1 %v1276_v12 }
 0xd77   :  { %v1106_v25 = vsel %vm108_vm0, %v1104_v51, 0.0 }
 0xd78   :  { %1107 = vadd.xlane.f32.xlu1 %v1106_v25  ;;  %v1186_v25 = vld [vmem:[#allocation2 + $0x190] sm:$0xff] }
 0xd90   :  { %v1099_v45 = vpop.xlane.xlu0 %1098 }
 0xd91   :  { %v1101_v21 = vmul.f32 %v1099_v45, %v4455_v8 }
 0xd93   :  { %v4648_v44 = vsub.f32 %v1091_v23, %v1101_v21  ;;  %v1185_v21 = vld [vmem:[#allocation2 + $0x188] sm:$0xff] }
 0xd95   :  { %v1105_v49 = vmul.f32 %v4648_v44, %v4648_v44 }
 0xd97   :  { %v1109_v36 = vsel %vm108_vm0, %v1105_v49, 0.0 }
 0xd98   :  { %1110 = vadd.xlane.f32.xlu2 %v1109_v36  ;;  %v1184_v36 = vld [vmem:[#allocation2 + $0x180] sm:$0xff] }
 0xdeb   :  { %v1108_v41 = vpop.xlane.xlu1 %1107 }
 0xdec   :  { %v1112_v29 = vmul.f32 %v1108_v41, %v4455_v8 }
 0xdee   :  { %v1114_v35 = vadd.f32 1e-05, %v1112_v29  ;;  %v4667_v29 = vld [vmem:[%s5458_s1] sm:$0xff] }
 0xdf0   :  { %3900 = vrsqrt.f32 %v1114_v35  ;;  %vm1122_vm15 = vweird.f32 %v1114_v35 }
 0xdf6   :  { %v3901_v54 = vpop.eup %3900 }
 0xdf7   :  { %v1117_v53 = vmul.f32 %v3901_v54, %v1114_v35  ;;  %vm1123_vm14 = vweird.f32 %v3901_v54  ;;  %v4674_v35 = vld [vmem:[%s5458_s1 + $0x8] sm:$0xff]  ;;  %s4124_s1 = smov [#allocation5]  }
 0xdf8   :  { %vm1124_vm13 = vmor %vm1122_vm15, %vm1123_vm14  ;;  %s3437_s5 = sshll.u32 %s4124_s1, 4  ;;  %s3438_s5 = int_to_ptr.vmem [resolvable:$true] %s3437_s5 }
 0xdf9   :  { %v1118_v10 = vmul.f32 %v3901_v54, %v1117_v53  ;;  %v1181_v53 = vld [vmem:[#allocation2 + $0x168] sm:$0xff] }
 0xdfb   :  { %v1119_v52 = vmul.f32 0.5, %v1118_v10  ;;  %v3795_v10 = vld [vmem:[#allocation2 + $0x160] ss:$0 sm:$0xff] }
 0xdfd   :  { %v1120_v5 = vsub.f32 1.5, %v1119_v52 }
 0xdff   :  { %v1121_v62 = vmul.f32 %v3901_v54, %v1120_v5 }
 0xe01   :  { %v1125_v17 = vsel %vm1124_vm13, %v3901_v54, %v1121_v62  ;;  %v1182_v54 = vld [vmem:[#allocation2 + $0x170] sm:$0xff] }
 0xe02   :  { %v1136_v19 = vmul.f32 %v1125_v17, %v1102_v4  ;;  %v1187_v4 = vld [vmem:[#allocation2 + $0x198] sm:$0xff] }
 0xe03   :  { %1206 = vmatpush.msra.mxu2 %v1187_v4 }
 0xe04   :  { %v1139_v15 = vmul.f32 %v3793_v59, %v1136_v19 }
 0xe05   :  { %1207 = vmatpush.msra.mxu2 %v1186_v25 }
 0xe06   :  { %v4654_v11 = vadd.f32 %v3794_v60, %v1139_v15  ;;  %v3796_v15 = vld [vmem:[#allocation2 + $0x1e0] ss:$0 sm:$0xff] }
 0xe07   :  { %1208 = vmatpush.msra.mxu2 %v1185_v21 }
 0xe08   :  { %3512 = vmatmul.msk.f32.vlgmr.msrb.gmra.mxu1 %vm108_vm0, %v4654_v11 }
 0xe09   :  { %1209 = vmatpush.msra.mxu2 %v1184_v36 }
 0xe0b   :  { %v1111_v38 = vpop.xlane.xlu2 %1110 }
 0xe0c   :  { %v1113_v22 = vmul.f32 %v1111_v38, %v4455_v8 }
 0xe0e   :  { %v1115_v23 = vadd.f32 1e-05, %v1113_v22 }
 0xe10   :  { %3902 = vrsqrt.f32 %v1115_v23  ;;  %vm1132_vm15 = vweird.f32 %v1115_v23 }
 0xe16   :  { %v3903_v6 = vpop.eup %3902 }
 0xe17   :  { %v1127_v57 = vmul.f32 %v3903_v6, %v1115_v23  ;;  %vm1133_vm14 = vweird.f32 %v3903_v6 }
 0xe18   :  { %vm1134_vm13 = vmor %vm1132_vm15, %vm1133_vm14 }
 0xe19   :  { %v1128_v51 = vmul.f32 %v3903_v6, %v1127_v57 }
 0xe1b   :  { %v1129_v45 = vmul.f32 0.5, %v1128_v51 }
 0xe1d   :  { %v1130_v49 = vsub.f32 1.5, %v1129_v45 }
 0xe1f   :  { %v1131_v3 = vmul.f32 %v3903_v6, %v1130_v49 }
 0xe21   :  { %v1135_v13 = vsel %vm1134_vm13, %v3903_v6, %v1131_v3  ;;  %v59_v3 = vand.u32 7, %v4233_v26 }
 0xe22   :  { %v1137_v0 = vmul.f32 %v1135_v13, %v4648_v44  ;;  %v1183_v44 = vld [vmem:[#allocation2 + $0x178] sm:$0xff]  ;;  %v4750_v13 = vand.u32 7, %v4235_v27  ;;  %v61_v27 = vand.u32 7, %v4266_v40 }
 0xe23   :  { %1210 = vmatpush.msra.mxu2 %v1183_v44 }
 0xe24   :  { %v1140_v16 = vmul.f32 %v3793_v59, %v1137_v0  ;;  %vm68_vm14 = vcmp.ge.s32.totalorder %v59_v3, %v4750_v13  ;;  %v60_v0 = vand.u32 7, %v4247_v31 }
 0xe25   :  { %1211 = vmatpush.msra.mxu2 %v1182_v54  ;;  %vm84_vm15 = vmand %vm4242_vm2, %vm68_vm14  ;;  %vm70_vm2 = vcmp.ge.s32.totalorder %v61_v27, %v4750_v13 }
 0xe26   :  { %v4660_v41 = vadd.f32 %v3794_v60, %v1140_v16  ;;  %v4757_v44 = vsel %vm84_vm15, 0.0, %v4119_v33  ;;  %vm69_vm13 = vcmp.ge.s32.totalorder %v60_v0, %v4750_v13  ;;  %vm86_vm14 = vmand %vm4280_vm5, %vm70_vm2  ;;  %vm72_vm5 = vcmp.ge.s32.totalorder %v63_v47, %v4750_v13 }
 0xe27   :  { %1212 = vmatpush.msra.mxu2 %v1181_v53  ;;  %vm85_vm12 = vmand %vm4261_vm4, %vm69_vm13  ;;  %vm71_vm4 = vcmp.ge.s32.totalorder %v62_v39, %v4750_v13 }
 0xe28   :  { %3513 = vmatmul.msk.f32.gmra.mxu1 %vm108_vm0, %v4660_v41  ;;  %v4769_v31 = vsel %vm85_vm12, 0.0, %v4119_v33  ;;  %vm87_vm12 = vmand %vm4299_vm6, %vm71_vm4 }
 0xe29   :  { %vm88_vm15 = vmand %vm4315_vm7, %vm72_vm5 }
 0xe30   :  { %3516 = vmatmul.msk.f32.vlgmr.msra.gmra.mxu1 %vm108_vm0, %v4667_v29 }
 0xe38   :  { %3517 = vmatmul.msk.f32.gmra.mxu1 %vm108_vm0, %v4674_v35 }
 0xe85   :  { %v1173_v52 = vpop.f32.mrf.mxu1 }
 0xe86   :  { %v1174_v5 = vadd.f32 %v3795_v10, %v1173_v52 }
 0xe88   :  { %v1179_v62 = vmax.f32 %v1174_v5, 0.0 }
 0xe8a   :  { %3514 = vmatmul.msk.f32.vlgmr.msra.gmra.mxu2 %vm258_vm3, %v1179_v62  ;;  %v4781_v62 = vsel %vm86_vm14, 0.0, %v4119_v33 }
 0xea5   :  { %v1176_v59 = vpop.f32.mrf.mxu1 }
 0xea6   :  { %v1177_v17 = vadd.f32 %v3795_v10, %v1176_v59 }
 0xea8   :  { %v1180_v19 = vmax.f32 %v1177_v17, 0.0 }
 0xeaa   :  { %3515 = vmatmul.msk.f32.gmra.mxu2 %vm258_vm3, %v1180_v19 }
 0xead   :  { %v1305_v60 = vpop.f32.mrf.mxu1 }
 0xeae   :  { %v4688_v1 = vadd.f32 %v3796_v15, %v1305_v60  ;;  %v4793_v60 = vsel %vm87_vm12, 0.0, %v4119_v33 }
 0xeb5   :  { %v1308_v37 = vpop.f32.mrf.mxu1 }
 0xeb6   :  { %v4680_v7 = vadd.f32 %v3796_v15, %v1308_v37 }
 0xeb8   :  { %1319 = vrot.lane.b32.xlu2 %v4680_v7, %s4116_s23  ;;  %1321 = vrot.lane.b32.xlu1 %v4680_v7, %s4115_s22 }
 0xeb9   :  { %1323 = vrot.lane.b32.xlu0 %v4680_v7, %s4117_s0 }
 0xec0   :  { %1314 = vrot.lane.b32.xlu1 %v4688_v1, %s4115_s22 }
 0xec1   :  { %1316 = vrot.lane.b32.xlu0 %v4688_v1, %s4117_s0 }
 0xec9   :  { %1312 = vrot.lane.b32.xlu0 %v4688_v1, %s4116_s23 }
 0xf12   :  { %v4696_v38 = vpop.permute.xlu2 %1319 }
 0xf13   :  { %1335 = vrot.lane.b32.xlu0 %v4696_v38, %s4118_s24  ;;  %v3708_v63 = vpack.i.bf16 %v4680_v7, %v4696_v38 }
 0xf2a   :  { %v4700_v22 = vpop.permute.xlu1 %1321 }
 0xf2b   :  { %v4702_v12 = vpop.permute.xlu0 %1323  ;;  %1337 = vrot.lane.b32.xlu1 %v4700_v22, %s4118_s24 }
 0xf2c   :  { %1339 = vrot.lane.b32.xlu2 %v4702_v12, %s4118_s24 }
 0xf32   :  { %v4708_v23 = vpop.permute.xlu1 %1314 }
 0xf33   :  { %v4710_v6 = vpop.permute.xlu0 %1316  ;;  %1329 = vrot.lane.b32.xlu0 %v4708_v23, %s4118_s24 }
 0xf34   :  { %1333 = vrot.lane.b32.xlu2 %v4680_v7, %s4118_s24  ;;  %1331 = vrot.lane.b32.xlu1 %v4710_v6, %s4118_s24 }
 0xf3b   :  { %v4718_v57 = vpop.permute.xlu0 %1312 }
 0xf3c   :  { %1325 = vrot.lane.b32.xlu1 %v4688_v1, %s4118_s24  ;;  %1327 = vrot.lane.b32.xlu2 %v4718_v57, %s4118_s24  ;;  %v3718_v43 = vpack.i.bf16 %v4688_v1, %v4718_v57 }
 0xf85   :  { %v1336_v51 = vpop.permute.xlu0 %1335 }
 0xf86   :  { %v1340_v61 = vpop.permute.xlu2 %1339 }
 0xf87   :  { %3518 = vmatpush.xpose.msk.msra.mxu0 %vm168_vm1, %v1340_v61 }
 0xf8e   :  { %v1334_v25 = vpop.permute.xlu2 %1333 }
 0xf96   :  { %v1328_v49 = vpop.permute.xlu2 %1327 }
 0xf9d   :  { %v1338_v4 = vpop.permute.xlu1 %1337 }
 0xf9e   :  { %3519 = vmatpush.xpose.msk.msra.mxu0 %vm168_vm1, %v1338_v4  ;;  %v4801_v4 = vsel %vm88_vm15, 0.0, %v4119_v33 }
 0xfa2   :  { %3520 = vmatpush.xpose.msk.msra.mxu0 %vm168_vm1, %v1336_v51 }
 0xfa5   :  { %v1330_v21 = vpop.permute.xlu0 %1329 }
 0xfa6   :  { %3521 = vmatpush.xpose.msk.msra.mxu0 %vm168_vm1, %v1334_v25  ;;  %v1332_v45 = vpop.permute.xlu1 %1331 }
 0xfaa   :  { %3522 = vmatpush.xpose.msk.msra.mxu0 %vm168_vm1, %v1332_v45  ;;  %v65_v45 = vand.u32 7, %v4330_v9 }
 0xfac   :  { %vm74_vm6 = vcmp.ge.s32.totalorder %v65_v45, %v4750_v13 }
 0xfad   :  { %vm90_vm7 = vmand %vm4336_vm8, %vm74_vm6  ;;  %vm73_vm8 = vcmp.ge.s32.totalorder %v64_v18, %v4750_v13 }
 0xfae   :  { %3523 = vmatpush.xpose.msk.msra.mxu0 %vm168_vm1, %v1330_v21  ;;  %v1326_v36 = vpop.permute.xlu1 %1325  ;;  %v4815_v3 = vsel %vm90_vm7, 0.0, %v4119_v33  ;;  %vm89_vm13 = vmand %vm4356_vm9, %vm73_vm8  ;;  %vm5478_vm9 = vcmask 195584  }
 0xfb2   :  { %3524 = vmatpush.xpose.msk.msra.mxu0 %vm168_vm1, %v1328_v49 }
 0xfb6   :  { %3525 = vmatpush.xpose.msk.msra.mxu0 %vm168_vm1, %v1326_v36  ;;  %v3703_v36 = vpack.i.bf16 %v4700_v22, %v4702_v12 }
 0xfb9   :  { %3526 = vmatmul.msk.f32.vlgmr.msra.gmra.mxu0 %vm168_vm1, %v4688_v1 }
 0xfc1   :  { %3527 = vmatmul.msk.f32.gmra.mxu0 %vm168_vm1, %v4718_v57 }
 0xfc9   :  { %3528 = vmatmul.msk.f32.gmra.mxu0 %vm168_vm1, %v4708_v23 }
 0xfd1   :  { %3529 = vmatmul.msk.f32.gmra.mxu0 %vm168_vm1, %v4710_v6 }
 0xfd9   :  { %3530 = vmatmul.msk.f32.gmra.mxu0 %vm168_vm1, %v4680_v7 }
 0xfe1   :  { %3531 = vmatmul.msk.f32.gmra.mxu0 %vm168_vm1, %v4696_v38  ;;  %v66_v38 = vand.u32 7, %v4366_v32 }
 0xfe3   :  { %vm75_vm2 = vcmp.ge.s32.totalorder %v66_v38, %v4750_v13 }
 0xfe4   :  { %vm91_vm14 = vmand %vm4375_vm10, %vm75_vm2 }
 0xfe5   :  { %v4838_v32 = vsel %vm91_vm14, 0.0, %v4119_v33  ;;  %vm5479_vm10 = vmmov %vm5478_vm9 }
 0xfe9   :  { %3532 = vmatmul.msk.f32.gmra.mxu0 %vm168_vm1, %v4700_v22 }
 0xff1   :  { %3533 = vmatmul.msk.f32.gmra.mxu0 %vm168_vm1, %v4702_v12 }
0x1036   :  { %v1390_v16 = vpop.f32.mrf.mxu0 }
0x1037   :  { %v1414_v54 = vmul.f32 0.35355338, %v1390_v16  ;;  %v4830_v16 = vsel %vm89_vm13, 0.0, %v4119_v33 }
0x1039   :  { %v4761_v53 = vadd.f32 %v1414_v54, %v4757_v44 }
0x103b   :  { %v1430_v26 = vsel %vm258_vm3, %v4761_v53, -inf }
0x103c   :  { %1431 = vmax.xlane.f32.xlu0 %v1430_v26 }
0x103e   :  { %v1393_v30 = vpop.f32.mrf.mxu0 }
0x103f   :  { %v1415_v10 = vmul.f32 0.35355338, %v1393_v30 }
0x1041   :  { %v4773_v52 = vadd.f32 %v1415_v10, %v4769_v31 }
0x1043   :  { %v1433_v5 = vsel %vm258_vm3, %v4773_v52, -inf }
0x1044   :  { %1434 = vmax.xlane.f32.xlu2 %v1433_v5 }
0x1046   :  { %v1396_v40 = vpop.f32.mrf.mxu0 }
0x1047   :  { %v1416_v59 = vmul.f32 0.35355338, %v1396_v40 }
0x1049   :  { %v4785_v17 = vadd.f32 %v1416_v59, %v4781_v62 }
0x104b   :  { %v1436_v19 = vsel %vm258_vm3, %v4785_v17, -inf }
0x104c   :  { %1437 = vmax.xlane.f32.xlu1 %v1436_v19 }
0x104e   :  { %v1399_v48 = vpop.f32.mrf.mxu0 }
0x104f   :  { %v1417_v15 = vmul.f32 0.35355338, %v1399_v48 }
0x1051   :  { %v1425_v37 = vadd.f32 %v1417_v15, %v4793_v60 }
0x1053   :  { %v1439_v61 = vsel %vm258_vm3, %v1425_v37, -inf }
0x1054   :  { %1440 = vmax.xlane.f32.xlu0 %v1439_v61 }
0x1056   :  { %v1402_v55 = vpop.f32.mrf.mxu0 }
0x1057   :  { %v1418_v56 = vmul.f32 0.35355338, %v1402_v55 }
0x1059   :  { %v1426_v51 = vadd.f32 %v1418_v56, %v4801_v4 }
0x105b   :  { %v1442_v25 = vsel %vm258_vm3, %v1426_v51, -inf }
0x105c   :  { %1443 = vmax.xlane.f32.xlu2 %v1442_v25 }
0x105e   :  { %v1405_v21 = vpop.f32.mrf.mxu0 }
0x105f   :  { %v1419_v22 = vmul.f32 0.35355338, %v1405_v21 }
0x1061   :  { %v4835_v14 = vadd.f32 %v1419_v22, %v4830_v16 }
0x1063   :  { %v1445_v13 = vsel %vm258_vm3, %v4835_v14, -inf }
0x1065   :  { %3709 = vrot.lane.b32.xlu1 %v3708_v63, %s4120_s25 }
0x1066   :  { %v1408_v49 = vpop.f32.mrf.mxu0 }
0x1067   :  { %v1420_v0 = vmul.f32 0.35355338, %v1408_v49 }
0x1068   :  { %3704 = vrot.lane.b32.xlu0 %v3703_v36, %s4120_s25 }
0x1069   :  { %v4819_v9 = vadd.f32 %v1420_v0, %v4815_v3 }
0x106b   :  { %v1448_v7 = vsel %vm258_vm3, %v4819_v9, -inf }
0x106c   :  { %1449 = vmax.xlane.f32.xlu2 %v1448_v7 }
0x106e   :  { %v1411_v12 = vpop.f32.mrf.mxu0 }
0x106f   :  { %v1421_v54 = vmul.f32 0.35355338, %v1411_v12 }
0x1071   :  { %v4841_v24 = vadd.f32 %v1421_v54, %v4838_v32 }
0x1073   :  { %v1451_v26 = vsel %vm258_vm3, %v4841_v24, -inf }
0x108f   :  { %1446 = vmax.xlane.f32.xlu1 %v1445_v13 }
0x1092   :  { %1452 = vmax.xlane.f32.xlu0 %v1451_v26 }
0x10a8   :  { %3719 = vrot.lane.b32.xlu1 %v3718_v43, %s4120_s25 }
0x10af   :  { %v1432_v27 = vpop.xlane.xlu0 %1431 }
0x10b0   :  { %v1454_v33 = vsub.f32 %v4761_v53, %v1432_v27 }
0x10b2   :  { %v1462_v30 = vmul.f32 1.442695, %v1454_v33 }
0x10b4   :  { %3904 = vpow2.f32 %v1462_v30 }
0x10b7   :  { %v1435_v39 = vpop.xlane.xlu2 %1434 }
0x10b8   :  { %v1455_v40 = vsub.f32 %v4773_v52, %v1435_v39  ;;  %v3713_v52 = vpack.i.bf16 %v4708_v23, %v4710_v6 }
0x10ba   :  { %v4851_v10 = vpop.eup %3904  ;;  %v1464_v59 = vmul.f32 1.442695, %v1455_v40 }
0x10bb   :  { %v1478_v5 = vsel %vm258_vm3, %v4851_v10, 0.0 }
0x10bc   :  { %1479 = vadd.xlane.f32.xlu2 %v1478_v5  ;;  %3906 = vpow2.f32 %v1464_v59 }
0x10c2   :  { %v4856_v47 = vpop.eup %3906 }
0x10c3   :  { %v1481_v15 = vsel %vm258_vm3, %v4856_v47, 0.0 }
0x10c7   :  { %v1441_v19 = vpop.xlane.xlu0 %1440 }
0x10c8   :  { %v1457_v1 = vsub.f32 %v1425_v37, %v1441_v19  ;;  %v1438_v37 = vpop.xlane.xlu1 %1437 }
0x10c9   :  { %v1456_v38 = vsub.f32 %v4785_v17, %v1438_v37 }
0x10ca   :  { %v1468_v57 = vmul.f32 1.442695, %v1457_v1 }
0x10cb   :  { %v1466_v12 = vmul.f32 1.442695, %v1456_v38 }
0x10cc   :  { %3908 = vpow2.f32 %v1468_v57 }
0x10cf   :  { %v1444_v53 = vpop.xlane.xlu2 %1443 }
0x10d0   :  { %v1458_v48 = vsub.f32 %v1426_v51, %v1444_v53 }
0x10d2   :  { %v4860_v61 = vpop.eup %3908  ;;  %v1470_v55 = vmul.f32 1.442695, %v1458_v48  ;;  %1482 = vadd.xlane.f32.xlu1 %v1481_v15 }
0x10d3   :  { %v1487_v56 = vsel %vm258_vm3, %v4860_v61, 0.0 }
0x10d4   :  { %3910 = vpow2.f32 %v1470_v55  ;;  %3714 = vrot.lane.b32.xlu2 %v3713_v52, %s4120_s25  ;;  %1488 = vadd.xlane.f32.xlu0 %v1487_v56 }
0x10d7   :  { %v3710_v63 = vpop.permute.xlu1 %3709 }
0x10d8   :  { %v3711_v23 = vunpack.i.l.bf16 %v3710_v63  ;;  %v3712_v0 = vunpack.i.h.bf16 %v3710_v63 }
0x10da   :  { %v4867_v25 = vpop.eup %3910  ;;  %v3705_v51 = vpop.permute.xlu0 %3704 }
0x10db   :  { %v3706_v45 = vunpack.i.l.bf16 %v3705_v51  ;;  %v1490_v21 = vsel %vm258_vm3, %v4867_v25, 0.0  ;;  %v3707_v49 = vunpack.i.h.bf16 %v3705_v51 }
0x10dc   :  { %1491 = vadd.xlane.f32.xlu0 %v1490_v21 }
0x10dd   :  { %1574 = vmatpush.msrb.mxu2 %v3706_v45 }
0x10df   :  { %1575 = vmatpush.msrb.mxu2 %v3707_v49  ;;  %v1450_v6 = vpop.xlane.xlu2 %1449 }
0x10e0   :  { %v1460_v36 = vsub.f32 %v4819_v9, %v1450_v6 }
0x10e1   :  { %1576 = vmatpush.msrb.mxu2 %v3711_v23 }
0x10e2   :  { %v1474_v7 = vmul.f32 1.442695, %v1460_v36 }
0x10e3   :  { %1577 = vmatpush.msrb.mxu2 %v3712_v0 }
0x10e4   :  { %3912 = vpow2.f32 %v1474_v7 }
0x10e5   :  { %3914 = vpow2.f32 %v1466_v12 }
0x10ea   :  { %v4872_v18 = vpop.eup %3912 }
0x10eb   :  { %v1496_v22 = vsel %vm258_vm3, %v4872_v18, 0.0  ;;  %v3915_v54 = vpop.eup %3914 }
0x10ec   :  { %1497 = vadd.xlane.f32.xlu1 %v1496_v22  ;;  %v1484_v13 = vsel %vm258_vm3, %v3915_v54, 0.0 }
0x10fd   :  { %1485 = vadd.xlane.f32.xlu2 %v1484_v13 }
0x1102   :  { %v1447_v9 = vpop.xlane.xlu1 %1446 }
0x1103   :  { %v1459_v26 = vsub.f32 %v4835_v14, %v1447_v9 }
0x1105   :  { %v1472_v43 = vmul.f32 1.442695, %v1459_v26  ;;  %v1453_v27 = vpop.xlane.xlu0 %1452 }
0x1106   :  { %v1461_v33 = vsub.f32 %v4841_v24, %v1453_v27 }
0x1107   :  { %3916 = vpow2.f32 %v1472_v43 }
0x1108   :  { %v1476_v30 = vmul.f32 1.442695, %v1461_v33 }
0x110a   :  { %3918 = vpow2.f32 %v1476_v30 }
0x110d   :  { %v3917_v17 = vpop.eup %3916 }
0x110e   :  { %v1493_v5 = vsel %vm258_vm3, %v3917_v17, 0.0 }
0x110f   :  { %1494 = vadd.xlane.f32.xlu0 %v1493_v5 }
0x1110   :  { %v3919_v39 = vpop.eup %3918 }
0x1111   :  { %v1499_v40 = vsel %vm258_vm3, %v3919_v39, 0.0 }
0x1112   :  { %1500 = vadd.xlane.f32.xlu2 %v1499_v40  ;;  %v1640_v40 = vld [vmem:[#allocation2 + $0x200] sm:$0xff] }
0x1113   :  { %1661 = vmatpush.msrb.mxu3 %v1640_v40 }
0x111a   :  { %v3720_v14 = vpop.permute.xlu1 %3719 }
0x111b   :  { %v3721_v24 = vunpack.i.l.bf16 %v3720_v14  ;;  %v3722_v48 = vunpack.i.h.bf16 %v3720_v14 }
0x112f   :  { %v1480_v59 = vpop.xlane.xlu2 %1479 }
0x1130   :  { %3920 = vrcp.f32 %v1480_v59  ;;  %v1639_v59 = vld [vmem:[#allocation2 + $0x1f8] sm:$0xff] }
0x1131   :  { %1662 = vmatpush.msrb.mxu3 %v1639_v59 }
0x1136   :  { %v3921_v53 = vpop.eup %3920 }
0x1137   :  { %v3715_v19 = vpop.permute.xlu2 %3714  ;;  %v1510_v15 = vmul.f32 %v3921_v53, %v4851_v10 }
0x1138   :  { %v3716_v1 = vunpack.i.l.bf16 %v3715_v19  ;;  %v3717_v57 = vunpack.i.h.bf16 %v3715_v19 }
0x113a   :  { %1578 = vmatpush.msrb.mxu2 %v3716_v1 }
0x113c   :  { %1579 = vmatpush.msrb.mxu2 %v3717_v57  ;;  %v1638_v57 = vld [vmem:[#allocation2 + $0x1f0] sm:$0xff] }
0x113d   :  { %1663 = vmatpush.msrb.mxu3 %v1638_v57 }
0x113e   :  { %1580 = vmatpush.msrb.mxu2 %v3721_v24 }
0x1140   :  { %1581 = vmatpush.msrb.mxu2 %v3722_v48  ;;  %v1637_v48 = vld [vmem:[#allocation2 + $0x1e8] sm:$0xff] }
0x1141   :  { %3534 = vmatmul.msk.f32.vlgmr.msrb.gmra.mxu2 %vm258_vm3, %v1510_v15  ;;  %1664 = vmatpush.msrb.mxu3 %v1637_v48 }
0x1145   :  { %v1483_v55 = vpop.xlane.xlu1 %1482 }
0x1146   :  { %3922 = vrcp.f32 %v1483_v55 }
0x1147   :  { %v1489_v51 = vpop.xlane.xlu0 %1488 }
0x114c   :  { %v3923_v52 = vpop.eup %3922 }
0x114d   :  { %v1511_v56 = vmul.f32 %v3923_v52, %v4856_v47 }
0x114f   :  { %3535 = vmatmul.msk.f32.gmra.mxu2 %vm258_vm3, %v1511_v56  ;;  %v1492_v63 = vpop.xlane.xlu0 %1491 }
0x115f   :  { %v1498_v36 = vpop.xlane.xlu1 %1497 }
0x1170   :  { %v1486_v37 = vpop.xlane.xlu2 %1485 }
0x1171   :  { %3924 = vrcp.f32 %v1486_v37 }
0x1172   :  { %3926 = vrcp.f32 %v1489_v51 }
0x1173   :  { %3928 = vrcp.f32 %v1492_v63 }
0x1177   :  { %v3925_v45 = vpop.eup %3924 }
0x1178   :  { %v1512_v21 = vmul.f32 %v3925_v45, %v3915_v54  ;;  %v3927_v10 = vpop.eup %3926 }
0x1179   :  { %v1513_v49 = vmul.f32 %v3927_v10, %v4860_v61  ;;  %v3929_v6 = vpop.eup %3928 }
0x117a   :  { %3536 = vmatmul.msk.f32.gmra.mxu2 %vm258_vm3, %v1512_v21  ;;  %v1514_v47 = vmul.f32 %v3929_v6, %v4867_v25  ;;  %v1214_v25 = vpop.f32.mrf.mxu2 }
0x1182   :  { %3537 = vmatmul.msk.f32.gmra.mxu2 %vm258_vm3, %v1513_v49  ;;  %v1495_v23 = vpop.xlane.xlu0 %1494  ;;  %v1217_v13 = vpop.f32.mrf.mxu2 }
0x1183   :  { %3930 = vrcp.f32 %v1495_v23 }
0x1184   :  { %3932 = vrcp.f32 %v1498_v36 }
0x1185   :  { %v1501_v38 = vpop.xlane.xlu2 %1500 }
0x1186   :  { %3934 = vrcp.f32 %v1501_v38 }
0x1189   :  { %v3931_v0 = vpop.eup %3930 }
0x118a   :  { %3538 = vmatmul.msk.f32.gmra.mxu2 %vm258_vm3, %v1514_v47  ;;  %v1515_v7 = vmul.f32 %v3931_v0, %v3917_v17  ;;  %v3933_v22 = vpop.eup %3932  ;;  %v3797_v17 = vld [vmem:[#allocation2 + $0x1a8] ss:$0 sm:$0xff] }
0x118b   :  { %v1516_v61 = vmul.f32 %v3933_v22, %v4872_v18  ;;  %v1218_v14 = vadd.f32 %v3797_v17, %v1217_v13  ;;  %v3798_v0 = vld [vmem:[#allocation2 + $0x208] ss:$0 sm:$0xff] }
0x118c   :  { %v3935_v12 = vpop.eup %3934 }
0x118d   :  { %v1517_v54 = vmul.f32 %v3935_v12, %v3919_v39  ;;  %v1215_v39 = vadd.f32 %v3797_v17, %v1214_v25  ;;  %v1221_v53 = vadd.f32 %v1218_v14, %v4660_v41 }
0x118f   :  { %v1220_v19 = vadd.f32 %v1215_v39, %v4654_v11  ;;  %v1227_v24 = vsel %vm108_vm0, %v1221_v53, 0.0 }
0x1191   :  { %v1224_v1 = vsel %vm108_vm0, %v1220_v19, 0.0 }
0x1192   :  { %3539 = vmatmul.msk.f32.gmra.mxu2 %vm258_vm3, %v1515_v7 }
0x119a   :  { %3540 = vmatmul.msk.f32.gmra.mxu2 %vm258_vm3, %v1516_v61 }
0x11a2   :  { %3541 = vmatmul.msk.f32.gmra.mxu2 %vm258_vm3, %v1517_v54 }
0x11c4   :  { %v1583_v9 = vpop.f32.mrf.mxu2 }
0x11d2   :  { %v1586_v26 = vpop.f32.mrf.mxu2 }
0x11d3   :  { %1608 = vrot.lane.b32.xlu0 %v1586_v26, %s4114_s18  ;;  %v1764_v26 = vld [vmem:[#allocation2 + $0x260] sm:$0xff] }
0x11d4   :  { %1785 = vmatpush.msra.mxu3 %v1764_v26  ;;  %v1729_v26 = vld [vmem:[#allocation2 + $0x238] sm:$0xff] }
0x11d5   :  { %1750 = vmatpush.msrb.mxu1 %v1729_v26 }
0x11fd   :  { %v1589_v43 = vpop.f32.mrf.mxu2 }
0x11fe   :  { %1612 = vrot.lane.b32.xlu1 %v1589_v43, %s4121_s26  ;;  %v1763_v43 = vld [vmem:[#allocation2 + $0x258] sm:$0xff] }
0x11ff   :  { %1786 = vmatpush.msra.mxu3 %v1763_v43  ;;  %v1728_v43 = vld [vmem:[#allocation2 + $0x230] sm:$0xff] }
0x1200   :  { %1751 = vmatpush.msrb.mxu1 %v1728_v43 }
0x1205   :  { %v1592_v27 = vpop.f32.mrf.mxu2 }
0x1206   :  { %1616 = vrot.lane.b32.xlu2 %v1592_v27, %s4122_s27  ;;  %v1762_v27 = vld [vmem:[#allocation2 + $0x250] sm:$0xff] }
0x1207   :  { %1787 = vmatpush.msra.mxu3 %v1762_v27  ;;  %v1727_v27 = vld [vmem:[#allocation2 + $0x228] sm:$0xff] }
0x1208   :  { %1752 = vmatpush.msrb.mxu1 %v1727_v27 }
0x120d   :  { %v1595_v33 = vpop.f32.mrf.mxu2 }
0x1215   :  { %v1598_v18 = vpop.f32.mrf.mxu2 }
0x1216   :  { %1623 = vrot.lane.b32.xlu0 %v1598_v18, %s4114_s18 }
0x121d   :  { %v1601_v30 = vpop.f32.mrf.mxu2 }
0x121e   :  { %1627 = vrot.lane.b32.xlu0 %v1601_v30, %s4121_s26 }
0x1225   :  { %v1604_v5 = vpop.f32.mrf.mxu2 }
0x1226   :  { %1631 = vrot.lane.b32.xlu1 %v1604_v5, %s4122_s27 }
0x122f   :  { %1225 = vadd.xlane.f32.xlu2 %v1224_v1 }
0x1245   :  { %v1609_v15 = vpop.permute.xlu0 %1608 }
0x1246   :  { %v1619_v55 = vsel %vm168_vm1, %v1583_v9, %v1609_v15 }
0x1248   :  { %1228 = vadd.xlane.f32.xlu0 %v1227_v24  ;;  %v3799_v24 = vld [vmem:[#allocation2 + $0x1b0] ss:$0 sm:$0xff] }
0x1260   :  { %v1617_v56 = vpop.permute.xlu2 %1616 }
0x1270   :  { %v1613_v52 = vpop.permute.xlu1 %1612 }
0x1271   :  { %v1620_v11 = vsel %vm449_vm11, %v1619_v55, %v1613_v52  ;;  %v3800_v55 = vld [vmem:[#allocation2 + $0x1b8] ss:$0 sm:$0xff] }
0x1272   :  { %v1621_v37 = vsel %vm5478_vm9, %v1620_v11, %v1617_v56 }
0x1273   :  { %3542 = vmatmul.msk.f32.vlgmr.msrb.gmra.mxu3 %vm108_vm0, %v1621_v37 }
0x1288   :  { %v1624_v51 = vpop.permute.xlu0 %1623 }
0x1289   :  { %v1634_v41 = vsel %vm168_vm1, %v1595_v33, %v1624_v51  ;;  %v1761_v33 = vld [vmem:[#allocation2 + $0x248] sm:$0xff] }
0x128a   :  { %1788 = vmatpush.msra.mxu3 %v1761_v33 }
0x1290   :  { %v1628_v45 = vpop.permute.xlu0 %1627 }
0x1291   :  { %v1635_v21 = vsel %vm449_vm11, %v1634_v41, %v1628_v45 }
0x1298   :  { %v1632_v63 = vpop.permute.xlu1 %1631 }
0x1299   :  { %v1636_v10 = vsel %vm5479_vm10, %v1635_v21, %v1632_v63 }
0x129a   :  { %3543 = vmatmul.msk.f32.gmra.mxu3 %vm108_vm0, %v1636_v10 }
0x12a2   :  { %v1226_v49 = vpop.xlane.xlu2 %1225 }
0x12a3   :  { %v1230_v23 = vmul.f32 %v1226_v49, %v4455_v8 }
0x12a5   :  { %v1232_v6 = vsub.f32 %v1220_v19, %v1230_v23 }
0x12a7   :  { %v1234_v47 = vmul.f32 %v1232_v6, %v1232_v6 }
0x12a9   :  { %v1236_v36 = vsel %vm108_vm0, %v1234_v47, 0.0 }
0x12aa   :  { %1237 = vadd.xlane.f32.xlu1 %v1236_v36 }
0x12bb   :  { %v1229_v7 = vpop.xlane.xlu0 %1228 }
0x12bc   :  { %v1231_v22 = vmul.f32 %v1229_v7, %v4455_v8 }
0x12be   :  { %v1233_v54 = vsub.f32 %v1221_v53, %v1231_v22 }
0x12c0   :  { %v1235_v13 = vmul.f32 %v1233_v54, %v1233_v54 }
0x12c2   :  { %v1239_v9 = vsel %vm108_vm0, %v1235_v13, 0.0 }
0x12f6   :  { %v1666_v38 = vpop.f32.mrf.mxu3 }
0x12f7   :  { %v1667_v61 = vadd.f32 %v3798_v0, %v1666_v38 }
0x12f9   :  { %v1672_v12 = vadd.f32 %v1667_v61, %v4667_v29 }
0x12fb   :  { %v1676_v25 = vsel %vm108_vm0, %v1672_v12, 0.0 }
0x12fc   :  { %1677 = vadd.xlane.f32.xlu2 %v1676_v25 }
0x1304   :  { %1240 = vadd.xlane.f32.xlu2 %v1239_v9 }
0x131d   :  { %v1669_v18 = vpop.f32.mrf.mxu3  ;;  %v1238_v30 = vpop.xlane.xlu1 %1237 }
0x131e   :  { %v1670_v17 = vadd.f32 %v3798_v0, %v1669_v18  ;;  %v1242_v29 = vmul.f32 %v1238_v30, %v4455_v8 }
0x1320   :  { %v1244_v5 = vadd.f32 1e-05, %v1242_v29  ;;  %v1673_v39 = vadd.f32 %v1670_v17, %v4674_v35 }
0x1322   :  { %3936 = vrsqrt.f32 %v1244_v5  ;;  %v1679_v40 = vsel %vm108_vm0, %v1673_v39, 0.0  ;;  %vm1252_vm12 = vweird.f32 %v1244_v5 }
0x1323   :  { %1680 = vadd.xlane.f32.xlu0 %v1679_v40 }
0x1328   :  { %v3937_v59 = vpop.eup %3936 }
0x1329   :  { %v1247_v19 = vmul.f32 %v3937_v59, %v1244_v5  ;;  %vm1253_vm4 = vweird.f32 %v3937_v59 }
0x132a   :  { %vm1254_vm5 = vmor %vm1252_vm12, %vm1253_vm4  ;;  %vm5480_vm4 = vcmask 195584  }
0x132b   :  { %v1248_v1 = vmul.f32 %v3937_v59, %v1247_v19  ;;  %v3802_v19 = vld [vmem:[#allocation2 + $0x210] ss:$0 sm:$0xff]  ;;  %vm5481_vm12 = vmmov %vm5480_vm4 }
0x132d   :  { %v1249_v14 = vmul.f32 0.5, %v1248_v1 }
0x132f   :  { %v1250_v57 = vsub.f32 1.5, %v1249_v14 }
0x1331   :  { %v1251_v53 = vmul.f32 %v3937_v59, %v1250_v57  ;;  %v3803_v57 = vld [vmem:[#allocation2 + $0x218] ss:$0 sm:$0xff] }
0x1333   :  { %v1255_v48 = vsel %vm1254_vm5, %v3937_v59, %v1251_v53 }
0x1334   :  { %v1266_v15 = vmul.f32 %v1255_v48, %v1232_v6 }
0x1336   :  { %v1269_v52 = vmul.f32 %v3799_v24, %v1266_v15 }
0x1338   :  { %v4922_v56 = vadd.f32 %v3800_v55, %v1269_v52 }
0x133a   :  { %3546 = vmatmul.msk.f32.vlgmr.msra.gmra.mxu3 %vm108_vm0, %v4922_v56 }
0x136f   :  { %v1678_v35 = vpop.xlane.xlu2 %1677 }
0x1370   :  { %v1682_v11 = vmul.f32 %v1678_v35, %v4455_v8  ;;  %v3801_v35 = vld [vmem:[#allocation2 + $0x268] ss:$0 sm:$0xff] }
0x1372   :  { %v1684_v37 = vsub.f32 %v1672_v12, %v1682_v11 }
0x1374   :  { %v1686_v51 = vmul.f32 %v1684_v37, %v1684_v37 }
0x1376   :  { %v1688_v45 = vsel %vm108_vm0, %v1686_v51, 0.0 }
0x1377   :  { %1689 = vadd.xlane.f32.xlu1 %v1688_v45  ;;  %v1241_v41 = vpop.xlane.xlu2 %1240 }
0x1378   :  { %v1243_v21 = vmul.f32 %v1241_v41, %v4455_v8 }
0x137a   :  { %v1245_v63 = vadd.f32 1e-05, %v1243_v21 }
0x137c   :  { %3938 = vrsqrt.f32 %v1245_v63  ;;  %vm1262_vm6 = vweird.f32 %v1245_v63 }
0x1382   :  { %v3939_v10 = vpop.eup %3938 }
0x1383   :  { %v1257_v49 = vmul.f32 %v3939_v10, %v1245_v63  ;;  %vm1263_vm15 = vweird.f32 %v3939_v10 }
0x1384   :  { %vm1264_vm7 = vmor %vm1262_vm6, %vm1263_vm15 }
0x1385   :  { %v1258_v23 = vmul.f32 %v3939_v10, %v1257_v49 }
0x1387   :  { %v1259_v6 = vmul.f32 0.5, %v1258_v23 }
0x1389   :  { %v1260_v47 = vsub.f32 1.5, %v1259_v6 }
0x138b   :  { %v1261_v36 = vmul.f32 %v3939_v10, %v1260_v47 }
0x138d   :  { %v1265_v0 = vsel %vm1264_vm7, %v3939_v10, %v1261_v36 }
0x138e   :  { %v1267_v7 = vmul.f32 %v1265_v0, %v1233_v54  ;;  %v1726_v54 = vld [vmem:[#allocation2 + $0x220] sm:$0xff] }
0x138f   :  { %1753 = vmatpush.msrb.mxu1 %v1726_v54  ;;  %v3804_v0 = vld [vmem:[#allocation2 + $0x240] ss:$0 sm:$0xff] }
0x1390   :  { %v1270_v38 = vmul.f32 %v3799_v24, %v1267_v7 }
0x1392   :  { %v4929_v22 = vadd.f32 %v3800_v55, %v1270_v38 }
0x1394   :  { %3547 = vmatmul.msk.f32.gmra.mxu3 %vm108_vm0, %v4929_v22 }
0x1396   :  { %v1681_v61 = vpop.xlane.xlu0 %1680 }
0x1397   :  { %v1683_v12 = vmul.f32 %v1681_v61, %v4455_v8 }
0x1399   :  { %v1685_v25 = vsub.f32 %v1673_v39, %v1683_v12 }
0x139b   :  { %v1687_v13 = vmul.f32 %v1685_v25, %v1685_v25 }
0x139d   :  { %v1691_v9 = vsel %vm108_vm0, %v1687_v13, 0.0 }
0x139e   :  { %1692 = vadd.xlane.f32.xlu2 %v1691_v9 }
0x13bd   :  { %v1790_v48 = vpop.f32.mrf.mxu3 }
0x13be   :  { %v4949_v21 = vadd.f32 %v3801_v35, %v1790_v48 }
0x13ea   :  { %v1690_v33 = vpop.xlane.xlu1 %1689 }
0x13eb   :  { %v1694_v18 = vmul.f32 %v1690_v33, %v4455_v8 }
0x13ed   :  { %v1696_v30 = vadd.f32 1e-05, %v1694_v18 }
0x13ef   :  { %3940 = vrsqrt.f32 %v1696_v30  ;;  %vm1704_vm13 = vweird.f32 %v1696_v30 }
0x13f5   :  { %v3941_v17 = vpop.eup %3940 }
0x13f6   :  { %v1699_v29 = vmul.f32 %v3941_v17, %v1696_v30  ;;  %vm1705_vm8 = vweird.f32 %v3941_v17 }
0x13f7   :  { %vm1706_vm2 = vmor %vm1704_vm13, %vm1705_vm8 }
0x13f8   :  { %v1700_v5 = vmul.f32 %v3941_v17, %v1699_v29 }
0x13fa   :  { %v1701_v39 = vmul.f32 0.5, %v1700_v5 }
0x13fc   :  { %v1702_v40 = vsub.f32 1.5, %v1701_v39 }
0x13fe   :  { %v1703_v59 = vmul.f32 %v3941_v17, %v1702_v40 }
0x1400   :  { %v1707_v1 = vsel %vm1706_vm2, %v3941_v17, %v1703_v59 }
0x1401   :  { %v1718_v14 = vmul.f32 %v1707_v1, %v1684_v37 }
0x1403   :  { %v1721_v53 = vmul.f32 %v3802_v19, %v1718_v14 }
0x1405   :  { %v4936_v24 = vadd.f32 %v3803_v57, %v1721_v53 }
0x1407   :  { %3544 = vmatmul.msk.f32.vlgmr.msrb.gmra.mxu1 %vm108_vm0, %v4936_v24 }
0x1411   :  { %v1693_v15 = vpop.xlane.xlu2 %1692 }
0x1412   :  { %v1695_v55 = vmul.f32 %v1693_v15, %v4455_v8 }
0x1414   :  { %v1697_v52 = vadd.f32 1e-05, %v1695_v55 }
0x1416   :  { %3942 = vrsqrt.f32 %v1697_v52  ;;  %vm1714_vm9 = vweird.f32 %v1697_v52 }
0x1417   :  { %v1793_v11 = vpop.f32.mrf.mxu3 }
0x1418   :  { %v4941_v51 = vadd.f32 %v3801_v35, %v1793_v11 }
0x141a   :  { %1820 = vrot.lane.b32.xlu1 %v4941_v51, %s4115_s22  ;;  %1822 = vrot.lane.b32.xlu0 %v4941_v51, %s4117_s0 }
0x141b   :  { %1818 = vrot.lane.b32.xlu2 %v4941_v51, %s4116_s23 }
0x141c   :  { %v3943_v37 = vpop.eup %3942 }
0x141d   :  { %v1709_v45 = vmul.f32 %v3943_v37, %v1697_v52  ;;  %vm1715_vm14 = vweird.f32 %v3943_v37 }
0x141e   :  { %vm1716_vm10 = vmor %vm1714_vm9, %vm1715_vm14 }
0x141f   :  { %v1710_v41 = vmul.f32 %v3943_v37, %v1709_v45 }
0x1421   :  { %v1711_v63 = vmul.f32 0.5, %v1710_v41 }
0x1422   :  { %1813 = vrot.lane.b32.xlu1 %v4949_v21, %s4115_s22  ;;  %1815 = vrot.lane.b32.xlu0 %v4949_v21, %s4117_s0 }
0x1423   :  { %v1712_v10 = vsub.f32 1.5, %v1711_v63 }
0x1425   :  { %v1713_v49 = vmul.f32 %v3943_v37, %v1712_v10 }
0x1427   :  { %v1717_v23 = vsel %vm1716_vm10, %v3943_v37, %v1713_v49 }
0x1428   :  { %v1719_v6 = vmul.f32 %v1717_v23, %v1685_v25 }
0x142a   :  { %1811 = vrot.lane.b32.xlu0 %v4949_v21, %s4116_s23  ;;  %v1722_v47 = vmul.f32 %v3802_v19, %v1719_v6 }
0x142c   :  { %v4957_v36 = vadd.f32 %v3803_v57, %v1722_v47 }
0x142e   :  { %3545 = vmatmul.msk.f32.gmra.mxu1 %vm108_vm0, %v4957_v36 }
0x1475   :  { %v1819_v13 = vpop.permute.xlu2 %1818 }
0x1476   :  { %v3728_v41 = vpack.i.bf16 %v4941_v51, %v1819_v13 }
0x1484   :  { %v1755_v7 = vpop.f32.mrf.mxu1 }
0x1485   :  { %v1756_v38 = vadd.f32 %v3804_v0, %v1755_v7 }
0x1487   :  { %1799 = vrot.lane.b32.xlu1 %v1756_v38, %s4115_s22  ;;  %1801 = vrot.lane.b32.xlu0 %v1756_v38, %s4117_s0 }
0x1488   :  { %1797 = vrot.lane.b32.xlu2 %v1756_v38, %s4116_s23 }
0x148c   :  { %v4964_v61 = vpop.permute.xlu1 %1820  ;;  %v4966_v12 = vpop.permute.xlu0 %1822 }
0x148d   :  { %v3723_v25 = vpack.i.bf16 %v4964_v61, %v4966_v12  ;;  %3548 = vmatpush.xpose.msk.msra.mxu1 %vm168_vm1, %v4966_v12  ;;  %3642 = vmatpush.xpose.msk.msra.mxu2 %vm168_vm1, %v4966_v12 }
0x1491   :  { %3549 = vmatpush.xpose.msk.msra.mxu1 %vm168_vm1, %v4964_v61  ;;  %3643 = vmatpush.xpose.msk.msra.mxu2 %vm168_vm1, %v4964_v61 }
0x1494   :  { %v4984_v9 = vpop.permute.xlu0 %1815  ;;  %v4990_v26 = vpop.permute.xlu1 %1813 }
0x1495   :  { %3550 = vmatpush.xpose.msk.msra.mxu1 %vm168_vm1, %v1819_v13  ;;  %3644 = vmatpush.xpose.msk.msra.mxu2 %vm168_vm1, %v1819_v13 }
0x1499   :  { %3551 = vmatpush.xpose.msk.msra.mxu1 %vm168_vm1, %v4941_v51  ;;  %3645 = vmatpush.xpose.msk.msra.mxu2 %vm168_vm1, %v4941_v51 }
0x149c   :  { %v4996_v43 = vpop.permute.xlu0 %1811 }
0x149d   :  { %3552 = vmatpush.xpose.msk.msra.mxu1 %vm168_vm1, %v4984_v9  ;;  %3646 = vmatpush.xpose.msk.msra.mxu2 %vm168_vm1, %v4984_v9 }
0x14a1   :  { %3553 = vmatpush.xpose.msk.msra.mxu1 %vm168_vm1, %v4990_v26  ;;  %3647 = vmatpush.xpose.msk.msra.mxu2 %vm168_vm1, %v4990_v26 }
0x14a5   :  { %3554 = vmatpush.xpose.msk.msra.mxu1 %vm168_vm1, %v4996_v43  ;;  %3648 = vmatpush.xpose.msk.msra.mxu2 %vm168_vm1, %v4996_v43 }
0x14a9   :  { %3555 = vmatpush.xpose.msk.msra.mxu1 %vm168_vm1, %v4949_v21  ;;  %3649 = vmatpush.xpose.msk.msra.mxu2 %vm168_vm1, %v4949_v21 }
0x14ab   :  { %v1758_v27 = vpop.f32.mrf.mxu1 }
0x14ac   :  { %v1759_v54 = vadd.f32 %v3804_v0, %v1758_v27  ;;  %3556 = vmatmul.msk.f32.vlgmr.msra.gmra.mxu1 %vm168_vm1, %v1756_v38 }
0x14ae   :  { %1808 = vrot.lane.b32.xlu0 %v1759_v54, %s4117_s0  ;;  %1806 = vrot.lane.b32.xlu1 %v1759_v54, %s4115_s22 }
0x14af   :  { %1804 = vrot.lane.b32.xlu2 %v1759_v54, %s4116_s23 }
0x14e2   :  { %v1798_v33 = vpop.permute.xlu2 %1797 }
0x14e3   :  { %3557 = vmatmul.msk.f32.gmra.mxu1 %vm168_vm1, %v1798_v33 }
0x14f9   :  { %v1800_v18 = vpop.permute.xlu1 %1799  ;;  %v1802_v30 = vpop.permute.xlu0 %1801 }
0x14fa   :  { %3558 = vmatmul.msk.f32.gmra.mxu1 %vm168_vm1, %v1800_v18 }
0x1502   :  { %3559 = vmatmul.msk.f32.gmra.mxu1 %vm168_vm1, %v1802_v30 }
0x1509   :  { %v1805_v17 = vpop.permute.xlu2 %1804 }
0x150a   :  { %3560 = vmatmul.msk.f32.gmra.mxu1 %vm168_vm1, %v1759_v54 }
0x1512   :  { %3561 = vmatmul.msk.f32.gmra.mxu1 %vm168_vm1, %v1805_v17 }
0x1520   :  { %v1807_v29 = vpop.permute.xlu1 %1806  ;;  %v1809_v5 = vpop.permute.xlu0 %1808 }
0x1521   :  { %3562 = vmatmul.msk.f32.gmra.mxu1 %vm168_vm1, %v1807_v29  ;;  %3563 = vmatmul.msk.f32.vlgmr.msra.gmra.mxu2 %vm168_vm1, %v1809_v5  ;;  %v3738_v5 = vpack.i.bf16 %v4949_v21, %v4996_v43 }
0x1529   :  { %v1873_v39 = vpop.f32.mrf.mxu1 }
0x152a   :  { %v1897_v40 = vmul.f32 0.35355338, %v1873_v39  ;;  %v3733_v39 = vpack.i.bf16 %v4990_v26, %v4984_v9 }
0x152c   :  { %v1905_v59 = vadd.f32 %v1897_v40, %v4252_v34 }
0x152e   :  { %v1913_v19 = vsel %vm258_vm3, %v1905_v59, -inf }
0x152f   :  { %1914 = vmax.xlane.f32.xlu2 %v1913_v19 }
0x1560   :  { %v1876_v1 = vpop.f32.mrf.mxu1 }
0x1561   :  { %v1898_v14 = vmul.f32 0.35355338, %v1876_v1 }
0x1563   :  { %v1906_v57 = vadd.f32 %v1898_v14, %v4271_v42 }
0x1565   :  { %v1916_v53 = vsel %vm258_vm3, %v1906_v57, -inf }
0x1566   :  { %1917 = vmax.xlane.f32.xlu1 %v1916_v53 }
0x1577   :  { %v1879_v48 = vpop.f32.mrf.mxu1 }
0x1578   :  { %v1899_v15 = vmul.f32 0.35355338, %v1879_v48 }
0x157a   :  { %v1907_v55 = vadd.f32 %v1899_v15, %v4290_v50 }
0x157c   :  { %v1919_v52 = vsel %vm258_vm3, %v1907_v55, -inf }
0x157d   :  { %1920 = vmax.xlane.f32.xlu0 %v1919_v52 }
0x157f   :  { %v1882_v35 = vpop.f32.mrf.mxu1 }
0x1580   :  { %v1900_v11 = vmul.f32 0.35355338, %v1882_v35 }
0x1582   :  { %v1908_v37 = vadd.f32 %v1900_v11, %v4309_v58 }
0x1584   :  { %v1922_v45 = vsel %vm258_vm3, %v1908_v37, -inf }
0x1585   :  { %1923 = vmax.xlane.f32.xlu2 %v1922_v45 }
0x1587   :  { %v1885_v63 = vpop.f32.mrf.mxu1 }
0x1588   :  { %v1901_v0 = vmul.f32 0.35355338, %v1885_v63 }
0x158a   :  { %v1909_v38 = vadd.f32 %v1901_v0, %v4324_v2 }
0x158c   :  { %v1925_v13 = vsel %vm258_vm3, %v1909_v38, -inf }
0x158f   :  { %v1888_v6 = vpop.f32.mrf.mxu1 }
0x1590   :  { %v1902_v51 = vmul.f32 0.35355338, %v1888_v6 }
0x1591   :  { %3729 = vrot.lane.b32.xlu0 %v3728_v41, %s4118_s24 }
0x1592   :  { %v1910_v12 = vadd.f32 %v1902_v51, %v4363_v28 }
0x1594   :  { %v1928_v33 = vsel %vm258_vm3, %v1910_v12, -inf }
0x159d   :  { %3724 = vrot.lane.b32.xlu2 %v3723_v25, %s4118_s24 }
0x159e   :  { %v1891_v61 = vpop.f32.mrf.mxu1 }
0x159f   :  { %v1903_v25 = vmul.f32 0.35355338, %v1891_v61 }
0x15a1   :  { %v1911_v27 = vadd.f32 %v1903_v25, %v4344_v20 }
0x15a2   :  { %v1915_v10 = vpop.xlane.xlu2 %1914 }
0x15a3   :  { %v1937_v49 = vsub.f32 %v1905_v59, %v1915_v10  ;;  %v1931_v30 = vsel %vm258_vm3, %v1911_v27, -inf }
0x15a4   :  { %v1894_v54 = vpop.f32.mrf.mxu2 }
0x15a5   :  { %v1945_v23 = vmul.f32 1.442695, %v1937_v49  ;;  %v1904_v18 = vmul.f32 0.35355338, %v1894_v54 }
0x15a7   :  { %3944 = vpow2.f32 %v1945_v23  ;;  %v1912_v17 = vadd.f32 %v1904_v18, %v4382_v46 }
0x15a9   :  { %v1934_v29 = vsel %vm258_vm3, %v1912_v17, -inf }
0x15ad   :  { %v5028_v47 = vpop.eup %3944 }
0x15ae   :  { %v1961_v7 = vsel %vm258_vm3, %v5028_v47, 0.0 }
0x15af   :  { %1962 = vadd.xlane.f32.xlu1 %v1961_v7 }
0x15b7   :  { %1926 = vmax.xlane.f32.xlu1 %v1925_v13 }
0x15bb   :  { %1929 = vmax.xlane.f32.xlu0 %v1928_v33 }
0x15bf   :  { %1932 = vmax.xlane.f32.xlu1 %v1931_v30 }
0x15c6   :  { %1935 = vmax.xlane.f32.xlu2 %v1934_v29 }
0x15cf   :  { %3739 = vrot.lane.b32.xlu0 %v3738_v5, %s4118_s24 }
0x15d8   :  { %3734 = vrot.lane.b32.xlu1 %v3733_v39, %s4118_s24 }
0x15d9   :  { %v1918_v40 = vpop.xlane.xlu1 %1917 }
0x15da   :  { %v1938_v59 = vsub.f32 %v1906_v57, %v1918_v40 }
0x15dc   :  { %v1947_v19 = vmul.f32 1.442695, %v1938_v59 }
0x15de   :  { %3946 = vpow2.f32 %v1947_v19 }
0x15e4   :  { %v5046_v48 = vpop.eup %3946 }
0x15e5   :  { %v1964_v21 = vsel %vm258_vm3, %v5046_v48, 0.0 }
0x15f0   :  { %v1921_v1 = vpop.xlane.xlu0 %1920 }
0x15f1   :  { %v1939_v14 = vsub.f32 %v1907_v55, %v1921_v1 }
0x15f3   :  { %v1949_v53 = vmul.f32 1.442695, %v1939_v14 }
0x15f5   :  { %3948 = vpow2.f32 %v1949_v53 }
0x15f8   :  { %v1924_v15 = vpop.xlane.xlu2 %1923 }
0x15f9   :  { %v1940_v43 = vsub.f32 %v1908_v37, %v1924_v15  ;;  %1965 = vadd.xlane.f32.xlu0 %v1964_v21 }
0x15fb   :  { %v1951_v52 = vmul.f32 1.442695, %v1940_v43  ;;  %v5050_v9 = vpop.eup %3948 }
0x15fc   :  { %v1967_v35 = vsel %vm258_vm3, %v5050_v9, 0.0 }
0x15fd   :  { %3950 = vpow2.f32 %v1951_v52 }
0x1600   :  { %v3725_v26 = vpop.permute.xlu2 %3724 }
0x1601   :  { %v3726_v57 = vunpack.i.l.bf16 %v3725_v26  ;;  %v3727_v11 = vunpack.i.h.bf16 %v3725_v26 }
0x1602   :  { %1968 = vadd.xlane.f32.xlu1 %v1967_v35 }
0x1603   :  { %v5054_v55 = vpop.eup %3950  ;;  %2057 = vmatpush.msrb.mxu3 %v3726_v57  ;;  %v3730_v45 = vpop.permute.xlu0 %3729 }
0x1604   :  { %v3731_v41 = vunpack.i.l.bf16 %v3730_v45  ;;  %v1970_v37 = vsel %vm258_vm3, %v5054_v55, 0.0  ;;  %v3732_v63 = vunpack.i.h.bf16 %v3730_v45 }
0x1605   :  { %2058 = vmatpush.msrb.mxu3 %v3727_v11  ;;  %1971 = vadd.xlane.f32.xlu2 %v1970_v37 }
0x1607   :  { %2059 = vmatpush.msrb.mxu3 %v3731_v41 }
0x1609   :  { %2060 = vmatpush.msrb.mxu3 %v3732_v63 }
0x1622   :  { %v1963_v10 = vpop.xlane.xlu1 %1962 }
0x162a   :  { %v1927_v49 = vpop.xlane.xlu1 %1926 }
0x162b   :  { %v1941_v23 = vsub.f32 %v1909_v38, %v1927_v49 }
0x162d   :  { %v1953_v6 = vmul.f32 1.442695, %v1941_v23 }
0x162e   :  { %v1930_v0 = vpop.xlane.xlu0 %1929 }
0x162f   :  { %3952 = vpow2.f32 %v1953_v6  ;;  %v1942_v7 = vsub.f32 %v1910_v12, %v1930_v0 }
0x1631   :  { %v1955_v51 = vmul.f32 1.442695, %v1942_v7 }
0x1632   :  { %v1933_v61 = vpop.xlane.xlu1 %1932 }
0x1633   :  { %3954 = vpow2.f32 %v1955_v51  ;;  %v1943_v25 = vsub.f32 %v1911_v27, %v1933_v61 }
0x1635   :  { %v3953_v13 = vpop.eup %3952  ;;  %v1957_v54 = vmul.f32 1.442695, %v1943_v25 }
0x1636   :  { %v1973_v33 = vsel %vm258_vm3, %v3953_v13, 0.0 }
0x1637   :  { %3956 = vpow2.f32 %v1957_v54  ;;  %1974 = vadd.xlane.f32.xlu2 %v1973_v33 }
0x1639   :  { %v3955_v18 = vpop.eup %3954  ;;  %v1936_v30 = vpop.xlane.xlu2 %1935 }
0x163a   :  { %v1944_v29 = vsub.f32 %v1912_v17, %v1936_v30  ;;  %v1976_v5 = vsel %vm258_vm3, %v3955_v18, 0.0 }
0x163b   :  { %1977 = vadd.xlane.f32.xlu0 %v1976_v5  ;;  %v2122_v5 = vld [vmem:[#allocation2 + $0x280] sm:$0xff] }
0x163c   :  { %v1959_v38 = vmul.f32 1.442695, %v1944_v29  ;;  %v2123_v29 = vld [vmem:[#allocation2 + $0x288] sm:$0xff] }
0x163d   :  { %v3957_v39 = vpop.eup %3956  ;;  %2144 = vmatpush.msrb.mxu2 %v2123_v29 }
0x163e   :  { %3958 = vpow2.f32 %v1959_v38  ;;  %v1979_v12 = vsel %vm258_vm3, %v3957_v39, 0.0 }
0x163f   :  { %1980 = vadd.xlane.f32.xlu2 %v1979_v12  ;;  %3960 = vrcp.f32 %v1963_v10  ;;  %2145 = vmatpush.msrb.mxu2 %v2122_v5  ;;  %v2120_v12 = vld [vmem:[#allocation2 + $0x270] sm:$0xff] }
0x1641   :  { %v3740_v1 = vpop.permute.xlu0 %3739 }
0x1642   :  { %v3741_v53 = vunpack.i.l.bf16 %v3740_v1  ;;  %v3742_v15 = vunpack.i.h.bf16 %v3740_v1 }
0x1644   :  { %v3959_v40 = vpop.eup %3958 }
0x1645   :  { %v1982_v27 = vsel %vm258_vm3, %v3959_v40, 0.0  ;;  %v3961_v17 = vpop.eup %3960 }
0x1646   :  { %1983 = vadd.xlane.f32.xlu0 %v1982_v27  ;;  %v1993_v21 = vmul.f32 %v3961_v17, %v5028_v47 }
0x164a   :  { %v3735_v59 = vpop.permute.xlu1 %3734 }
0x164b   :  { %v3736_v19 = vunpack.i.l.bf16 %v3735_v59  ;;  %v3737_v14 = vunpack.i.h.bf16 %v3735_v59 }
0x164d   :  { %2061 = vmatpush.msrb.mxu3 %v3736_v19 }
0x164f   :  { %2062 = vmatpush.msrb.mxu3 %v3737_v14 }
0x1651   :  { %2063 = vmatpush.msrb.mxu3 %v3741_v53 }
0x1653   :  { %2064 = vmatpush.msrb.mxu3 %v3742_v15 }
0x1654   :  { %3564 = vmatmul.msk.f32.vlgmr.msrb.gmra.mxu3 %vm258_vm3, %v1993_v21 }
0x166c   :  { %v1966_v43 = vpop.xlane.xlu0 %1965 }
0x166d   :  { %3962 = vrcp.f32 %v1966_v43 }
0x1673   :  { %v3963_v52 = vpop.eup %3962 }
0x1674   :  { %v1994_v26 = vmul.f32 %v3963_v52, %v5046_v48 }
0x1675   :  { %v1969_v57 = vpop.xlane.xlu1 %1968 }
0x1676   :  { %3964 = vrcp.f32 %v1969_v57  ;;  %3565 = vmatmul.msk.f32.gmra.mxu3 %vm258_vm3, %v1994_v26  ;;  %v3805_v26 = vld [vmem:[#allocation2 + $0x290] ss:$0 sm:$0xff] }
0x1678   :  { %v1972_v35 = vpop.xlane.xlu2 %1971 }
0x1679   :  { %3966 = vrcp.f32 %v1972_v35 }
0x167c   :  { %v3965_v11 = vpop.eup %3964 }
0x167d   :  { %v1995_v45 = vmul.f32 %v3965_v11, %v5050_v9 }
0x167f   :  { %3566 = vmatmul.msk.f32.gmra.mxu3 %vm258_vm3, %v1995_v45  ;;  %v3967_v47 = vpop.eup %3966 }
0x1680   :  { %v1996_v41 = vmul.f32 %v3967_v47, %v5054_v55 }
0x1687   :  { %3567 = vmatmul.msk.f32.gmra.mxu3 %vm258_vm3, %v1996_v41 }
0x16aa   :  { %v1975_v37 = vpop.xlane.xlu2 %1974 }
0x16ab   :  { %3968 = vrcp.f32 %v1975_v37 }
0x16ae   :  { %v1978_v63 = vpop.xlane.xlu0 %1977 }
0x16af   :  { %3970 = vrcp.f32 %v1978_v63 }
0x16b1   :  { %v3969_v48 = vpop.eup %3968 }
0x16b2   :  { %v1997_v10 = vmul.f32 %v3969_v48, %v3953_v13  ;;  %v1981_v49 = vpop.xlane.xlu2 %1980 }
0x16b3   :  { %3972 = vrcp.f32 %v1981_v49 }
0x16b4   :  { %3568 = vmatmul.msk.f32.gmra.mxu3 %vm258_vm3, %v1997_v10 }
0x16b5   :  { %v3971_v23 = vpop.eup %3970 }
0x16b6   :  { %v1998_v6 = vmul.f32 %v3971_v23, %v3955_v18 }
0x16b9   :  { %v1984_v9 = vpop.xlane.xlu0 %1983  ;;  %v3973_v0 = vpop.eup %3972 }
0x16ba   :  { %3974 = vrcp.f32 %v1984_v9  ;;  %v1999_v55 = vmul.f32 %v3973_v0, %v3957_v39  ;;  %v2121_v39 = vld [vmem:[#allocation2 + $0x278] sm:$0xff] }
0x16bb   :  { %2146 = vmatpush.msrb.mxu2 %v2121_v39 }
0x16bc   :  { %3569 = vmatmul.msk.f32.gmra.mxu3 %vm258_vm3, %v1998_v6 }
0x16bd   :  { %2147 = vmatpush.msrb.mxu2 %v2120_v12  ;;  %v3806_v12 = vld [vmem:[#allocation2 + $0x298] ss:$0 sm:$0xff] }
0x16c0   :  { %v3975_v7 = vpop.eup %3974 }
0x16c1   :  { %v2000_v51 = vmul.f32 %v3975_v7, %v3959_v40 }
0x16c4   :  { %3570 = vmatmul.msk.f32.gmra.mxu3 %vm258_vm3, %v1999_v55 }
0x16cc   :  { %3571 = vmatmul.msk.f32.gmra.mxu3 %vm258_vm3, %v2000_v51  ;;  %v2211_v51 = vld [vmem:[#allocation2 + $0x2b8] sm:$0xff] }
0x16d7   :  { %v2066_v61 = vpop.f32.mrf.mxu3 }
0x16f9   :  { %v2069_v25 = vpop.f32.mrf.mxu3 }
0x16fa   :  { %2091 = vrot.lane.b32.xlu1 %v2069_v25, %s4114_s18  ;;  %v2209_v25 = vld [vmem:[#allocation2 + $0x2a8] sm:$0xff] }
0x1702   :  { %v2072_v13 = vpop.f32.mrf.mxu3 }
0x1703   :  { %2095 = vrot.lane.b32.xlu2 %v2072_v13, %s4121_s26 }
0x170a   :  { %v2075_v54 = vpop.f32.mrf.mxu3 }
0x170b   :  { %2099 = vrot.lane.b32.xlu0 %v2075_v54, %s4122_s27 }
0x1737   :  { %v2078_v33 = vpop.f32.mrf.mxu3 }
0x173f   :  { %v2081_v18 = vpop.f32.mrf.mxu3 }
0x1740   :  { %2106 = vrot.lane.b32.xlu1 %v2081_v18, %s4114_s18 }
0x1747   :  { %v2084_v30 = vpop.f32.mrf.mxu3 }
0x1748   :  { %2110 = vrot.lane.b32.xlu0 %v2084_v30, %s4121_s26 }
0x174f   :  { %v2087_v38 = vpop.f32.mrf.mxu3 }
0x1750   :  { %2114 = vrot.lane.b32.xlu2 %v2087_v38, %s4122_s27 }
0x175d   :  { %v2096_v59 = vpop.permute.xlu2 %2095 }
0x176c   :  { %v2092_v40 = vpop.permute.xlu1 %2091 }
0x176d   :  { %v2102_v27 = vsel %vm168_vm1, %v2066_v61, %v2092_v40  ;;  %v2210_v61 = vld [vmem:[#allocation2 + $0x2b0] sm:$0xff] }
0x176e   :  { %v2103_v19 = vsel %vm449_vm11, %v2102_v27, %v2096_v59  ;;  %v3807_v59 = vld [vmem:[#allocation2 + $0x2a0] ss:$0 sm:$0xff] }
0x177d   :  { %v2100_v1 = vpop.permute.xlu0 %2099 }
0x177e   :  { %v2104_v14 = vsel %vm5480_vm4, %v2103_v19, %v2100_v1 }
0x177f   :  { %3572 = vmatmul.msk.f32.vlgmr.msrb.gmra.mxu2 %vm108_vm0, %v2104_v14  ;;  %v2253_v14 = vld [vmem:[#allocation2 + $0x308] sm:$0xff] }
0x1780   :  { %2270 = vmatpush.msra.mxu2 %v2253_v14 }
0x17aa   :  { %v2115_v21 = vpop.permute.xlu2 %2114 }
0x17b2   :  { %v2107_v17 = vpop.permute.xlu1 %2106 }
0x17b3   :  { %v2117_v53 = vsel %vm168_vm1, %v2078_v33, %v2107_v17  ;;  %v2252_v17 = vld [vmem:[#allocation2 + $0x300] sm:$0xff] }
0x17b4   :  { %2271 = vmatpush.msra.mxu2 %v2252_v17 }
0x17ba   :  { %v2111_v15 = vpop.permute.xlu0 %2110 }
0x17bb   :  { %v2118_v43 = vsel %vm449_vm11, %v2117_v53, %v2111_v15  ;;  %v2251_v53 = vld [vmem:[#allocation2 + $0x2f8] sm:$0xff] }
0x17bc   :  { %v2119_v52 = vsel %vm5481_vm12, %v2118_v43, %v2115_v21  ;;  %v2250_v43 = vld [vmem:[#allocation2 + $0x2f0] sm:$0xff]  ;;  %2272 = vmatpush.msra.mxu2 %v2251_v53  ;;  %v2342_v53 = vld [vmem:[#allocation2 + $0x340] sm:$0xff] }
0x17bd   :  { %3573 = vmatmul.msk.f32.gmra.mxu2 %vm108_vm0, %v2119_v52 }
0x17be   :  { %2273 = vmatpush.msra.mxu2 %v2250_v43  ;;  %v2339_v43 = vld [vmem:[#allocation2 + $0x328] sm:$0xff] }
0x1802   :  { %v2149_v57 = vpop.f32.mrf.mxu2 }
0x1803   :  { %v2150_v35 = vadd.f32 %v3805_v26, %v2149_v57 }
0x1805   :  { %v2155_v11 = vadd.f32 %v2150_v35, %v4936_v24 }
0x1807   :  { %v2159_v45 = vsel %vm108_vm0, %v2155_v11, 0.0 }
0x1808   :  { %2160 = vadd.xlane.f32.xlu1 %v2159_v45 }
0x1840   :  { %v2152_v47 = vpop.f32.mrf.mxu2 }
0x1841   :  { %v2153_v41 = vadd.f32 %v3805_v26, %v2152_v47  ;;  %v2249_v26 = vld [vmem:[#allocation2 + $0x2e8] sm:$0xff] }
0x1842   :  { %2274 = vmatpush.msra.mxu2 %v2249_v26 }
0x1843   :  { %v2156_v37 = vadd.f32 %v2153_v41, %v4957_v36  ;;  %v2212_v36 = vld [vmem:[#allocation2 + $0x2c0] sm:$0xff] }
0x1844   :  { %2233 = vmatpush.msrb.mxu0 %v2212_v36 }
0x1845   :  { %v2162_v63 = vsel %vm108_vm0, %v2156_v37, 0.0 }
0x1846   :  { %2163 = vadd.xlane.f32.xlu0 %v2162_v63  ;;  %2234 = vmatpush.msrb.mxu0 %v2211_v51 }
0x1848   :  { %2235 = vmatpush.msrb.mxu0 %v2210_v61 }
0x184a   :  { %2236 = vmatpush.msrb.mxu0 %v2209_v25 }
0x184c   :  { %2363 = vmatpush.msra.mxu0 %v2342_v53 }
0x187b   :  { %v2161_v48 = vpop.xlane.xlu1 %2160 }
0x187c   :  { %v2165_v10 = vmul.f32 %v2161_v48, %v4455_v8 }
0x187e   :  { %v2167_v49 = vsub.f32 %v2155_v11, %v2165_v10 }
0x1880   :  { %v2169_v23 = vmul.f32 %v2167_v49, %v2167_v49 }
0x1882   :  { %v2171_v6 = vsel %vm108_vm0, %v2169_v23, 0.0  ;;  %v2247_v23 = vld [vmem:[#allocation2 + $0x2d8] sm:$0xff] }
0x1883   :  { %2172 = vadd.xlane.f32.xlu2 %v2171_v6  ;;  %v2246_v6 = vld [vmem:[#allocation2 + $0x2d0] sm:$0xff] }
0x18b9   :  { %v2164_v9 = vpop.xlane.xlu0 %2163 }
0x18ba   :  { %v2166_v24 = vmul.f32 %v2164_v9, %v4455_v8  ;;  %v3808_v9 = vld [vmem:[#allocation2 + $0x2c8] ss:$0 sm:$0xff] }
0x18bc   :  { %v2168_v0 = vsub.f32 %v2156_v37, %v2166_v24 }
0x18be   :  { %v2170_v55 = vmul.f32 %v2168_v0, %v2168_v0 }
0x18c0   :  { %v2174_v7 = vsel %vm108_vm0, %v2170_v55, 0.0 }
0x18c1   :  { %2175 = vadd.xlane.f32.xlu1 %v2174_v7 }
0x18f6   :  { %v2173_v13 = vpop.xlane.xlu2 %2172 }
0x18f7   :  { %v2177_v54 = vmul.f32 %v2173_v13, %v4455_v8 }
0x18f9   :  { %v2179_v33 = vadd.f32 1e-05, %v2177_v54 }
0x18fb   :  { %3976 = vrsqrt.f32 %v2179_v33  ;;  %vm2187_vm15 = vweird.f32 %v2179_v33 }
0x1901   :  { %v3977_v18 = vpop.eup %3976 }
0x1902   :  { %v2182_v30 = vmul.f32 %v3977_v18, %v2179_v33  ;;  %vm2188_vm5 = vweird.f32 %v3977_v18 }
0x1903   :  { %vm2189_vm6 = vmor %vm2187_vm15, %vm2188_vm5  ;;  %vm5482_vm5 = vcmask 195584  }
0x1904   :  { %v2183_v29 = vmul.f32 %v3977_v18, %v2182_v30  ;;  %vm5483_vm15 = vmmov %vm5482_vm5 }
0x1906   :  { %v2184_v5 = vmul.f32 0.5, %v2183_v29 }
0x1908   :  { %v2185_v38 = vsub.f32 1.5, %v2184_v5 }
0x190a   :  { %v2186_v39 = vmul.f32 %v3977_v18, %v2185_v38 }
0x190c   :  { %v2190_v40 = vsel %vm2189_vm6, %v3977_v18, %v2186_v39 }
0x190d   :  { %v2201_v27 = vmul.f32 %v2190_v40, %v2167_v49  ;;  %v2248_v49 = vld [vmem:[#allocation2 + $0x2e0] sm:$0xff] }
0x190e   :  { %2275 = vmatpush.msra.mxu2 %v2248_v49 }
0x190f   :  { %v2204_v19 = vmul.f32 %v3806_v12, %v2201_v27 }
0x1910   :  { %2276 = vmatpush.msra.mxu2 %v2247_v23 }
0x1911   :  { %v2207_v1 = vadd.f32 %v3807_v59, %v2204_v19 }
0x1912   :  { %2277 = vmatpush.msra.mxu2 %v2246_v6 }
0x1913   :  { %3574 = vmatmul.msk.f32.vlgmr.msrb.gmra.mxu0 %vm108_vm0, %v2207_v1 }
0x1934   :  { %v2176_v15 = vpop.xlane.xlu1 %2175 }
0x1935   :  { %v2178_v21 = vmul.f32 %v2176_v15, %v4455_v8  ;;  %v2341_v15 = vld [vmem:[#allocation2 + $0x338] sm:$0xff] }
0x1936   :  { %2364 = vmatpush.msra.mxu0 %v2341_v15 }
0x1937   :  { %v2180_v52 = vadd.f32 1e-05, %v2178_v21  ;;  %v2340_v21 = vld [vmem:[#allocation2 + $0x330] sm:$0xff] }
0x1938   :  { %2365 = vmatpush.msra.mxu0 %v2340_v21 }
0x1939   :  { %3978 = vrsqrt.f32 %v2180_v52  ;;  %vm2197_vm8 = vweird.f32 %v2180_v52 }
0x193a   :  { %2366 = vmatpush.msra.mxu0 %v2339_v43 }
0x193f   :  { %v3979_v57 = vpop.eup %3978 }
0x1940   :  { %v2192_v35 = vmul.f32 %v3979_v57, %v2180_v52  ;;  %vm2198_vm7 = vweird.f32 %v3979_v57 }
0x1941   :  { %vm2199_vm13 = vmor %vm2197_vm8, %vm2198_vm7 }
0x1942   :  { %v2193_v11 = vmul.f32 %v3979_v57, %v2192_v35 }
0x1944   :  { %v2194_v45 = vmul.f32 0.5, %v2193_v11 }
0x1946   :  { %v2195_v47 = vsub.f32 1.5, %v2194_v45 }
0x1948   :  { %v2196_v41 = vmul.f32 %v3979_v57, %v2195_v47 }
0x194a   :  { %v2200_v37 = vsel %vm2199_vm13, %v3979_v57, %v2196_v41 }
0x194b   :  { %v2202_v63 = vmul.f32 %v2200_v37, %v2168_v0  ;;  %v3809_v0 = vld [vmem:[#allocation2 + $0x310] ss:$0 sm:$0xff] }
0x194d   :  { %v2205_v48 = vmul.f32 %v3806_v12, %v2202_v63  ;;  %v3810_v63 = vld [vmem:[#allocation2 + $0x318] ss:$0 sm:$0xff] }
0x194f   :  { %v2208_v10 = vadd.f32 %v3807_v59, %v2205_v48 }
0x1951   :  { %3575 = vmatmul.msk.f32.gmra.mxu0 %vm108_vm0, %v2208_v10 }
0x1990   :  { %v2238_v24 = vpop.f32.mrf.mxu0 }
0x1991   :  { %v2239_v55 = vadd.f32 %v3808_v9, %v2238_v24 }
0x1993   :  { %v2244_v7 = vmax.f32 %v2239_v55, 0.0 }
0x1995   :  { %3576 = vmatmul.msk.f32.vlgmr.msra.gmra.mxu2 %vm258_vm3, %v2244_v7 }
0x19ce   :  { %v2241_v36 = vpop.f32.mrf.mxu0 }
0x19cf   :  { %v2242_v51 = vadd.f32 %v3808_v9, %v2241_v36 }
0x19d1   :  { %v2245_v61 = vmax.f32 %v2242_v51, 0.0 }
0x19d3   :  { %3577 = vmatmul.msk.f32.gmra.mxu2 %vm258_vm3, %v2245_v61 }
0x1a18   :  { %v2279_v25 = vpop.f32.mrf.mxu2 }
0x1a19   :  { %v2280_v13 = vadd.f32 %v3809_v0, %v2279_v25 }
0x1a1b   :  { %v2285_v54 = vadd.f32 %v2280_v13, %v2207_v1 }
0x1a1d   :  { %v2289_v33 = vsel %vm108_vm0, %v2285_v54, 0.0 }
0x1a1e   :  { %2290 = vadd.xlane.f32.xlu0 %v2289_v33 }
0x1a56   :  { %v2282_v18 = vpop.f32.mrf.mxu2 }
0x1a57   :  { %v2283_v30 = vadd.f32 %v3809_v0, %v2282_v18 }
0x1a59   :  { %v2286_v29 = vadd.f32 %v2283_v30, %v2208_v10  ;;  %v3811_v10 = vld [vmem:[#allocation2 + $0x320] ss:$0 sm:$0xff] }
0x1a5b   :  { %v2292_v5 = vsel %vm108_vm0, %v2286_v29, 0.0 }
0x1a5c   :  { %2293 = vadd.xlane.f32.xlu2 %v2292_v5 }
0x1a91   :  { %v2291_v38 = vpop.xlane.xlu0 %2290 }
0x1a92   :  { %v2295_v39 = vmul.f32 %v2291_v38, %v4455_v8 }
0x1a94   :  { %v2297_v12 = vsub.f32 %v2285_v54, %v2295_v39 }
0x1a96   :  { %v2299_v40 = vmul.f32 %v2297_v12, %v2297_v12 }
0x1a98   :  { %v2301_v27 = vsel %vm108_vm0, %v2299_v40, 0.0 }
0x1a99   :  { %2302 = vadd.xlane.f32.xlu1 %v2301_v27 }
0x1acf   :  { %v2294_v59 = vpop.xlane.xlu2 %2293 }
0x1ad0   :  { %v2296_v19 = vmul.f32 %v2294_v59, %v4455_v8 }
0x1ad2   :  { %v2298_v1 = vsub.f32 %v2286_v29, %v2296_v19  ;;  %v3812_v29 = vld [vmem:[#allocation2 + $0x348] ss:$0 sm:$0xff] }
0x1ad4   :  { %v2300_v14 = vmul.f32 %v2298_v1, %v2298_v1 }
0x1ad6   :  { %v2304_v17 = vsel %vm108_vm0, %v2300_v14, 0.0 }
0x1ad7   :  { %2305 = vadd.xlane.f32.xlu0 %v2304_v17 }
0x1b0c   :  { %v2303_v52 = vpop.xlane.xlu1 %2302 }
0x1b0d   :  { %v2307_v26 = vmul.f32 %v2303_v52, %v4455_v8 }
0x1b0f   :  { %v2309_v57 = vadd.f32 1e-05, %v2307_v26 }
0x1b11   :  { %3980 = vrsqrt.f32 %v2309_v57  ;;  %vm2317_vm14 = vweird.f32 %v2309_v57 }
0x1b17   :  { %v3981_v35 = vpop.eup %3980 }
0x1b18   :  { %v2312_v11 = vmul.f32 %v3981_v35, %v2309_v57  ;;  %vm2318_vm2 = vweird.f32 %v3981_v35 }
0x1b19   :  { %vm2319_vm9 = vmor %vm2317_vm14, %vm2318_vm2 }
0x1b1a   :  { %v2313_v45 = vmul.f32 %v3981_v35, %v2312_v11 }
0x1b1c   :  { %v2314_v47 = vmul.f32 0.5, %v2313_v45 }
0x1b1e   :  { %v2315_v41 = vsub.f32 1.5, %v2314_v47 }
0x1b20   :  { %v2316_v37 = vmul.f32 %v3981_v35, %v2315_v41 }
0x1b22   :  { %v2320_v48 = vsel %vm2319_vm9, %v3981_v35, %v2316_v37  ;;  %vm5484_vm9 = vmmov %vm5482_vm5 }
0x1b23   :  { %v2331_v49 = vmul.f32 %v2320_v48, %v2297_v12 }
0x1b25   :  { %v2334_v23 = vmul.f32 %v3810_v63, %v2331_v49 }
0x1b27   :  { %v5109_v6 = vadd.f32 %v3811_v10, %v2334_v23 }
0x1b29   :  { %3578 = vmatmul.msk.f32.vlgmr.msra.gmra.mxu0 %vm108_vm0, %v5109_v6 }
0x1b4a   :  { %v2306_v9 = vpop.xlane.xlu0 %2305 }
0x1b4b   :  { %v2308_v24 = vmul.f32 %v2306_v9, %v4455_v8 }
0x1b4d   :  { %v2310_v55 = vadd.f32 1e-05, %v2308_v24 }
0x1b4f   :  { %3982 = vrsqrt.f32 %v2310_v55  ;;  %vm2327_vm4 = vweird.f32 %v2310_v55 }
0x1b55   :  { %v3983_v7 = vpop.eup %3982 }
0x1b56   :  { %v2322_v36 = vmul.f32 %v3983_v7, %v2310_v55  ;;  %vm2328_vm10 = vweird.f32 %v3983_v7 }
0x1b57   :  { %vm2329_vm12 = vmor %vm2327_vm4, %vm2328_vm10 }
0x1b58   :  { %v2323_v51 = vmul.f32 %v3983_v7, %v2322_v36  ;;  %vm5485_vm10 = vmmov %vm5482_vm5 }
0x1b5a   :  { %v2324_v61 = vmul.f32 0.5, %v2323_v51 }
0x1b5c   :  { %v2325_v0 = vsub.f32 1.5, %v2324_v61 }
0x1b5e   :  { %v2326_v25 = vmul.f32 %v3983_v7, %v2325_v0 }
0x1b60   :  { %v2330_v13 = vsel %vm2329_vm12, %v3983_v7, %v2326_v25 }
0x1b61   :  { %v2332_v54 = vmul.f32 %v2330_v13, %v2298_v1 }
0x1b63   :  { %v2335_v33 = vmul.f32 %v3810_v63, %v2332_v54 }
0x1b65   :  { %v5114_v18 = vadd.f32 %v3811_v10, %v2335_v33 }
0x1b67   :  { %3579 = vmatmul.msk.f32.gmra.mxu0 %vm108_vm0, %v5114_v18 }
0x1ba6   :  { %v2368_v30 = vpop.f32.mrf.mxu0 }
0x1ba7   :  { %v5126_v39 = vadd.f32 %v3812_v29, %v2368_v30 }
0x1be4   :  { %v2371_v5 = vpop.f32.mrf.mxu0 }
0x1be5   :  { %v5118_v38 = vadd.f32 %v3812_v29, %v2371_v5 }
0x1be7   :  { %2382 = vrot.lane.b32.xlu0 %v5118_v38, %s4116_s23  ;;  %2384 = vrot.lane.b32.xlu1 %v5118_v38, %s4115_s22 }
0x1be8   :  { %2386 = vrot.lane.b32.xlu2 %v5118_v38, %s4117_s0 }
0x1bef   :  { %2377 = vrot.lane.b32.xlu0 %v5126_v39, %s4115_s22  ;;  %2375 = vrot.lane.b32.xlu1 %v5126_v39, %s4116_s23 }
0x1bf0   :  { %2379 = vrot.lane.b32.xlu2 %v5126_v39, %s4117_s0 }
0x1c42   :  { %v5134_v12 = vpop.permute.xlu2 %2386 }
0x1c43   :  { %2402 = vrot.lane.b32.xlu2 %v5134_v12, %s4118_s24 }
0x1c4a   :  { %v5149_v1 = vpop.permute.xlu2 %2379 }
0x1c4b   :  { %2396 = vrot.lane.b32.xlu2 %v5118_v38, %s4118_s24 }
0x1c59   :  { %v2383_v40 = vpop.permute.xlu0 %2382  ;;  %v5140_v27 = vpop.permute.xlu1 %2384 }
0x1c5a   :  { %2398 = vrot.lane.b32.xlu1 %v2383_v40, %s4118_s24  ;;  %2400 = vrot.lane.b32.xlu0 %v5140_v27, %s4118_s24 }
0x1c61   :  { %v5145_v59 = vpop.permute.xlu0 %2377  ;;  %v5147_v19 = vpop.permute.xlu1 %2375 }
0x1c62   :  { %2392 = vrot.lane.b32.xlu1 %v5145_v59, %s4118_s24  ;;  %2390 = vrot.lane.b32.xlu2 %v5147_v19, %s4118_s24 }
0x1c63   :  { %2394 = vrot.lane.b32.xlu0 %v5149_v1, %s4118_s24 }
0x1c6b   :  { %2388 = vrot.lane.b32.xlu0 %v5126_v39, %s4118_s24 }
0x1c9d   :  { %v2403_v14 = vpop.permute.xlu2 %2402 }
0x1c9e   :  { %3580 = vmatpush.xpose.msk.msra.mxu3 %vm168_vm1, %v2403_v14 }
0x1ca5   :  { %v2397_v15 = vpop.permute.xlu2 %2396 }
0x1cbc   :  { %v2391_v52 = vpop.permute.xlu2 %2390 }
0x1ccc   :  { %v2401_v17 = vpop.permute.xlu0 %2400  ;;  %v2399_v53 = vpop.permute.xlu1 %2398 }
0x1ccd   :  { %3581 = vmatpush.xpose.msk.msra.mxu3 %vm168_vm1, %v2401_v17 }
0x1cd1   :  { %3582 = vmatpush.xpose.msk.msra.mxu3 %vm168_vm1, %v2399_v53 }
0x1cd4   :  { %v2393_v43 = vpop.permute.xlu1 %2392 }
0x1cd5   :  { %3583 = vmatpush.xpose.msk.msra.mxu3 %vm168_vm1, %v2397_v15  ;;  %v2395_v21 = vpop.permute.xlu0 %2394 }
0x1cd9   :  { %3584 = vmatpush.xpose.msk.msra.mxu3 %vm168_vm1, %v2395_v21 }
0x1cdd   :  { %3585 = vmatpush.xpose.msk.msra.mxu3 %vm168_vm1, %v2393_v43  ;;  %v2389_v26 = vpop.permute.xlu0 %2388 }
0x1ce1   :  { %3586 = vmatpush.xpose.msk.msra.mxu3 %vm168_vm1, %v2391_v52 }
0x1ce5   :  { %3587 = vmatpush.xpose.msk.msra.mxu3 %vm168_vm1, %v2389_v26 }
0x1ce8   :  { %3588 = vmatmul.msk.f32.vlgmr.msra.gmra.mxu3 %vm168_vm1, %v5126_v39 }
0x1cf0   :  { %3589 = vmatmul.msk.f32.gmra.mxu3 %vm168_vm1, %v5147_v19 }
0x1cf8   :  { %3590 = vmatmul.msk.f32.gmra.mxu3 %vm168_vm1, %v5145_v59 }
0x1d00   :  { %3591 = vmatmul.msk.f32.gmra.mxu3 %vm168_vm1, %v5149_v1 }
0x1d08   :  { %3592 = vmatmul.msk.f32.gmra.mxu3 %vm168_vm1, %v5118_v38 }
0x1d10   :  { %3593 = vmatmul.msk.f32.gmra.mxu3 %vm168_vm1, %v2383_v40 }
0x1d18   :  { %3594 = vmatmul.msk.f32.gmra.mxu3 %vm168_vm1, %v5140_v27 }
0x1d20   :  { %3595 = vmatmul.msk.f32.gmra.mxu3 %vm168_vm1, %v5134_v12 }
0x1d6b   :  { %v2453_v57 = vpop.f32.mrf.mxu3 }
0x1d6c   :  { %v2477_v35 = vmul.f32 0.35355338, %v2453_v57 }
0x1d6e   :  { %v2485_v11 = vadd.f32 %v2477_v35, %v4757_v44 }
0x1d70   :  { %v2493_v45 = vsel %vm258_vm3, %v2485_v11, -inf }
0x1d71   :  { %2494 = vmax.xlane.f32.xlu1 %v2493_v45 }
0x1d73   :  { %v2456_v47 = vpop.f32.mrf.mxu3 }
0x1d74   :  { %v2478_v41 = vmul.f32 0.35355338, %v2456_v47 }
0x1d76   :  { %v2486_v37 = vadd.f32 %v2478_v41, %v4769_v31 }
0x1d78   :  { %v2496_v63 = vsel %vm258_vm3, %v2486_v37, -inf }
0x1d79   :  { %2497 = vmax.xlane.f32.xlu2 %v2496_v63 }
0x1d7b   :  { %v2459_v48 = vpop.f32.mrf.mxu3 }
0x1d7c   :  { %v2479_v10 = vmul.f32 0.35355338, %v2459_v48  ;;  %v3753_v48 = vpack.i.bf16 %v5145_v59, %v5149_v1 }
0x1d7e   :  { %v5187_v49 = vadd.f32 %v2479_v10, %v4781_v62  ;;  %v3748_v62 = vpack.i.bf16 %v5118_v38, %v2383_v40 }
0x1d80   :  { %v2499_v23 = vsel %vm258_vm3, %v5187_v49, -inf }
0x1d81   :  { %2500 = vmax.xlane.f32.xlu0 %v2499_v23 }
0x1d83   :  { %v2462_v44 = vpop.f32.mrf.mxu3 }
0x1d84   :  { %v2480_v9 = vmul.f32 0.35355338, %v2462_v44 }
0x1d86   :  { %v2488_v24 = vadd.f32 %v2480_v9, %v4793_v60  ;;  %v3743_v60 = vpack.i.bf16 %v5140_v27, %v5134_v12  ;;  %v3758_v12 = vpack.i.bf16 %v5126_v39, %v5147_v19 }
0x1d88   :  { %v2502_v55 = vsel %vm258_vm3, %v2488_v24, -inf }
0x1d89   :  { %2503 = vmax.xlane.f32.xlu2 %v2502_v55 }
0x1d8b   :  { %v2465_v31 = vpop.f32.mrf.mxu3 }
0x1d8c   :  { %v2481_v7 = vmul.f32 0.35355338, %v2465_v31 }
0x1d8e   :  { %v2489_v36 = vadd.f32 %v2481_v7, %v4801_v4 }
0x1d90   :  { %v2505_v51 = vsel %vm258_vm3, %v2489_v36, -inf }
0x1d91   :  { %2506 = vmax.xlane.f32.xlu1 %v2505_v51 }
0x1d93   :  { %v2468_v61 = vpop.f32.mrf.mxu3 }
0x1d94   :  { %v2482_v4 = vmul.f32 0.35355338, %v2468_v61 }
0x1d95   :  { %3749 = vrot.lane.b32.xlu0 %v3748_v62, %s4120_s25 }
0x1d96   :  { %v5203_v33 = vadd.f32 %v2482_v4, %v4830_v16 }
0x1d98   :  { %v2508_v29 = vsel %vm258_vm3, %v5203_v33, -inf }
0x1d9b   :  { %v2471_v0 = vpop.f32.mrf.mxu3 }
0x1d9c   :  { %v2483_v25 = vmul.f32 0.35355338, %v2471_v0 }
0x1d9e   :  { %v2491_v13 = vadd.f32 %v2483_v25, %v4815_v3 }
0x1da0   :  { %v2511_v54 = vsel %vm258_vm3, %v2491_v13, -inf }
0x1da1   :  { %3744 = vrot.lane.b32.xlu2 %v3743_v60, %s4120_s25  ;;  %2512 = vmax.xlane.f32.xlu1 %v2511_v54 }
0x1da3   :  { %v2474_v30 = vpop.f32.mrf.mxu3 }
0x1da4   :  { %v2484_v5 = vmul.f32 0.35355338, %v2474_v30 }
0x1da6   :  { %v5208_v3 = vadd.f32 %v2484_v5, %v4838_v32 }
0x1da8   :  { %v2514_v38 = vsel %vm258_vm3, %v5208_v3, -inf }
0x1dbf   :  { %2509 = vmax.xlane.f32.xlu0 %v2508_v29 }
0x1dca   :  { %2515 = vmax.xlane.f32.xlu2 %v2514_v38 }
0x1dd3   :  { %3759 = vrot.lane.b32.xlu0 %v3758_v12, %s4120_s25 }
0x1de4   :  { %v2495_v16 = vpop.xlane.xlu1 %2494 }
0x1de5   :  { %v2517_v40 = vsub.f32 %v2485_v11, %v2495_v16 }
0x1de7   :  { %v2525_v27 = vmul.f32 1.442695, %v2517_v40 }
0x1de9   :  { %3984 = vpow2.f32 %v2525_v27 }
0x1dec   :  { %v2498_v14 = vpop.xlane.xlu2 %2497 }
0x1ded   :  { %v2518_v17 = vsub.f32 %v2486_v37, %v2498_v14 }
0x1def   :  { %v5215_v53 = vpop.eup %3984  ;;  %v2527_v15 = vmul.f32 1.442695, %v2518_v17 }
0x1df0   :  { %v2541_v32 = vsel %vm258_vm3, %v5215_v53, 0.0 }
0x1df1   :  { %2542 = vadd.xlane.f32.xlu1 %v2541_v32  ;;  %3986 = vpow2.f32 %v2527_v15 }
0x1df4   :  { %v2501_v52 = vpop.xlane.xlu0 %2500 }
0x1df7   :  { %v5219_v21 = vpop.eup %3986 }
0x1df8   :  { %v2544_v39 = vsel %vm258_vm3, %v5219_v21, 0.0 }
0x1dfc   :  { %v2504_v43 = vpop.xlane.xlu2 %2503 }
0x1dfd   :  { %v2520_v19 = vsub.f32 %v2488_v24, %v2504_v43  ;;  %2545 = vadd.xlane.f32.xlu0 %v2544_v39 }
0x1dff   :  { %v2531_v26 = vmul.f32 1.442695, %v2520_v19 }
0x1e01   :  { %3988 = vpow2.f32 %v2531_v26 }
0x1e04   :  { %v3745_v57 = vpop.permute.xlu2 %3744  ;;  %v2507_v35 = vpop.xlane.xlu1 %2506 }
0x1e05   :  { %v3746_v11 = vunpack.i.l.bf16 %v3745_v57  ;;  %v2521_v45 = vsub.f32 %v2489_v36, %v2507_v35  ;;  %v3747_v41 = vunpack.i.h.bf16 %v3745_v57  ;;  %v2519_v36 = vsub.f32 %v5187_v49, %v2501_v52 }
0x1e07   :  { %v5223_v47 = vpop.eup %3988  ;;  %v2533_v37 = vmul.f32 1.442695, %v2521_v45  ;;  %v3750_v63 = vpop.permute.xlu0 %3749  ;;  %2637 = vmatpush.msrb.mxu2 %v3746_v11  ;;  %v2529_v51 = vmul.f32 1.442695, %v2519_v36 }
0x1e08   :  { %v3751_v10 = vunpack.i.l.bf16 %v3750_v63  ;;  %v2550_v23 = vsel %vm258_vm3, %v5223_v47, 0.0  ;;  %v3752_v44 = vunpack.i.h.bf16 %v3750_v63 }
0x1e09   :  { %3990 = vpow2.f32 %v2533_v37  ;;  %2638 = vmatpush.msrb.mxu2 %v3747_v41  ;;  %2551 = vadd.xlane.f32.xlu2 %v2550_v23 }
0x1e0a   :  { %3754 = vrot.lane.b32.xlu1 %v3753_v48, %s4120_s25 }
0x1e0b   :  { %2639 = vmatpush.msrb.mxu2 %v3751_v10 }
0x1e0d   :  { %2640 = vmatpush.msrb.mxu2 %v3752_v44 }
0x1e0f   :  { %v5230_v9 = vpop.eup %3990 }
0x1e10   :  { %v2553_v24 = vsel %vm258_vm3, %v5230_v9, 0.0 }
0x1e11   :  { %2554 = vadd.xlane.f32.xlu2 %v2553_v24 }
0x1e14   :  { %v2513_v55 = vpop.xlane.xlu1 %2512 }
0x1e15   :  { %v2523_v59 = vsub.f32 %v2491_v13, %v2513_v55 }
0x1e17   :  { %v2537_v1 = vmul.f32 1.442695, %v2523_v59 }
0x1e19   :  { %3992 = vpow2.f32 %v2537_v1 }
0x1e1a   :  { %3994 = vpow2.f32 %v2529_v51  ;;  %v2703_v51 = vld [vmem:[#allocation2 + $0x368] sm:$0xff] }
0x1e1b   :  { %2724 = vmatpush.msrb.mxu0 %v2703_v51 }
0x1e1f   :  { %v5234_v31 = vpop.eup %3992 }
0x1e20   :  { %v2559_v7 = vsel %vm258_vm3, %v5234_v31, 0.0  ;;  %v3995_v62 = vpop.eup %3994 }
0x1e21   :  { %2560 = vadd.xlane.f32.xlu2 %v2559_v7  ;;  %v2547_v25 = vsel %vm258_vm3, %v3995_v62, 0.0 }
0x1e32   :  { %v2510_v61 = vpop.xlane.xlu0 %2509 }
0x1e33   :  { %v2522_v0 = vsub.f32 %v5203_v33, %v2510_v61  ;;  %v2701_v61 = vld [vmem:[#allocation2 + $0x358] sm:$0xff] }
0x1e34   :  { %2548 = vadd.xlane.f32.xlu1 %v2547_v25  ;;  %v2827_v25 = vld [vmem:[#allocation2 + $0x3c8] sm:$0xff] }
0x1e35   :  { %v2535_v13 = vmul.f32 1.442695, %v2522_v0  ;;  %v2700_v0 = vld [vmem:[#allocation2 + $0x350] sm:$0xff] }
0x1e37   :  { %3996 = vpow2.f32 %v2535_v13  ;;  %v2826_v13 = vld [vmem:[#allocation2 + $0x3c0] sm:$0xff] }
0x1e3d   :  { %v3997_v60 = vpop.eup %3996  ;;  %v2516_v54 = vpop.xlane.xlu2 %2515 }
0x1e3e   :  { %v2524_v4 = vsub.f32 %v5208_v3, %v2516_v54  ;;  %v2556_v30 = vsel %vm258_vm3, %v3997_v60, 0.0 }
0x1e3f   :  { %2557 = vadd.xlane.f32.xlu0 %v2556_v30 }
0x1e40   :  { %v2539_v29 = vmul.f32 1.442695, %v2524_v4  ;;  %v2825_v4 = vld [vmem:[#allocation2 + $0x3b8] sm:$0xff] }
0x1e42   :  { %3998 = vpow2.f32 %v2539_v29 }
0x1e45   :  { %v3760_v33 = vpop.permute.xlu0 %3759 }
0x1e46   :  { %v3761_v17 = vunpack.i.l.bf16 %v3760_v33  ;;  %v3762_v3 = vunpack.i.h.bf16 %v3760_v33 }
0x1e48   :  { %v3999_v49 = vpop.eup %3998 }
0x1e49   :  { %v2562_v5 = vsel %vm258_vm3, %v3999_v49, 0.0 }
0x1e4a   :  { %2563 = vadd.xlane.f32.xlu0 %v2562_v5  ;;  %v2824_v5 = vld [vmem:[#allocation2 + $0x3b0] sm:$0xff] }
0x1e64   :  { %v2543_v38 = vpop.xlane.xlu1 %2542 }
0x1e65   :  { %4000 = vrcp.f32 %v2543_v38 }
0x1e6b   :  { %v4001_v14 = vpop.eup %4000 }
0x1e6c   :  { %v2573_v15 = vmul.f32 %v4001_v14, %v5215_v53 }
0x1e70   :  { %v2546_v27 = vpop.xlane.xlu0 %2545 }
0x1e71   :  { %4002 = vrcp.f32 %v2546_v27 }
0x1e77   :  { %v4003_v32 = vpop.eup %4002 }
0x1e78   :  { %v2574_v43 = vmul.f32 %v4003_v32, %v5219_v21 }
0x1e7c   :  { %v3755_v12 = vpop.permute.xlu1 %3754  ;;  %v2552_v19 = vpop.xlane.xlu2 %2551 }
0x1e7d   :  { %v3756_v16 = vunpack.i.l.bf16 %v3755_v12  ;;  %v3757_v40 = vunpack.i.h.bf16 %v3755_v12 }
0x1e7f   :  { %2641 = vmatpush.msrb.mxu2 %v3756_v16 }
0x1e81   :  { %2642 = vmatpush.msrb.mxu2 %v3757_v40 }
0x1e83   :  { %2643 = vmatpush.msrb.mxu2 %v3761_v17  ;;  %v3813_v17 = vld [vmem:[#allocation2 + $0x370] ss:$0 sm:$0xff] }
0x1e84   :  { %v2555_v57 = vpop.xlane.xlu2 %2554 }
0x1e85   :  { %2644 = vmatpush.msrb.mxu2 %v3762_v3 }
0x1e86   :  { %3596 = vmatmul.msk.f32.vlgmr.msrb.gmra.mxu2 %vm258_vm3, %v2573_v15 }
0x1e8e   :  { %3597 = vmatmul.msk.f32.gmra.mxu2 %vm258_vm3, %v2574_v43 }
0x1e94   :  { %v2561_v41 = vpop.xlane.xlu2 %2560 }
0x1ea7   :  { %v2549_v39 = vpop.xlane.xlu1 %2548 }
0x1ea8   :  { %4004 = vrcp.f32 %v2549_v39 }
0x1ea9   :  { %4006 = vrcp.f32 %v2552_v19 }
0x1eaa   :  { %4008 = vrcp.f32 %v2555_v57 }
0x1eae   :  { %v4005_v52 = vpop.eup %4004 }
0x1eaf   :  { %v2575_v26 = vmul.f32 %v4005_v52, %v3995_v62  ;;  %v4007_v35 = vpop.eup %4006  ;;  %v2702_v62 = vld [vmem:[#allocation2 + $0x360] sm:$0xff] }
0x1eb0   :  { %v2576_v53 = vmul.f32 %v4007_v35, %v5223_v47  ;;  %v4009_v45 = vpop.eup %4008  ;;  %2725 = vmatpush.msrb.mxu0 %v2702_v62  ;;  %v3814_v35 = vld [vmem:[#allocation2 + $0x3d0] ss:$0 sm:$0xff] }
0x1eb1   :  { %3598 = vmatmul.msk.f32.gmra.mxu2 %vm258_vm3, %v2575_v26  ;;  %v2577_v21 = vmul.f32 %v4009_v45, %v5230_v9  ;;  %v2791_v45 = vld [vmem:[#allocation2 + $0x398] sm:$0xff] }
0x1eb2   :  { %v2558_v11 = vpop.xlane.xlu0 %2557  ;;  %2726 = vmatpush.msrb.mxu0 %v2701_v61 }
0x1eb3   :  { %4010 = vrcp.f32 %v2558_v11  ;;  %v2792_v11 = vld [vmem:[#allocation2 + $0x3a0] sm:$0xff] }
0x1eb4   :  { %4012 = vrcp.f32 %v2561_v41  ;;  %2727 = vmatpush.msrb.mxu0 %v2700_v0  ;;  %2813 = vmatpush.msrb.mxu1 %v2792_v11 }
0x1eb6   :  { %2842 = vmatpush.msra.mxu0 %v2827_v25  ;;  %2814 = vmatpush.msrb.mxu1 %v2791_v45  ;;  %v3815_v25 = vld [vmem:[#allocation2 + $0x378] ss:$0 sm:$0xff] }
0x1eb8   :  { %2843 = vmatpush.msra.mxu0 %v2826_v13 }
0x1eb9   :  { %3599 = vmatmul.msk.f32.gmra.mxu2 %vm258_vm3, %v2576_v53  ;;  %v4011_v37 = vpop.eup %4010 }
0x1eba   :  { %v2578_v63 = vmul.f32 %v4011_v37, %v3997_v60  ;;  %v4013_v10 = vpop.eup %4012  ;;  %2844 = vmatpush.msra.mxu0 %v2825_v4 }
0x1ebb   :  { %v2579_v47 = vmul.f32 %v4013_v10, %v5234_v31 }
0x1ebc   :  { %2845 = vmatpush.msra.mxu0 %v2824_v5 }
0x1ebd   :  { %v2564_v48 = vpop.xlane.xlu0 %2563 }
0x1ebe   :  { %4014 = vrcp.f32 %v2564_v48  ;;  %v2789_v48 = vld [vmem:[#allocation2 + $0x388] sm:$0xff] }
0x1ec1   :  { %3600 = vmatmul.msk.f32.gmra.mxu2 %vm258_vm3, %v2577_v21 }
0x1ec4   :  { %v4015_v23 = vpop.eup %4014 }
0x1ec5   :  { %v2580_v44 = vmul.f32 %v4015_v23, %v3999_v49 }
0x1ec9   :  { %3601 = vmatmul.msk.f32.gmra.mxu2 %vm258_vm3, %v2578_v63  ;;  %v2790_v63 = vld [vmem:[#allocation2 + $0x390] sm:$0xff] }
0x1eca   :  { %2815 = vmatpush.msrb.mxu1 %v2790_v63 }
0x1ecc   :  { %2816 = vmatpush.msrb.mxu1 %v2789_v48 }
0x1ed1   :  { %3602 = vmatmul.msk.f32.gmra.mxu2 %vm258_vm3, %v2579_v47 }
0x1ed9   :  { %3603 = vmatmul.msk.f32.gmra.mxu2 %vm258_vm3, %v2580_v44 }
0x1f09   :  { %v2646_v9 = vpop.f32.mrf.mxu2 }
0x1f11   :  { %v2649_v24 = vpop.f32.mrf.mxu2 }
0x1f12   :  { %2671 = vrot.lane.b32.xlu1 %v2649_v24, %s4114_s18 }
0x1f34   :  { %v2652_v55 = vpop.f32.mrf.mxu2 }
0x1f35   :  { %2675 = vrot.lane.b32.xlu2 %v2652_v55, %s4121_s26 }
0x1f3c   :  { %v2655_v59 = vpop.f32.mrf.mxu2 }
0x1f3d   :  { %2679 = vrot.lane.b32.xlu0 %v2655_v59, %s4122_s27 }
0x1f44   :  { %v2658_v1 = vpop.f32.mrf.mxu2 }
0x1f4c   :  { %v2661_v7 = vpop.f32.mrf.mxu2 }
0x1f4d   :  { %2686 = vrot.lane.b32.xlu1 %v2661_v7, %s4114_s18 }
0x1f54   :  { %v2664_v31 = vpop.f32.mrf.mxu2 }
0x1f55   :  { %2690 = vrot.lane.b32.xlu0 %v2664_v31, %s4121_s26 }
0x1f5c   :  { %v2667_v36 = vpop.f32.mrf.mxu2 }
0x1f5d   :  { %2694 = vrot.lane.b32.xlu2 %v2667_v36, %s4122_s27 }
0x1f84   :  { %v2672_v60 = vpop.permute.xlu1 %2671 }
0x1f85   :  { %v2682_v30 = vsel %vm168_vm1, %v2646_v9, %v2672_v60 }
0x1f8f   :  { %v2676_v54 = vpop.permute.xlu2 %2675 }
0x1f90   :  { %v2683_v29 = vsel %vm449_vm11, %v2682_v30, %v2676_v54  ;;  %v3816_v54 = vld [vmem:[#allocation2 + $0x380] ss:$0 sm:$0xff] }
0x1faf   :  { %v2680_v49 = vpop.permute.xlu0 %2679 }
0x1fb0   :  { %v2684_v38 = vsel %vm5482_vm5, %v2683_v29, %v2680_v49 }
0x1fb1   :  { %3604 = vmatmul.msk.f32.vlgmr.msrb.gmra.mxu0 %vm108_vm0, %v2684_v38 }
0x1fb7   :  { %v2695_v40 = vpop.permute.xlu2 %2694 }
0x1fbf   :  { %v2687_v33 = vpop.permute.xlu1 %2686 }
0x1fc0   :  { %v2697_v12 = vsel %vm168_vm1, %v2658_v1, %v2687_v33 }
0x1fc7   :  { %v2691_v16 = vpop.permute.xlu0 %2690 }
0x1fc8   :  { %v2698_v27 = vsel %vm449_vm11, %v2697_v12, %v2691_v16 }
0x1fc9   :  { %v2699_v14 = vsel %vm5483_vm15, %v2698_v27, %v2695_v40 }
0x1fca   :  { %3605 = vmatmul.msk.f32.gmra.mxu0 %vm108_vm0, %v2699_v14 }
0x1fd2   :  { %3608 = vmatmul.msk.f32.vlgmr.msra.gmra.mxu0 %vm108_vm0, %v4922_v56 }
0x1fda   :  { %3609 = vmatmul.msk.f32.gmra.mxu0 %vm108_vm0, %v4929_v22 }
0x202e   :  { %v2729_v3 = vpop.f32.mrf.mxu0 }
0x202f   :  { %v2730_v15 = vadd.f32 %v3813_v17, %v2729_v3 }
0x2031   :  { %v2735_v32 = vadd.f32 %v2730_v15, %v5109_v6 }
0x2033   :  { %v2739_v43 = vsel %vm108_vm0, %v2735_v32, 0.0 }
0x2034   :  { %2740 = vadd.xlane.f32.xlu1 %v2739_v43 }
0x2047   :  { %v2732_v39 = vpop.f32.mrf.mxu0 }
0x2048   :  { %v2733_v19 = vadd.f32 %v3813_v17, %v2732_v39 }
0x204a   :  { %v2736_v52 = vadd.f32 %v2733_v19, %v5114_v18 }
0x204c   :  { %v2742_v26 = vsel %vm108_vm0, %v2736_v52, 0.0 }
0x204d   :  { %2743 = vadd.xlane.f32.xlu0 %v2742_v26 }
0x204f   :  { %v2847_v57 = vpop.f32.mrf.mxu0 }
0x2050   :  { %v5283_v22 = vadd.f32 %v3814_v35, %v2847_v57 }
0x2057   :  { %v2850_v56 = vpop.f32.mrf.mxu0 }
0x2058   :  { %v5279_v53 = vadd.f32 %v3814_v35, %v2850_v56 }
0x2061   :  { %2879 = vrot.lane.b32.xlu0 %v5279_v53, %s4117_s0 }
0x2069   :  { %2872 = vrot.lane.b32.xlu0 %v5283_v22, %s4117_s0 }
0x2071   :  { %2868 = vrot.lane.b32.xlu0 %v5283_v22, %s4116_s23 }
0x20a7   :  { %v2741_v6 = vpop.xlane.xlu1 %2740 }
0x20a8   :  { %v2745_v18 = vmul.f32 %v2741_v6, %v4455_v8 }
0x20aa   :  { %v2747_v21 = vsub.f32 %v2735_v32, %v2745_v18 }
0x20ac   :  { %v2749_v41 = vmul.f32 %v2747_v21, %v2747_v21 }
0x20ae   :  { %v2751_v37 = vsel %vm108_vm0, %v2749_v41, 0.0 }
0x20af   :  { %2752 = vadd.xlane.f32.xlu2 %v2751_v37 }
0x20c0   :  { %v2744_v10 = vpop.xlane.xlu0 %2743 }
0x20c1   :  { %v2746_v47 = vmul.f32 %v2744_v10, %v4455_v8 }
0x20c3   :  { %v2748_v23 = vsub.f32 %v2736_v52, %v2746_v47  ;;  %v3817_v52 = vld [vmem:[#allocation2 + $0x3a8] ss:$0 sm:$0xff] }
0x20c5   :  { %v2750_v44 = vmul.f32 %v2748_v23, %v2748_v23 }
0x20c7   :  { %2877 = vrot.lane.b32.xlu2 %v5279_v53, %s4115_s22  ;;  %v2754_v9 = vsel %vm108_vm0, %v2750_v44, 0.0 }
0x20c8   :  { %2755 = vadd.xlane.f32.xlu1 %v2754_v9 }
0x20cf   :  { %2870 = vrot.lane.b32.xlu2 %v5283_v22, %s4115_s22 }
0x20d3   :  { %v5297_v24 = vpop.permute.xlu0 %2879 }
0x20d4   :  { %3610 = vmatpush.xpose.msk.msra.mxu1 %vm168_vm1, %v5297_v24 }
0x20db   :  { %v5320_v43 = vpop.permute.xlu0 %2872 }
0x20e1   :  { %2875 = vrot.lane.b32.xlu1 %v5279_v53, %s4116_s23 }
0x20e3   :  { %v5328_v19 = vpop.permute.xlu0 %2868 }
0x2122   :  { %v2753_v55 = vpop.xlane.xlu2 %2752 }
0x2123   :  { %v2757_v59 = vmul.f32 %v2753_v55, %v4455_v8 }
0x2125   :  { %v2759_v1 = vadd.f32 1e-05, %v2757_v59 }
0x2127   :  { %4016 = vrsqrt.f32 %v2759_v1  ;;  %vm2767_vm7 = vweird.f32 %v2759_v1 }
0x212a   :  { %v2878_v7 = vpop.permute.xlu2 %2877 }
0x212b   :  { %3611 = vmatpush.xpose.msk.msra.mxu1 %vm168_vm1, %v2878_v7  ;;  %v3763_v6 = vpack.i.bf16 %v2878_v7, %v5297_v24 }
0x212d   :  { %v4017_v31 = vpop.eup %4016 }
0x212e   :  { %v2762_v36 = vmul.f32 %v4017_v31, %v2759_v1  ;;  %vm2768_vm6 = vweird.f32 %v4017_v31 }
0x212f   :  { %vm2769_vm8 = vmor %vm2767_vm7, %vm2768_vm6 }
0x2130   :  { %v2763_v51 = vmul.f32 %v4017_v31, %v2762_v36 }
0x2132   :  { %v2764_v62 = vmul.f32 0.5, %v2763_v51  ;;  %v5324_v39 = vpop.permute.xlu2 %2870 }
0x2134   :  { %v2765_v61 = vsub.f32 1.5, %v2764_v62 }
0x2136   :  { %v2766_v0 = vmul.f32 %v4017_v31, %v2765_v61 }
0x2138   :  { %v2770_v13 = vsel %vm2769_vm8, %v4017_v31, %v2766_v0 }
0x2139   :  { %v2781_v60 = vmul.f32 %v2770_v13, %v2747_v21 }
0x213b   :  { %v2784_v4 = vmul.f32 %v3815_v25, %v2781_v60  ;;  %v2756_v30 = vpop.xlane.xlu1 %2755 }
0x213c   :  { %v2758_v29 = vmul.f32 %v2756_v30, %v4455_v8 }
0x213d   :  { %v5306_v49 = vadd.f32 %v3816_v54, %v2784_v4 }
0x213e   :  { %v2760_v5 = vadd.f32 1e-05, %v2758_v29 }
0x213f   :  { %3606 = vmatmul.msk.f32.vlgmr.msrb.gmra.mxu1 %vm108_vm0, %v5306_v49 }
0x2140   :  { %4018 = vrsqrt.f32 %v2760_v5  ;;  %vm2777_vm2 = vweird.f32 %v2760_v5 }
0x2146   :  { %v4019_v38 = vpop.eup %4018 }
0x2147   :  { %v2772_v33 = vmul.f32 %v4019_v38, %v2760_v5  ;;  %vm2778_vm13 = vweird.f32 %v4019_v38 }
0x2148   :  { %vm2779_vm14 = vmor %vm2777_vm2, %vm2778_vm13 }
0x2149   :  { %v2773_v12 = vmul.f32 %v4019_v38, %v2772_v33 }
0x214b   :  { %v2774_v16 = vmul.f32 0.5, %v2773_v12 }
0x214d   :  { %v2775_v40 = vsub.f32 1.5, %v2774_v16 }
0x214f   :  { %v2776_v27 = vmul.f32 %v4019_v38, %v2775_v40  ;;  %v3778_v40 = vpack.i.bf16 %v5283_v22, %v5328_v19 }
0x2151   :  { %v2780_v14 = vsel %vm2779_vm14, %v4019_v38, %v2776_v27 }
0x2152   :  { %v2782_v17 = vmul.f32 %v2780_v14, %v2748_v23  ;;  %v3773_v14 = vpack.i.bf16 %v5324_v39, %v5320_v43 }
0x2153   :  { %v5310_v3 = vpop.permute.xlu1 %2875 }
0x2154   :  { %3612 = vmatpush.xpose.msk.msra.mxu1 %vm168_vm1, %v5310_v3  ;;  %v2785_v15 = vmul.f32 %v3815_v25, %v2782_v17 }
0x2156   :  { %v5314_v32 = vadd.f32 %v3816_v54, %v2785_v15 }
0x2158   :  { %3607 = vmatmul.msk.f32.gmra.mxu1 %vm108_vm0, %v5314_v32 }
0x2159   :  { %3613 = vmatpush.xpose.msk.msra.mxu1 %vm168_vm1, %v5279_v53 }
0x215d   :  { %3614 = vmatpush.xpose.msk.msra.mxu1 %vm168_vm1, %v5320_v43 }
0x2161   :  { %3615 = vmatpush.xpose.msk.msra.mxu1 %vm168_vm1, %v5324_v39 }
0x2165   :  { %3616 = vmatpush.xpose.msk.msra.mxu1 %vm168_vm1, %v5328_v19 }
0x2169   :  { %3617 = vmatpush.xpose.msk.msra.mxu1 %vm168_vm1, %v5283_v22 }
0x21bc   :  { %v2818_v26 = vpop.f32.mrf.mxu1 }
0x21bd   :  { %v2819_v57 = vadd.f32 %v3817_v52, %v2818_v26 }
0x21bf   :  { %2858 = vrot.lane.b32.xlu0 %v2819_v57, %s4117_s0  ;;  %2856 = vrot.lane.b32.xlu2 %v2819_v57, %s4115_s22 }
0x21c0   :  { %2854 = vrot.lane.b32.xlu1 %v2819_v57, %s4116_s23  ;;  %3618 = vmatmul.msk.f32.vlgmr.msra.gmra.mxu1 %vm168_vm1, %v2819_v57 }
0x21d5   :  { %v2821_v56 = vpop.f32.mrf.mxu1 }
0x21d6   :  { %v2822_v35 = vadd.f32 %v3817_v52, %v2821_v56 }
0x21d8   :  { %2865 = vrot.lane.b32.xlu0 %v2822_v35, %s4117_s0  ;;  %2863 = vrot.lane.b32.xlu2 %v2822_v35, %s4115_s22 }
0x21d9   :  { %2861 = vrot.lane.b32.xlu1 %v2822_v35, %s4116_s23 }
0x21e1   :  { %3764 = vrot.lane.b32.xlu1 %v3763_v6, %s4118_s24 }
0x2219   :  { %v2857_v11 = vpop.permute.xlu2 %2856 }
0x2231   :  { %v2859_v37 = vpop.permute.xlu0 %2858 }
0x2232   :  { %v2855_v18 = vpop.permute.xlu1 %2854  ;;  %v2864_v44 = vpop.permute.xlu2 %2863 }
0x2233   :  { %3619 = vmatmul.msk.f32.gmra.mxu1 %vm168_vm1, %v2855_v18 }
0x223b   :  { %3620 = vmatmul.msk.f32.gmra.mxu1 %vm168_vm1, %v2857_v11 }
0x223d   :  { %v2930_v45 = vpop.f32.mrf.mxu1 }
0x223e   :  { %v2954_v21 = vmul.f32 0.35355338, %v2930_v45 }
0x2240   :  { %v2962_v41 = vadd.f32 %v2954_v21, %v4252_v34 }
0x2242   :  { %v2970_v63 = vsel %vm258_vm3, %v2962_v41, -inf }
0x2243   :  { %2971 = vmax.xlane.f32.xlu1 %v2970_v63  ;;  %3621 = vmatmul.msk.f32.gmra.mxu1 %vm168_vm1, %v2859_v37 }
0x224a   :  { %v2866_v34 = vpop.permute.xlu0 %2865 }
0x224b   :  { %v2862_v48 = vpop.permute.xlu1 %2861  ;;  %3622 = vmatmul.msk.f32.gmra.mxu1 %vm168_vm1, %v2822_v35 }
0x2253   :  { %v3765_v10 = vpop.permute.xlu1 %3764  ;;  %3623 = vmatmul.msk.f32.gmra.mxu1 %vm168_vm1, %v2862_v48 }
0x2254   :  { %v3766_v47 = vunpack.i.l.bf16 %v3765_v10  ;;  %v3767_v23 = vunpack.i.h.bf16 %v3765_v10 }
0x2256   :  { %3114 = vmatpush.msrb.mxu0 %v3766_v47 }
0x2258   :  { %3115 = vmatpush.msrb.mxu0 %v3767_v23 }
0x225b   :  { %3624 = vmatmul.msk.f32.gmra.mxu1 %vm168_vm1, %v2864_v44 }
0x2263   :  { %3625 = vmatmul.msk.f32.gmra.mxu1 %vm168_vm1, %v2866_v34 }
0x22b0   :  { %v2933_v9 = vpop.f32.mrf.mxu1 }
0x22b1   :  { %v2955_v24 = vmul.f32 0.35355338, %v2933_v9 }
0x22b3   :  { %v2963_v55 = vadd.f32 %v2955_v24, %v4271_v42 }
0x22b5   :  { %v2973_v59 = vsel %vm258_vm3, %v2963_v55, -inf }
0x22b6   :  { %2974 = vmax.xlane.f32.xlu2 %v2973_v59  ;;  %v2972_v62 = vpop.xlane.xlu1 %2971 }
0x22b7   :  { %v2994_v25 = vsub.f32 %v2962_v41, %v2972_v62 }
0x22b8   :  { %v2936_v1 = vpop.f32.mrf.mxu1 }
0x22b9   :  { %v2956_v7 = vmul.f32 0.35355338, %v2936_v1  ;;  %v3002_v42 = vmul.f32 1.442695, %v2994_v25 }
0x22bb   :  { %v2964_v31 = vadd.f32 %v2956_v7, %v4290_v50  ;;  %4020 = vpow2.f32 %v3002_v42 }
0x22bd   :  { %v2976_v36 = vsel %vm258_vm3, %v2964_v31, -inf }
0x22be   :  { %2977 = vmax.xlane.f32.xlu0 %v2976_v36 }
0x22c0   :  { %v2939_v51 = vpop.f32.mrf.mxu1 }
0x22c1   :  { %v2957_v61 = vmul.f32 0.35355338, %v2939_v51  ;;  %v5360_v5 = vpop.eup %4020 }
0x22c3   :  { %v2965_v0 = vadd.f32 %v2957_v61, %v4309_v58  ;;  %v3018_v58 = vsel %vm258_vm3, %v5360_v5, 0.0 }
0x22c5   :  { %v2979_v13 = vsel %vm258_vm3, %v2965_v0, -inf }
0x22c6   :  { %2980 = vmax.xlane.f32.xlu1 %v2979_v13 }
0x22c8   :  { %v2942_v60 = vpop.f32.mrf.mxu1 }
0x22c9   :  { %v2958_v54 = vmul.f32 0.35355338, %v2942_v60 }
0x22cb   :  { %v2966_v4 = vadd.f32 %v2958_v54, %v4324_v2 }
0x22cd   :  { %v2982_v50 = vsel %vm258_vm3, %v2966_v4, -inf }
0x22ce   :  { %2983 = vmax.xlane.f32.xlu2 %v2982_v50 }
0x22d0   :  { %v2945_v30 = vpop.f32.mrf.mxu1 }
0x22d1   :  { %v2959_v29 = vmul.f32 0.35355338, %v2945_v30 }
0x22d3   :  { %v2967_v38 = vadd.f32 %v2959_v29, %v4363_v28  ;;  %v3768_v28 = vpack.i.bf16 %v5279_v53, %v5310_v3 }
0x22d5   :  { %v2985_v33 = vsel %vm258_vm3, %v2967_v38, -inf }
0x22d6   :  { %3019 = vadd.xlane.f32.xlu2 %v3018_v58  ;;  %2986 = vmax.xlane.f32.xlu0 %v2985_v33 }
0x22d8   :  { %v2948_v12 = vpop.f32.mrf.mxu1 }
0x22d9   :  { %v2960_v16 = vmul.f32 0.35355338, %v2948_v12 }
0x22db   :  { %v2968_v2 = vadd.f32 %v2960_v16, %v4344_v20 }
0x22dd   :  { %v2988_v27 = vsel %vm258_vm3, %v2968_v2, -inf }
0x22de   :  { %2989 = vmax.xlane.f32.xlu2 %v2988_v27 }
0x22df   :  { %3779 = vrot.lane.b32.xlu1 %v3778_v40, %s4118_s24 }
0x22e0   :  { %v2951_v17 = vpop.f32.mrf.mxu1 }
0x22e1   :  { %v2961_v20 = vmul.f32 0.35355338, %v2951_v17 }
0x22e3   :  { %v5378_v15 = vadd.f32 %v2961_v20, %v4382_v46 }
0x22e5   :  { %v2991_v22 = vsel %vm258_vm3, %v5378_v15, -inf }
0x22ea   :  { %3769 = vrot.lane.b32.xlu0 %v3768_v28, %s4118_s24 }
0x22f6   :  { %3774 = vrot.lane.b32.xlu2 %v3773_v14, %s4118_s24 }
0x2314   :  { %2992 = vmax.xlane.f32.xlu0 %v2991_v22 }
0x2329   :  { %v2975_v19 = vpop.xlane.xlu2 %2974 }
0x232a   :  { %v2995_v52 = vsub.f32 %v2963_v55, %v2975_v19 }
0x232c   :  { %v3004_v26 = vmul.f32 1.442695, %v2995_v52 }
0x232e   :  { %4022 = vpow2.f32 %v3004_v26 }
0x2331   :  { %v2978_v53 = vpop.xlane.xlu0 %2977 }
0x2332   :  { %v2996_v3 = vsub.f32 %v2964_v31, %v2978_v53 }
0x2334   :  { %v5382_v57 = vpop.eup %4022  ;;  %v3006_v43 = vmul.f32 1.442695, %v2996_v3 }
0x2335   :  { %v3021_v39 = vsel %vm258_vm3, %v5382_v57, 0.0 }
0x2336   :  { %4024 = vpow2.f32 %v3006_v43  ;;  %3022 = vadd.xlane.f32.xlu1 %v3021_v39 }
0x2339   :  { %v2981_v46 = vpop.xlane.xlu1 %2980 }
0x233a   :  { %v2997_v56 = vsub.f32 %v2965_v0, %v2981_v46 }
0x233c   :  { %v5386_v35 = vpop.eup %4024  ;;  %v3008_v6 = vmul.f32 1.442695, %v2997_v56 }
0x233d   :  { %v3024_v18 = vsel %vm258_vm3, %v5386_v35, 0.0 }
0x233e   :  { %4026 = vpow2.f32 %v3008_v6  ;;  %3025 = vadd.xlane.f32.xlu2 %v3024_v18 }
0x2341   :  { %v2984_v11 = vpop.xlane.xlu2 %2983 }
0x2342   :  { %v2998_v45 = vsub.f32 %v2966_v4, %v2984_v11 }
0x2344   :  { %v5390_v21 = vpop.eup %4026  ;;  %v3010_v41 = vmul.f32 1.442695, %v2998_v45  ;;  %v3180_v45 = vld [vmem:[#allocation2 + $0x3f0] sm:$0xff] }
0x2345   :  { %v3027_v37 = vsel %vm258_vm3, %v5390_v21, 0.0  ;;  %3201 = vmatpush.msra.mxu2 %v3180_v45 }
0x2346   :  { %4028 = vpow2.f32 %v3010_v41  ;;  %3028 = vadd.xlane.f32.xlu0 %v3027_v37  ;;  %v3178_v41 = vld [vmem:[#allocation2 + $0x3e0] sm:$0xff] }
0x2349   :  { %v2987_v63 = vpop.xlane.xlu0 %2986  ;;  %v3020_v48 = vpop.xlane.xlu2 %3019 }
0x234a   :  { %v2999_v10 = vsub.f32 %v2967_v38, %v2987_v63  ;;  %v3177_v63 = vld [vmem:[#allocation2 + $0x3d8] sm:$0xff] }
0x234c   :  { %v4029_v47 = vpop.eup %4028  ;;  %v3012_v23 = vmul.f32 1.442695, %v2999_v10 }
0x234d   :  { %v3030_v44 = vsel %vm258_vm3, %v4029_v47, 0.0 }
0x234e   :  { %4030 = vpow2.f32 %v3012_v23  ;;  %3031 = vadd.xlane.f32.xlu0 %v3030_v44 }
0x2351   :  { %v2990_v34 = vpop.xlane.xlu2 %2989  ;;  %v3780_v0 = vpop.permute.xlu1 %3779 }
0x2352   :  { %v3000_v9 = vsub.f32 %v2968_v2, %v2990_v34  ;;  %v3781_v42 = vunpack.i.l.bf16 %v3780_v0  ;;  %v3782_v60 = vunpack.i.h.bf16 %v3780_v0 }
0x2354   :  { %v4031_v24 = vpop.eup %4030  ;;  %v3014_v55 = vmul.f32 1.442695, %v3000_v9 }
0x2355   :  { %v3033_v59 = vsel %vm258_vm3, %v4031_v24, 0.0 }
0x2356   :  { %4032 = vpow2.f32 %v3014_v55  ;;  %3034 = vadd.xlane.f32.xlu1 %v3033_v59 }
0x2357   :  { %4034 = vrcp.f32 %v3020_v48 }
0x2359   :  { %v3775_v51 = vpop.permute.xlu2 %3774 }
0x235a   :  { %v3776_v61 = vunpack.i.l.bf16 %v3775_v51  ;;  %v3777_v25 = vunpack.i.h.bf16 %v3775_v51 }
0x235c   :  { %v4033_v1 = vpop.eup %4032  ;;  %v3770_v7 = vpop.permute.xlu0 %3769 }
0x235d   :  { %v3771_v31 = vunpack.i.l.bf16 %v3770_v7  ;;  %v3036_v36 = vsel %vm258_vm3, %v4033_v1, 0.0  ;;  %v3772_v62 = vunpack.i.h.bf16 %v3770_v7  ;;  %v4035_v13 = vpop.eup %4034 }
0x235e   :  { %3037 = vadd.xlane.f32.xlu2 %v3036_v36  ;;  %v3050_v54 = vmul.f32 %v4035_v13, %v5360_v5 }
0x235f   :  { %3116 = vmatpush.msrb.mxu0 %v3771_v31  ;;  %v3818_v31 = vld [vmem:[#allocation2 + $0x3f8] ss:$0 sm:$0xff] }
0x2361   :  { %3117 = vmatpush.msrb.mxu0 %v3772_v62 }
0x2363   :  { %3118 = vmatpush.msrb.mxu0 %v3776_v61 }
0x2365   :  { %3119 = vmatpush.msrb.mxu0 %v3777_v25 }
0x2367   :  { %3120 = vmatpush.msrb.mxu0 %v3781_v42 }
0x2369   :  { %3121 = vmatpush.msrb.mxu0 %v3782_v60 }
0x236a   :  { %3626 = vmatmul.msk.f32.vlgmr.msrb.gmra.mxu0 %vm258_vm3, %v3050_v54 }
0x2387   :  { %v2993_v4 = vpop.xlane.xlu0 %2992 }
0x2388   :  { %v3001_v50 = vsub.f32 %v5378_v15, %v2993_v4 }
0x238a   :  { %v3016_v30 = vmul.f32 1.442695, %v3001_v50 }
0x238c   :  { %4036 = vpow2.f32 %v3016_v30 }
0x2392   :  { %v4037_v29 = vpop.eup %4036 }
0x2393   :  { %v3039_v38 = vsel %vm258_vm3, %v4037_v29, 0.0 }
0x2394   :  { %3040 = vadd.xlane.f32.xlu0 %v3039_v38 }
0x23a9   :  { %v3023_v58 = vpop.xlane.xlu1 %3022 }
0x23aa   :  { %4038 = vrcp.f32 %v3023_v58 }
0x23b0   :  { %v4039_v33 = vpop.eup %4038 }
0x23b1   :  { %v3026_v12 = vpop.xlane.xlu2 %3025  ;;  %v3051_v16 = vmul.f32 %v4039_v33, %v5382_v57 }
0x23b2   :  { %4040 = vrcp.f32 %v3026_v12  ;;  %v3268_v12 = vld [vmem:[#allocation2 + $0x420] sm:$0xff] }
0x23b3   :  { %3627 = vmatmul.msk.f32.gmra.mxu0 %vm258_vm3, %v3051_v16  ;;  %v3267_v16 = vld [vmem:[#allocation2 + $0x418] sm:$0xff] }
0x23b8   :  { %v4041_v5 = vpop.eup %4040 }
0x23b9   :  { %v3029_v2 = vpop.xlane.xlu0 %3028  ;;  %v3052_v40 = vmul.f32 %v4041_v5, %v5386_v35  ;;  %v3266_v5 = vld [vmem:[#allocation2 + $0x410] sm:$0xff] }
0x23ba   :  { %4042 = vrcp.f32 %v3029_v2 }
0x23bb   :  { %3628 = vmatmul.msk.f32.gmra.mxu0 %vm258_vm3, %v3052_v40 }
0x23c0   :  { %v4043_v27 = vpop.eup %4042 }
0x23c1   :  { %v3032_v28 = vpop.xlane.xlu0 %3031  ;;  %v3053_v14 = vmul.f32 %v4043_v27, %v5390_v21  ;;  %v3179_v21 = vld [vmem:[#allocation2 + $0x3e8] sm:$0xff] }
0x23c2   :  { %4044 = vrcp.f32 %v3032_v28  ;;  %3202 = vmatpush.msra.mxu2 %v3179_v21 }
0x23c3   :  { %3629 = vmatmul.msk.f32.gmra.mxu0 %vm258_vm3, %v3053_v14 }
0x23c4   :  { %3203 = vmatpush.msra.mxu2 %v3178_v41 }
0x23c6   :  { %3204 = vmatpush.msra.mxu2 %v3177_v63 }
0x23c8   :  { %v4045_v17 = vpop.eup %4044 }
0x23c9   :  { %v3035_v20 = vpop.xlane.xlu1 %3034  ;;  %v3054_v15 = vmul.f32 %v4045_v17, %v4029_v47 }
0x23ca   :  { %4046 = vrcp.f32 %v3035_v20 }
0x23cb   :  { %3630 = vmatmul.msk.f32.gmra.mxu0 %vm258_vm3, %v3054_v15 }
0x23d0   :  { %v4047_v22 = vpop.eup %4046 }
0x23d1   :  { %v3038_v19 = vpop.xlane.xlu2 %3037  ;;  %v3055_v52 = vmul.f32 %v4047_v22, %v4031_v24 }
0x23d2   :  { %4048 = vrcp.f32 %v3038_v19  ;;  %v3819_v19 = vld [vmem:[#allocation2 + $0x400] ss:$0 sm:$0xff] }
0x23d3   :  { %3631 = vmatmul.msk.f32.gmra.mxu0 %vm258_vm3, %v3055_v52 }
0x23d8   :  { %v4049_v26 = vpop.eup %4048 }
0x23d9   :  { %v3056_v53 = vmul.f32 %v4049_v26, %v4033_v1  ;;  %v3820_v26 = vld [vmem:[#allocation2 + $0x408] ss:$0 sm:$0xff] }
0x23db   :  { %3632 = vmatmul.msk.f32.gmra.mxu0 %vm258_vm3, %v3056_v53 }
0x23e7   :  { %v3123_v39 = vpop.f32.mrf.mxu0 }
0x2407   :  { %v3041_v3 = vpop.xlane.xlu0 %3040 }
0x2408   :  { %4050 = vrcp.f32 %v3041_v3 }
0x240e   :  { %v4051_v57 = vpop.eup %4050 }
0x240f   :  { %v3057_v43 = vmul.f32 %v4051_v57, %v4037_v29 }
0x2411   :  { %3633 = vmatmul.msk.f32.gmra.mxu0 %vm258_vm3, %v3057_v43  ;;  %v3310_v43 = vld [vmem:[#allocation2 + $0x470] sm:$0xff] }
0x2412   :  { %3327 = vmatpush.msrb.mxu2 %v3310_v43 }
0x2430   :  { %v3126_v46 = vpop.f32.mrf.mxu0 }
0x2431   :  { %3148 = vrot.lane.b32.xlu1 %v3126_v46, %s4114_s18  ;;  %v3308_v46 = vld [vmem:[#allocation2 + $0x460] sm:$0xff] }
0x2438   :  { %v3129_v56 = vpop.f32.mrf.mxu0 }
0x2439   :  { %3152 = vrot.lane.b32.xlu2 %v3129_v56, %s4121_s26 }
0x2440   :  { %v3132_v35 = vpop.f32.mrf.mxu0 }
0x2441   :  { %3156 = vrot.lane.b32.xlu0 %v3132_v35, %s4122_s27 }
0x2448   :  { %v3135_v6 = vpop.f32.mrf.mxu0 }
0x2450   :  { %v3138_v18 = vpop.f32.mrf.mxu0 }
0x2451   :  { %3163 = vrot.lane.b32.xlu1 %v3138_v18, %s4114_s18 }
0x2458   :  { %v3141_v11 = vpop.f32.mrf.mxu0 }
0x2459   :  { %3167 = vrot.lane.b32.xlu0 %v3141_v11, %s4121_s26  ;;  %v3306_v11 = vld [vmem:[#allocation2 + $0x450] sm:$0xff] }
0x248e   :  { %v3144_v37 = vpop.f32.mrf.mxu0 }
0x248f   :  { %3171 = vrot.lane.b32.xlu2 %v3144_v37, %s4122_s27 }
0x2493   :  { %v3153_v47 = vpop.permute.xlu2 %3152 }
0x24a3   :  { %v3149_v48 = vpop.permute.xlu1 %3148 }
0x24a4   :  { %v3159_v10 = vsel %vm168_vm1, %v3123_v39, %v3149_v48  ;;  %v3309_v39 = vld [vmem:[#allocation2 + $0x468] sm:$0xff] }
0x24a5   :  { %v3160_v23 = vsel %vm449_vm11, %v3159_v10, %v3153_v47  ;;  %3328 = vmatpush.msrb.mxu2 %v3309_v39 }
0x24a7   :  { %3329 = vmatpush.msrb.mxu2 %v3308_v46 }
0x24b3   :  { %v3157_v44 = vpop.permute.xlu0 %3156 }
0x24b4   :  { %v3161_v34 = vsel %vm5484_vm9, %v3160_v23, %v3157_v44 }
0x24b5   :  { %3634 = vmatmul.msk.f32.vlgmr.msra.gmra.mxu2 %vm108_vm0, %v3161_v34  ;;  %v3305_v34 = vld [vmem:[#allocation2 + $0x448] sm:$0xff] }
0x24c3   :  { %v3164_v9 = vpop.permute.xlu1 %3163 }
0x24c4   :  { %v3174_v55 = vsel %vm168_vm1, %v3135_v6, %v3164_v9  ;;  %v3307_v6 = vld [vmem:[#allocation2 + $0x458] sm:$0xff]  ;;  %v3304_v9 = vld [vmem:[#allocation2 + $0x440] sm:$0xff] }
0x24c5   :  { %3330 = vmatpush.msrb.mxu2 %v3307_v6 }
0x24c7   :  { %3331 = vmatpush.msrb.mxu2 %v3306_v11 }
0x24c9   :  { %3332 = vmatpush.msrb.mxu2 %v3305_v34 }
0x24cb   :  { %v3168_v24 = vpop.permute.xlu0 %3167  ;;  %3333 = vmatpush.msrb.mxu2 %v3304_v9 }
0x24cc   :  { %v3175_v59 = vsel %vm449_vm11, %v3174_v55, %v3168_v24  ;;  %v3303_v24 = vld [vmem:[#allocation2 + $0x438] sm:$0xff]  ;;  %v3821_v55 = vld [vmem:[#allocation2 + $0x430] ss:$0 sm:$0xff] }
0x24cd   :  { %3334 = vmatpush.msrb.mxu2 %v3303_v24 }
0x24e9   :  { %v3172_v1 = vpop.permute.xlu2 %3171 }
0x24ea   :  { %v3176_v7 = vsel %vm5485_vm10, %v3175_v59, %v3172_v1 }
0x24eb   :  { %3635 = vmatmul.msk.f32.gmra.mxu2 %vm108_vm0, %v3176_v7 }
0x2538   :  { %v3206_v36 = vpop.f32.mrf.mxu2 }
0x2539   :  { %v3207_v51 = vadd.f32 %v3818_v31, %v3206_v36 }
0x253b   :  { %v3212_v62 = vadd.f32 %v3207_v51, %v5306_v49 }
0x253d   :  { %v3216_v61 = vsel %vm108_vm0, %v3212_v62, 0.0 }
0x253e   :  { %3217 = vadd.xlane.f32.xlu1 %v3216_v61 }
0x256e   :  { %v3209_v0 = vpop.f32.mrf.mxu2 }
0x256f   :  { %v3210_v25 = vadd.f32 %v3818_v31, %v3209_v0 }
0x2571   :  { %v3213_v13 = vadd.f32 %v3210_v25, %v5314_v32  ;;  %v3269_v32 = vld [vmem:[#allocation2 + $0x428] sm:$0xff] }
0x2572   :  { %3290 = vmatpush.msrb.mxu3 %v3269_v32 }
0x2573   :  { %v3219_v42 = vsel %vm108_vm0, %v3213_v13, 0.0 }
0x2574   :  { %3220 = vadd.xlane.f32.xlu0 %v3219_v42  ;;  %3291 = vmatpush.msrb.mxu3 %v3268_v12 }
0x2576   :  { %3292 = vmatpush.msrb.mxu3 %v3267_v16 }
0x2578   :  { %3293 = vmatpush.msrb.mxu3 %v3266_v5  ;;  %v3399_v5 = vld [vmem:[#allocation2 + $0x4a8] sm:$0xff] }
0x257a   :  { %3420 = vmatpush.msra.mxu3 %v3399_v5 }
0x25b1   :  { %v3218_v60 = vpop.xlane.xlu1 %3217 }
0x25b2   :  { %v3222_v54 = vmul.f32 %v3218_v60, %v4455_v8 }
0x25b4   :  { %v3224_v4 = vsub.f32 %v3212_v62, %v3222_v54  ;;  %v3822_v62 = vld [vmem:[#allocation2 + $0x478] ss:$0 sm:$0xff] }
0x25b6   :  { %v3226_v50 = vmul.f32 %v3224_v4, %v3224_v4 }
0x25b8   :  { %v3228_v30 = vsel %vm108_vm0, %v3226_v50, 0.0 }
0x25b9   :  { %3229 = vadd.xlane.f32.xlu2 %v3228_v30 }
0x25e7   :  { %v3221_v29 = vpop.xlane.xlu0 %3220 }
0x25e8   :  { %v3223_v49 = vmul.f32 %v3221_v29, %v4455_v8 }
0x25ea   :  { %v3225_v38 = vsub.f32 %v3213_v13, %v3223_v49 }
0x25ec   :  { %v3227_v58 = vmul.f32 %v3225_v38, %v3225_v38 }
0x25ee   :  { %v3231_v33 = vsel %vm108_vm0, %v3227_v58, 0.0 }
0x25ef   :  { %3232 = vadd.xlane.f32.xlu1 %v3231_v33 }
0x262c   :  { %v3230_v2 = vpop.xlane.xlu2 %3229 }
0x262d   :  { %v3234_v40 = vmul.f32 %v3230_v2, %v4455_v8  ;;  %v3398_v2 = vld [vmem:[#allocation2 + $0x4a0] sm:$0xff] }
0x262e   :  { %3421 = vmatpush.msra.mxu3 %v3398_v2 }
0x262f   :  { %v3236_v27 = vadd.f32 1e-05, %v3234_v40  ;;  %v3397_v40 = vld [vmem:[#allocation2 + $0x498] sm:$0xff] }
0x2630   :  { %3422 = vmatpush.msra.mxu3 %v3397_v40 }
0x2631   :  { %4052 = vrsqrt.f32 %v3236_v27  ;;  %vm3244_vm11 = vweird.f32 %v3236_v27 }
0x2637   :  { %v4053_v28 = vpop.eup %4052 }
0x2638   :  { %v3239_v14 = vmul.f32 %v4053_v28, %v3236_v27  ;;  %vm3245_vm1 = vweird.f32 %v4053_v28  ;;  %v3396_v27 = vld [vmem:[#allocation2 + $0x490] sm:$0xff] }
0x2639   :  { %vm3246_vm4 = vmor %vm3244_vm11, %vm3245_vm1  ;;  %3423 = vmatpush.msra.mxu3 %v3396_v27 }
0x263a   :  { %v3240_v17 = vmul.f32 %v4053_v28, %v3239_v14 }
0x263c   :  { %v3241_v20 = vmul.f32 0.5, %v3240_v17 }
0x263e   :  { %v3242_v15 = vsub.f32 1.5, %v3241_v20 }
0x2640   :  { %v3243_v22 = vmul.f32 %v4053_v28, %v3242_v15 }
0x2642   :  { %v3247_v52 = vsel %vm3246_vm4, %v4053_v28, %v3243_v22 }
0x2643   :  { %v3258_v53 = vmul.f32 %v3247_v52, %v3224_v4 }
0x2645   :  { %v3261_v3 = vmul.f32 %v3819_v19, %v3258_v53  ;;  %v3823_v53 = vld [vmem:[#allocation2 + $0x480] ss:$0 sm:$0xff] }
0x2647   :  { %v3264_v57 = vadd.f32 %v3820_v26, %v3261_v3 }
0x2649   :  { %3636 = vmatmul.msk.f32.vlgmr.msrb.gmra.mxu3 %vm108_vm0, %v3264_v57 }
0x2662   :  { %v3233_v56 = vpop.xlane.xlu1 %3232 }
0x2663   :  { %v3235_v35 = vmul.f32 %v3233_v56, %v4455_v8 }
0x2665   :  { %v3237_v18 = vadd.f32 1e-05, %v3235_v35 }
0x2667   :  { %4054 = vrsqrt.f32 %v3237_v18  ;;  %vm3254_vm5 = vweird.f32 %v3237_v18 }
0x266d   :  { %v4055_v45 = vpop.eup %4054 }
0x266e   :  { %v3249_v21 = vmul.f32 %v4055_v45, %v3237_v18  ;;  %vm3255_vm12 = vweird.f32 %v4055_v45 }
0x266f   :  { %vm3256_vm15 = vmor %vm3254_vm5, %vm3255_vm12 }
0x2670   :  { %v3250_v41 = vmul.f32 %v4055_v45, %v3249_v21 }
0x2672   :  { %v3251_v37 = vmul.f32 0.5, %v3250_v41 }
0x2674   :  { %v3252_v63 = vsub.f32 1.5, %v3251_v37 }
0x2676   :  { %v3253_v48 = vmul.f32 %v4055_v45, %v3252_v63 }
0x2678   :  { %v3257_v10 = vsel %vm3256_vm15, %v4055_v45, %v3253_v48 }
0x2679   :  { %v3259_v47 = vmul.f32 %v3257_v10, %v3225_v38 }
0x267b   :  { %v3262_v23 = vmul.f32 %v3819_v19, %v3259_v47 }
0x267d   :  { %v3265_v44 = vadd.f32 %v3820_v26, %v3262_v23  ;;  %v3825_v23 = vld [vmem:[#allocation2 + $0x4b0] ss:$0 sm:$0xff] }
0x267f   :  { %3637 = vmatmul.msk.f32.gmra.mxu3 %vm108_vm0, %v3265_v44 }
0x26cc   :  { %v3295_v59 = vpop.f32.mrf.mxu3 }
0x26cd   :  { %v3296_v1 = vadd.f32 %v3821_v55, %v3295_v59 }
0x26cf   :  { %v3301_v7 = vmax.f32 %v3296_v1, 0.0 }
0x26d1   :  { %3638 = vmatmul.msk.f32.vlgmr.msrb.gmra.mxu2 %vm258_vm3, %v3301_v7 }
0x2702   :  { %v3298_v31 = vpop.f32.mrf.mxu3 }
0x2703   :  { %v3299_v36 = vadd.f32 %v3821_v55, %v3298_v31 }
0x2705   :  { %v3302_v51 = vmax.f32 %v3299_v36, 0.0 }
0x2707   :  { %3639 = vmatmul.msk.f32.gmra.mxu2 %vm258_vm3, %v3302_v51 }
0x2754   :  { %v3336_v61 = vpop.f32.mrf.mxu2 }
0x2755   :  { %v3337_v0 = vadd.f32 %v3822_v62, %v3336_v61 }
0x2757   :  { %v3342_v25 = vadd.f32 %v3337_v0, %v3264_v57  ;;  %v3824_v57 = vld [vmem:[#allocation2 + $0x488] ss:$0 sm:$0xff] }
0x2759   :  { %v3346_v13 = vsel %vm108_vm0, %v3342_v25, 0.0 }
0x275a   :  { %3347 = vadd.xlane.f32.xlu0 %v3346_v13 }
0x278a   :  { %v3339_v42 = vpop.f32.mrf.mxu2 }
0x278b   :  { %v3340_v60 = vadd.f32 %v3822_v62, %v3339_v42 }
0x278d   :  { %v3343_v54 = vadd.f32 %v3340_v60, %v3265_v44 }
0x278f   :  { %v3349_v4 = vsel %vm108_vm0, %v3343_v54, 0.0 }
0x2790   :  { %3350 = vadd.xlane.f32.xlu2 %v3349_v4 }
0x27cd   :  { %v3348_v50 = vpop.xlane.xlu0 %3347 }
0x27ce   :  { %v3352_v30 = vmul.f32 %v3348_v50, %v4455_v8 }
0x27d0   :  { %v3354_v29 = vsub.f32 %v3342_v25, %v3352_v30 }
0x27d2   :  { %v3356_v49 = vmul.f32 %v3354_v29, %v3354_v29 }
0x27d4   :  { %v3358_v38 = vsel %vm108_vm0, %v3356_v49, 0.0 }
0x27d5   :  { %3359 = vadd.xlane.f32.xlu1 %v3358_v38 }
0x2803   :  { %v3351_v58 = vpop.xlane.xlu2 %3350 }
0x2804   :  { %v3353_v33 = vmul.f32 %v3351_v58, %v4455_v8 }
0x2806   :  { %v3355_v32 = vsub.f32 %v3343_v54, %v3353_v33 }
0x2808   :  { %v3357_v12 = vmul.f32 %v3355_v32, %v3355_v32 }
0x280a   :  { %v3361_v16 = vsel %vm108_vm0, %v3357_v12, 0.0 }
0x280b   :  { %3362 = vadd.xlane.f32.xlu0 %v3361_v16 }
0x2848   :  { %v3360_v28 = vpop.xlane.xlu1 %3359 }
0x2849   :  { %v3364_v14 = vmul.f32 %v3360_v28, %v4455_v8 }
0x284b   :  { %v3366_v17 = vadd.f32 1e-05, %v3364_v14 }
0x284d   :  { %4056 = vrsqrt.f32 %v3366_v17  ;;  %vm3374_vm6 = vweird.f32 %v3366_v17 }
0x2853   :  { %v4057_v20 = vpop.eup %4056 }
0x2854   :  { %v3369_v15 = vmul.f32 %v4057_v20, %v3366_v17  ;;  %vm3375_vm3 = vweird.f32 %v4057_v20 }
0x2855   :  { %vm3376_vm7 = vmor %vm3374_vm6, %vm3375_vm3 }
0x2856   :  { %v3370_v22 = vmul.f32 %v4057_v20, %v3369_v15 }
0x2858   :  { %v3371_v19 = vmul.f32 0.5, %v3370_v22 }
0x285a   :  { %v3372_v52 = vsub.f32 1.5, %v3371_v19 }
0x285c   :  { %v3373_v26 = vmul.f32 %v4057_v20, %v3372_v52 }
0x285e   :  { %v3377_v3 = vsel %vm3376_vm7, %v4057_v20, %v3373_v26 }
0x285f   :  { %v3388_v43 = vmul.f32 %v3377_v3, %v3354_v29 }
0x2861   :  { %v3391_v39 = vmul.f32 %v3823_v53, %v3388_v43 }
0x2863   :  { %v3394_v46 = vadd.f32 %v3824_v57, %v3391_v39 }
0x2865   :  { %3640 = vmatmul.msk.f32.vlgmr.msra.gmra.mxu3 %vm108_vm0, %v3394_v46 }
0x287e   :  { %v3363_v56 = vpop.xlane.xlu0 %3362 }
0x287f   :  { %v3365_v35 = vmul.f32 %v3363_v56, %v4455_v8 }
0x2881   :  { %v3367_v6 = vadd.f32 1e-05, %v3365_v35 }
0x2883   :  { %4058 = vrsqrt.f32 %v3367_v6  ;;  %vm3384_vm13 = vweird.f32 %v3367_v6 }
0x2889   :  { %v4059_v18 = vpop.eup %4058 }
0x288a   :  { %v3379_v11 = vmul.f32 %v4059_v18, %v3367_v6  ;;  %vm3385_vm8 = vweird.f32 %v4059_v18 }
0x288b   :  { %vm3386_vm2 = vmor %vm3384_vm13, %vm3385_vm8 }
0x288c   :  { %v3380_v45 = vmul.f32 %v4059_v18, %v3379_v11 }
0x288e   :  { %v3381_v21 = vmul.f32 0.5, %v3380_v45 }
0x2890   :  { %v3382_v41 = vsub.f32 1.5, %v3381_v21 }
0x2892   :  { %v3383_v37 = vmul.f32 %v4059_v18, %v3382_v41 }
0x2894   :  { %v3387_v63 = vsel %vm3386_vm2, %v4059_v18, %v3383_v37 }
0x2895   :  { %v3389_v48 = vmul.f32 %v3387_v63, %v3355_v32 }
0x2897   :  { %v3392_v10 = vmul.f32 %v3823_v53, %v3389_v48 }
0x2899   :  { %v3395_v47 = vadd.f32 %v3824_v57, %v3392_v10 }
0x289b   :  { %3641 = vmatmul.msk.f32.gmra.mxu3 %vm108_vm0, %v3395_v47 }
0x28e8   :  { %v3425_v44 = vpop.f32.mrf.mxu3 }
0x28e9   :  { %v3426_v8 = vadd.f32 %v3825_v23, %v3425_v44 }
0x28eb   :  { %3431 = vst.msk [vmem:[#allocation5] sm:$0xff] %vm108_vm0, %v3426_v8 }
0x291e   :  { %v3428_v34 = vpop.f32.mrf.mxu3 }
0x291f   :  { %v3429_v9 = vadd.f32 %v3825_v23, %v3428_v34 }
0x2921   :  { %3432 = vst.msk [vmem:[#allocation5 + $0x8] sm:$0xff] %vm108_vm0, %v3429_v9 }
0x2922   :  { %3445 = dma.vmem_to_hbm [thread:$0]  %s3438_s5, 256, %s3440_s8, [#allocation4], %s4113_s17, %s4113_s17, %s4114_s18  }
0x2923   :  { %4110 = dma.done.wait [#allocation4], 256  }
0x2924   :  { %4111 = vsyncadd [#allocation4], 4294967040 }
0x2925   :  { %3450 = vsyncpa [#allocation3], 1 }
0x2926   :  { %3451 = vsyncpa [#allocation4], 1 }

</bundles_post_ra>
